<compile_context>
chip_gen: v6e
topology: v6e:2x2x1
jax: 0.10.0
libtpu: 0.0.40
codegen_flags: <defaults>
</compile_context>

<pallas_src>
import math
import jax
import jax.numpy as jnp
from jax.experimental import pallas as pl
from jax.experimental.pallas import tpu as pltpu

_INV_SQRT2 = 1.0 / math.sqrt(2.0)


def _gelu_exact_f32(x):
    # PyTorch nn.GELU default is the exact (erf) formulation; computed in f32.
    return 0.5 * x * (1.0 + jax.lax.erf(x * _INV_SQRT2))


def _make_kernel(precision, single_h_slab):
    """Build the fused fc1 -> GELU -> fc2 kernel.

    w1 is passed transposed: w1t block is (tile_h, c_in), contracted against x's
    feature axis (contiguous HBM row slabs instead of a strided column gather).
    """
    if single_h_slab:
        def kernel(x_ref, w1t_ref, b1_ref, w2_ref, b2_ref, o_ref):
            h = jax.lax.dot_general(
                x_ref[...], w1t_ref[...], (((1,), (1,)), ((), ())),
                preferred_element_type=jnp.float32, precision=precision)
            h = _gelu_exact_f32(h + b1_ref[...].astype(jnp.float32))
            # TODO(synk): dropout is identity for drop=0.0; for drop>0 mask `h` here
            # with pltpu.prng_seed / pltpu.prng_random_bits.
            out = jnp.dot(h.astype(w2_ref.dtype), w2_ref[...],
                          preferred_element_type=jnp.float32, precision=precision)
            o_ref[...] = (out + b2_ref[...].astype(jnp.float32)).astype(o_ref.dtype)
        return kernel

    def kernel(x_ref, w1t_ref, b1_ref, w2_ref, b2_ref, o_ref, acc_ref):
        k = pl.program_id(1)

        h = jax.lax.dot_general(
            x_ref[...], w1t_ref[...], (((1,), (1,)), ((), ())),
            preferred_element_type=jnp.float32, precision=precision)
        h = _gelu_exact_f32(h + b1_ref[...].astype(jnp.float32))
        part = jnp.dot(h.astype(w2_ref.dtype), w2_ref[...],
                       preferred_element_type=jnp.float32, precision=precision)

        # Fold zero-init into the first k step (saves one full-tile f32 store pass).
        @pl.when(k == 0)
        def _():
            acc_ref[...] = part

        @pl.when(k > 0)
        def _():
            acc_ref[...] += part

        @pl.when(k == pl.num_programs(1) - 1)
        def _():
            o_ref[...] = (acc_ref[...] + b2_ref[...].astype(jnp.float32)
                          ).astype(o_ref.dtype)
    return kernel


def _round_up(x, mult):
    return (x + mult - 1) // mult * mult


def _chip_generation():
    try:
        kind = jax.devices()[0].device_kind.lower()
    except Exception:
        return "unknown"
    if "v7" in kind:
        return "v7x"
    if "v6" in kind:
        return "v6e"
    if "v5" in kind:
        return "v5e"
    return "unknown"


def _vmem_budget_bytes(gen):
    try:
        cap = int(pltpu.get_tpu_info().vmem_capacity_bytes)
    except Exception:
        cap = None
    if gen == "v7x":
        # v7x has 64 MiB VMEM *per TensorCore*; never trust a per-chip number and
        # leave extra headroom (erf temporaries + bf16 copy of h are not tiled away).
        cap = min(cap or (64 << 20), 64 << 20)
        return min(int(cap * 0.6), 48 << 20)
    if cap is None:
        cap = (128 << 20) if gen in ("v5e", "v6e") else (64 << 20)
    return int(cap * 0.7)


def _vmem_estimate(tile_m, tile_h, c_in, c_out_p, itemsize, n_wbuf=2):
    return (2 * tile_m * c_in * itemsize            # x block (double-buffered)
            + n_wbuf * tile_h * c_in * itemsize     # w1^T slab
            + 2 * tile_h * itemsize                 # b1 slab
            + n_wbuf * tile_h * c_out_p * itemsize  # w2 slab
            + 2 * c_out_p * itemsize                # b2
            + 2 * tile_m * c_out_p * itemsize       # output block (double-buffered)
            + tile_m * c_out_p * 4                  # f32 accumulator scratch
            + 3 * tile_m * tile_h * 4)              # h (f32) + erf temps + cast copy


def _select_tiles(m, c_in, hidden, c_out_p, itemsize, budget, gen, n_wbuf=2):
    sub = 16 if itemsize == 2 else 8
    h128 = _round_up(hidden, 128)
    min_th = 128 if gen == "v5e" else 256       # 256x256 MXU on v6e/v7x
    min_th = min(min_th, h128)

    tm_full = max(sub, min(512, _round_up(m, sub)))
    if gen == "v7x" and m > sub:
        # Only v7x has 2 TensorCores per chip: prefer >= 2 programs on the M axis.
        # On single-TC v5e/v6e this would only double weight re-streaming.
        tm_full = min(tm_full, _round_up(-(-m // 2), sub))

    th_cands = [h128] + [t for t in (4096, 2048, 1024, 512, 256, 128)
                         if min_th <= t < h128]

    if gen == "v7x":
        # When the 48 MiB budget is tight, shrink tile_m before dropping tile_h
        # below 512: weight re-streaming is ~free at 3.2 TB/s HBM, large tile_h
        # keeps the MXU fed and halves the number of k accumulation steps.
        tm_cands = [tm_full] + ([256] if tm_full > 256 else [])
        th_big = [t for t in th_cands if t >= min(512, h128)]
        th_small = [t for t in th_cands if t < min(512, h128)]
        combos = [(tm, th) for th in th_big for tm in tm_cands]
        combos += [(tm, th) for th in th_small for tm in tm_cands]
    else:
        combos = [(tm_full, th) for th in th_cands]

    for tm, th in combos:
        if _vmem_estimate(tm, th, c_in, c_out_p, itemsize, n_wbuf) <= budget:
            return tm, th
    return max(sub, min(128, tm_full)), min_th  # smallest legal fallback


def _maybe_buffered_spec(block_shape, index_map, n_buffers):
    """Weight-slab BlockSpec, optionally with deeper pipelining (v5e/v6e only)."""
    if n_buffers and n_buffers > 2 and hasattr(pl, "Buffered"):
        try:
            return pl.BlockSpec(block_shape, index_map,
                                pipeline_mode=pl.Buffered(int(n_buffers)))
        except TypeError:
            pass
    return pl.BlockSpec(block_shape, index_map)


def mlp_pallas(x, w1, b1, w2, b2, *, tile_m=None, tile_h=None, precision=None,
               weight_buffers=None, vmem_limit_bytes=None):
    """x: (..., C_in) -> (..., C_out). Leading dims flattened into M."""
    orig_shape = x.shape
    c_in = orig_shape[-1]
    m = math.prod(orig_shape[:-1])  # pure-Python shape math
    hidden = w1.shape[1]
    c_out = w2.shape[1]
    itemsize = jnp.dtype(x.dtype).itemsize
    out_dtype = x.dtype
    gen = _chip_generation()

    # Explicit precision on the f32 path (matches reference / nn.Linear accuracy);
    # bf16 operands use the default fast MXU path with f32 accumulation.
    if precision is None and jnp.dtype(x.dtype) == jnp.dtype(jnp.float32):
        precision = jax.lax.Precision.HIGHEST

    # Standard double-buffering by default. Raise to 3 on v5e/v6e (NOT v7x) if
    # profiling shows an exposed DMA bubble when both weight slabs refill at a new
    # M tile; VMEM headroom there makes the extra buffer affordable.
    n_wbuf = 2 if weight_buffers is None else max(2, int(weight_buffers))

    budget = _vmem_budget_bytes(gen) if vmem_limit_bytes is None else int(vmem_limit_bytes)

    # Lane-dense output: pad c_out to a multiple of 128 (unmasked vst), slice after.
    c_out_p = _round_up(c_out, 128)

    sub = 16 if itemsize == 2 else 8
    auto_tm, auto_th = _select_tiles(m, c_in, hidden, c_out_p, itemsize, budget, gen, n_wbuf)
    tile_m = auto_tm if tile_m is None else _round_up(max(int(tile_m), sub), sub)
    tile_h = auto_th if tile_h is None else _round_up(max(int(tile_h), 128), 128)

    # --- pad M (tokens) to a multiple of tile_m: zero rows, sliced off at the end ---
    x2 = x.reshape(m, c_in)
    m_pad = _round_up(m, tile_m)
    if m_pad != m:
        x2 = jnp.pad(x2, ((0, m_pad - m), (0, 0)))

    # --- transpose w1 once for contiguous hidden-slab streaming; zero-pad H exactly ---
    # (gelu(0 + 0) = 0 and padded w2 rows are zero, so padded H never pollutes the acc).
    h_pad = _round_up(hidden, tile_h)
    w1t = jnp.transpose(w1)                       # (hidden, c_in)
    b1_2d = b1.reshape(1, hidden)
    b2_2d = b2.reshape(1, c_out)
    w2_p = w2
    if h_pad != hidden:
        w1t = jnp.pad(w1t, ((0, h_pad - hidden), (0, 0)))
        b1_2d = jnp.pad(b1_2d, ((0, 0), (0, h_pad - hidden)))
        w2_p = jnp.pad(w2_p, ((0, h_pad - hidden), (0, 0)))
    if c_out_p != c_out:
        w2_p = jnp.pad(w2_p, ((0, 0), (0, c_out_p - c_out)))
        b2_2d = jnp.pad(b2_2d, ((0, 0), (0, c_out_p - c_out)))

    grid_m = m_pad // tile_m
    grid_h = h_pad // tile_h

    w_itemsize = jnp.dtype(w1.dtype).itemsize
    cost = pl.CostEstimate(
        flops=2 * m_pad * h_pad * (c_in + c_out_p),
        transcendentals=m_pad * h_pad,  # erf
        bytes_accessed=int(
            x2.size * itemsize
            + grid_m * (w1t.size + w2_p.size) * w_itemsize        # re-streamed per M tile
            + grid_m * (b1_2d.size + b2_2d.size) * jnp.dtype(b1.dtype).itemsize
            + m_pad * c_out_p * itemsize),
    )

    # TODO(synk): for decode/small-M shapes on v7x (grid_m == 1) add a parallel grid
    # axis over c_out so both TensorCores get work (accept fc1+GELU recompute).
    if grid_h == 1:
        # Whole hidden dim fits in one slab: weights stay resident, no accumulator
        # scratch, no init/finalize store passes.
        kernel = _make_kernel(precision, single_h_slab=True)
        grid_spec = pltpu.PrefetchScalarGridSpec(
            num_scalar_prefetch=0,
            grid=(grid_m,),
            in_specs=[
                pl.BlockSpec((tile_m, c_in), lambda i: (i, 0)),        # x block
                pl.BlockSpec((tile_h, c_in), lambda i: (0, 0)),        # w1^T resident
                pl.BlockSpec((1, tile_h), lambda i: (0, 0)),           # b1 resident
                pl.BlockSpec((tile_h, c_out_p), lambda i: (0, 0)),     # w2 resident
                pl.BlockSpec((1, c_out_p), lambda i: (0, 0)),          # b2 resident
            ],
            out_specs=pl.BlockSpec((tile_m, c_out_p), lambda i: (i, 0)),
            scratch_shapes=[],
        )
        dims = ("parallel",)
    else:
        kernel = _make_kernel(precision, single_h_slab=False)
        grid_spec = pltpu.PrefetchScalarGridSpec(
            num_scalar_prefetch=0,
            grid=(grid_m, grid_h),
            in_specs=[
                pl.BlockSpec((tile_m, c_in), lambda i, k: (i, 0)),     # x resident over k
                _maybe_buffered_spec((tile_h, c_in), lambda i, k: (k, 0), n_wbuf),   # w1^T slab
                pl.BlockSpec((1, tile_h), lambda i, k: (0, k)),        # b1 slab
                _maybe_buffered_spec((tile_h, c_out_p), lambda i, k: (k, 0), n_wbuf),  # w2 slab
                pl.BlockSpec((1, c_out_p), lambda i, k: (0, 0)),       # b2
            ],
            out_specs=pl.BlockSpec((tile_m, c_out_p), lambda i, k: (i, 0)),
            scratch_shapes=[pltpu.VMEM((tile_m, c_out_p), jnp.float32)],
        )
        dims = ("parallel", "arbitrary")

    out2 = pl.pallas_call(
        kernel,
        out_shape=jax.ShapeDtypeStruct((m_pad, c_out_p), out_dtype),
        grid_spec=grid_spec,
        compiler_params=pltpu.CompilerParams(
            dimension_semantics=dims,
            vmem_limit_bytes=int(budget)),
        cost_estimate=cost,
    )(x2, w1t, b1_2d, w2_p, b2_2d)

    return out2[:m, :c_out].reshape(*orig_shape[:-1], c_out)


def init_mlp_params(key, in_features, hidden_features, out_features, dtype=jnp.float32):
    # Mimic nn.Linear default init: U(-1/sqrt(fan_in), 1/sqrt(fan_in)).
    k1, k2, k3, k4 = jax.random.split(key, 4)
    lim1 = 1.0 / math.sqrt(in_features)
    lim2 = 1.0 / math.sqrt(hidden_features)
    w1 = jax.random.uniform(k1, (in_features, hidden_features), dtype, -lim1, lim1)
    b1 = jax.random.uniform(k2, (hidden_features,), dtype, -lim1, lim1)
    w2 = jax.random.uniform(k3, (hidden_features, out_features), dtype, -lim2, lim2)
    b2 = jax.random.uniform(k4, (out_features,), dtype, -lim2, lim2)
    return w1, b1, w2, b2


if __name__ == "__main__":
    # Small shapes consistent with the module: (batch, seq, in_features)
    batch, seq, in_features = 2, 64, 32
    hidden_features = 256
    out_features = 32

    key = jax.random.PRNGKey(0)
    kx, kp = jax.random.split(key)
    x = jax.random.normal(kx, (batch, seq, in_features), dtype=jnp.float32)
    w1, b1, w2, b2 = init_mlp_params(kp, in_features, hidden_features, out_features)

    def ref_mlp(x, w1, b1, w2, b2):
        hi = jax.lax.Precision.HIGHEST
        h = jnp.dot(x, w1, precision=hi, preferred_element_type=jnp.float32) + b1
        h = _gelu_exact_f32(h)
        return jnp.dot(h, w2, precision=hi, preferred_element_type=jnp.float32) + b2

    ref = ref_mlp(x, w1, b1, w2, b2)

    # 1) auto-selected tiles (f32 -> Precision.HIGHEST path; single hidden slab)
    out = jax.block_until_ready(mlp_pallas(x, w1, b1, w2, b2))
    assert out.shape == (batch, seq, out_features)
    assert jnp.allclose(out, ref, atol=5e-4, rtol=5e-4)

    # 2) explicit M/H tiling (exercises the reduction-axis accumulator path)
    out_tiled = jax.block_until_ready(
        mlp_pallas(x, w1, b1, w2, b2, tile_m=64, tile_h=128))
    assert jnp.allclose(out_tiled, ref, atol=5e-4, rtol=5e-4)

    # 3) bf16 operands with f32 accumulation (native fast MXU path)
    xb = x.astype(jnp.bfloat16)
    w1b, b1b, w2b, b2b = (t.astype(jnp.bfloat16) for t in (w1, b1, w2, b2))
    out_bf16 = jax.block_until_ready(mlp_pallas(xb, w1b, b1b, w2b, b2b))
    assert out_bf16.shape == (batch, seq, out_features)
    assert bool(jnp.all(jnp.isfinite(out_bf16.astype(jnp.float32))))

    print("KERNEL_OK")
</pallas_src>

<mosaic_0001>
module attributes {stable_mosaic.version = 11 : i64} {
  func.func @kernel(%arg0: i32, %arg1: memref<128x32xf32, #tpu.memory_space<vmem>>, %arg2: memref<256x32xf32, #tpu.memory_space<vmem>>, %arg3: memref<1x256xf32, #tpu.memory_space<vmem>>, %arg4: memref<256x128xf32, #tpu.memory_space<vmem>>, %arg5: memref<1x128xf32, #tpu.memory_space<vmem>>, %arg6: memref<128x128xf32, #tpu.memory_space<vmem>>) attributes {dimension_semantics = [#tpu.dimension_semantics<parallel>], iteration_bounds = array<i64: 1>, scalar_prefetch = 0 : i64, scratch_operands = 0 : i64, tpu.core_type = #tpu.core_type<tc>, window_params = [{transform_indices = @transform_0, window_bounds = array<i64: 128, 32>}, {pipeline_mode = #tpu.pipeline_mode<synchronous>, transform_indices = @transform_1, window_bounds = array<i64: 256, 32>}, {pipeline_mode = #tpu.pipeline_mode<synchronous>, transform_indices = @transform_2, window_bounds = array<i64: 1, 256>}, {pipeline_mode = #tpu.pipeline_mode<synchronous>, transform_indices = @transform_3, window_bounds = array<i64: 256, 128>}, {pipeline_mode = #tpu.pipeline_mode<synchronous>, transform_indices = @transform_4, window_bounds = array<i64: 1, 128>}, {transform_indices = @transform_5, window_bounds = array<i64: 128, 128>}]} {
    %c0 = arith.constant 0 : index
    %c0_0 = arith.constant 0 : index
    %0 = vector.load %arg1[%c0, %c0_0] : memref<128x32xf32, #tpu.memory_space<vmem>>, vector<128x32xf32>
    %c0_1 = arith.constant 0 : index
    %c0_2 = arith.constant 0 : index
    %1 = vector.load %arg2[%c0_1, %c0_2] : memref<256x32xf32, #tpu.memory_space<vmem>>, vector<256x32xf32>
    %cst = arith.constant dense<0.000000e+00> : vector<128x256xf32>
    %2 = tpu.matmul %0, %1, %cst {dimension_numbers = #tpu.dot_dimension_numbers<[1], [1], [0], [0], [0, 0, 1, 0], [], []>, precision = #tpu.contract_precision<fp32>} : vector<128x32xf32>, vector<256x32xf32>, vector<128x256xf32> -> vector<128x256xf32>
    %c0_3 = arith.constant 0 : index
    %c0_4 = arith.constant 0 : index
    %3 = vector.load %arg3[%c0_3, %c0_4] : memref<1x256xf32, #tpu.memory_space<vmem>>, vector<1x256xf32>
    %4 = vector.broadcast %3 : vector<1x256xf32> to vector<128x256xf32>
    %5 = arith.addf %2, %4 : vector<128x256xf32>
    %cst_5 = arith.constant 5.000000e-01 : f32
    %6 = vector.broadcast %cst_5 : f32 to vector<128x256xf32>
    %7 = arith.mulf %6, %5 : vector<128x256xf32>
    %cst_6 = arith.constant 0.707106769 : f32
    %8 = vector.broadcast %cst_6 : f32 to vector<128x256xf32>
    %9 = arith.mulf %5, %8 : vector<128x256xf32>
    %10 = math.erf %9 : vector<128x256xf32>
    %cst_7 = arith.constant 1.000000e+00 : f32
    %11 = vector.broadcast %cst_7 : f32 to vector<128x256xf32>
    %12 = arith.addf %11, %10 : vector<128x256xf32>
    %13 = arith.mulf %7, %12 : vector<128x256xf32>
    %c0_8 = arith.constant 0 : index
    %c0_9 = arith.constant 0 : index
    %14 = vector.load %arg4[%c0_8, %c0_9] : memref<256x128xf32, #tpu.memory_space<vmem>>, vector<256x128xf32>
    %cst_10 = arith.constant dense<0.000000e+00> : vector<128x128xf32>
    %15 = tpu.matmul %13, %14, %cst_10 {dimension_numbers = #tpu.dot_dimension_numbers<[1], [0], [0], [1], [0, 0, 1, 1], [], []>, precision = #tpu.contract_precision<fp32>} : vector<128x256xf32>, vector<256x128xf32>, vector<128x128xf32> -> vector<128x128xf32>
    %c0_11 = arith.constant 0 : index
    %c0_12 = arith.constant 0 : index
    %16 = vector.load %arg5[%c0_11, %c0_12] : memref<1x128xf32, #tpu.memory_space<vmem>>, vector<1x128xf32>
    %17 = vector.broadcast %16 : vector<1x128xf32> to vector<128x128xf32>
    %18 = arith.addf %15, %17 : vector<128x128xf32>
    %c0_13 = arith.constant 0 : index
    %c0_14 = arith.constant 0 : index
    %19 = vector.load %arg6[%c0_13, %c0_14] : memref<128x128xf32, #tpu.memory_space<vmem>>, vector<128x128xf32>
    tpu.vector_store %arg6[%c0_13, %c0_14], %18 {strides = array<i32>} : memref<128x128xf32, #tpu.memory_space<vmem>>, vector<128x128xf32>,
    return
  }
  func.func @transform_0(%arg0: i32) -> (i32, i32) {
    %c0_i32 = arith.constant 0 : i32
    %c0_i32_0 = arith.constant 0 : i32
    return %arg0, %c0_i32 : i32, i32
  }
  func.func @transform_1(%arg0: i32) -> (i32, i32) {
    %c0_i32 = arith.constant 0 : i32
    %c0_i32_0 = arith.constant 0 : i32
    %c0_i32_1 = arith.constant 0 : i32
    return %c0_i32, %c0_i32_0 : i32, i32
  }
  func.func @transform_2(%arg0: i32) -> (i32, i32) {
    %c0_i32 = arith.constant 0 : i32
    %c0_i32_0 = arith.constant 0 : i32
    %c0_i32_1 = arith.constant 0 : i32
    return %c0_i32, %c0_i32_0 : i32, i32
  }
  func.func @transform_3(%arg0: i32) -> (i32, i32) {
    %c0_i32 = arith.constant 0 : i32
    %c0_i32_0 = arith.constant 0 : i32
    %c0_i32_1 = arith.constant 0 : i32
    return %c0_i32, %c0_i32_0 : i32, i32
  }
  func.func @transform_4(%arg0: i32) -> (i32, i32) {
    %c0_i32 = arith.constant 0 : i32
    %c0_i32_0 = arith.constant 0 : i32
    %c0_i32_1 = arith.constant 0 : i32
    return %c0_i32, %c0_i32_0 : i32, i32
  }
  func.func @transform_5(%arg0: i32) -> (i32, i32) {
    %c0_i32 = arith.constant 0 : i32
    %c0_i32_0 = arith.constant 0 : i32
    return %arg0, %c0_i32 : i32, i32
  }
}

</mosaic_0001>

<bundles_post_ra>
// kernel: tpu_custom_call.1
= control target key start
LH: loop header
LB: loop body
LE: loop exit
PB: predicated region body
PF: predicated region fallthrough
CT: control target
= control target key end

     0   :  { %vm81_vm0 = vcmask 261120   ;;  %s7560_s0 = inlined_call_operand.vmem [shape: f32[128,32], index: 0, kind: input, shape index: {}]   ;;  %s7561_s1 = inlined_call_operand.vmem [shape: f32[256,32], index: 1, kind: input, shape index: {}]   ;;  %s7562_s2 = inlined_call_operand.vmem [shape: f32[1,256], index: 2, kind: input, shape index: {}]   ;;  %s7563_s3 = inlined_call_operand.vmem [shape: f32[256,128], index: 3, kind: input, shape index: {}]   ;;  %s7564_s4 = inlined_call_operand.vmem [shape: f32[1,128], index: 4, kind: input, shape index: {}]   ;;  %s7565_s5 = inlined_call_operand.hbm [shape: f32[128,128], index: 5, kind: output, shape index: {}]  }
   0x1   :  { %v68_v0 = vld [vmem:[%s7561_s1 + $0xf8] sm:$0xff]  ;;  %v67_v2 = vld [vmem:[%s7561_s1 + $0xf0] sm:$0xff]  ;;  %v66_v7 = vld [vmem:[%s7561_s1 + $0xe8] sm:$0xff] }
   0x2   :  { %v52_v1 = vld [vmem:[%s7561_s1 + $0x78] sm:$0xff]  ;;  %v224_v3 = vsel %vm81_vm0, %v68_v0, 0  ;;  %v221_v5 = vsel %vm81_vm0, %v67_v2, 0  ;;  %v51_v6 = vld [vmem:[%s7561_s1 + $0x70] sm:$0xff]  ;;  %v50_v8 = vld [vmem:[%s7561_s1 + $0x68] sm:$0xff]  ;;  %v218_v16 = vsel %vm81_vm0, %v66_v7, 0 }
   0x3   :  { %v176_v4 = vsel %vm81_vm0, %v52_v1, 0  ;;  %v4757_v9 = vand.u32 4294901760, %v224_v3  ;;  %v4761_v11 = vand.u32 4294901760, %v221_v5  ;;  %v173_v12 = vsel %vm81_vm0, %v51_v6, 0  ;;  %v65_v13 = vld [vmem:[%s7561_s1 + $0xe0] sm:$0xff]  ;;  %v64_v19 = vld [vmem:[%s7561_s1 + $0xd8] sm:$0xff] }
   0x4   :  { %v4759_v10 = vand.u32 4294901760, %v176_v4  ;;  %v49_v14 = vld [vmem:[%s7561_s1 + $0x60] sm:$0xff]  ;;  %v4770_v15 = vand.u32 4294901760, %v173_v12  ;;  %v170_v17 = vsel %vm81_vm0, %v50_v8, 0  ;;  %v215_v18 = vsel %vm81_vm0, %v65_v13, 0  ;;  %v48_v27 = vld [vmem:[%s7561_s1 + $0x58] sm:$0xff] }
   0x5   :  { %3750 = vmatprep.subr.mxu0 %v4757_v9  ;;  %v4779_v20 = vand.u32 4294901760, %v218_v16  ;;  %v4782_v21 = vsub.f32 %v224_v3, %v4757_v9  ;;  %v4784_v22 = vand.u32 4294901760, %v170_v17  ;;  %v4791_v24 = vsub.f32 %v221_v5, %v4761_v11  ;;  %v63_v36 = vld [vmem:[%s7561_s1 + $0xd0] sm:$0xff]  ;;  %v62_v50 = vld [vmem:[%s7561_s1 + $0xc8] sm:$0xff]  ;;  %v61_v59 = vld [vmem:[%s7561_s1 + $0xc0] sm:$0xff] }
   0x6   :  { %v4787_v23 = vsub.f32 %v176_v4, %v4759_v10  ;;  %3751 = vmatpush3.xpose.msra.mxu0 %v4759_v10  ;;  %v167_v25 = vsel %vm81_vm0, %v49_v14, 0  ;;  %v4795_v26 = vsub.f32 %v173_v12, %v4770_v15  ;;  %v4803_v30 = vand.u32 4294901760, %v215_v18  ;;  %v47_v45 = vld [vmem:[%s7561_s1 + $0x50] sm:$0xff]  ;;  %v46_v58 = vld [vmem:[%s7561_s1 + $0x48] sm:$0xff]  ;;  %v45_v8 = vld [vmem:[%s7561_s1 + $0x40] sm:$0xff] }
   0x7   :  { %3752 = vmatprep.subr.mxu0 %v4761_v11  ;;  %v7582_v28 = vand.u32 4294901760, %v4782_v21  ;;  %v212_v31 = vsel %vm81_vm0, %v64_v19, 0  ;;  %v7579_v32 = vand.u32 4294901760, %v4791_v24  ;;  %v4807_v33 = vand.u32 4294901760, %v167_v25 }
   0x8   :  { %v7581_v29 = vand.u32 4294901760, %v4787_v23  ;;  %v7578_v34 = vand.u32 4294901760, %v4795_v26  ;;  %v4811_v35 = vsub.f32 %v218_v16, %v4779_v20  ;;  %v164_v39 = vsel %vm81_vm0, %v48_v27, 0 }
   0x9   :  { %v615_v37 = vsub.f32 %v4782_v21, %v7582_v28  ;;  %v4824_v40 = vsub.f32 %v170_v17, %v4784_v22  ;;  %v622_v41 = vsub.f32 %v4791_v24, %v7579_v32  ;;  %v4833_v43 = vand.u32 4294901760, %v212_v31  ;;  %v60_v17 = vld [vmem:[%s7561_s1 + $0xb8] sm:$0xff] }
   0xa   :  { %v503_v38 = vsub.f32 %v4787_v23, %v7581_v29  ;;  %3753 = vmatpush3.xpose.msra.mxu0 %v4770_v15  ;;  %v510_v42 = vsub.f32 %v4795_v26, %v7578_v34  ;;  %v7576_v44 = vand.u32 4294901760, %v4811_v35  ;;  %v209_v49 = vsel %vm81_vm0, %v63_v36, 0 }
   0xb   :  { %7943 = vst [vmem:[#allocation5_spill] sm:$0xff] %v4833_v43  ;;  %3754 = vmatprep.subr.mxu0 %v4779_v20  ;;  %v616_v46 = vand.u32 4294901760, %v615_v37  ;;  %v7575_v48 = vand.u32 4294901760, %v4824_v40  ;;  %v623_v51 = vand.u32 4294901760, %v622_v41  ;;  %v4848_v53 = vand.u32 4294901760, %v164_v39 }
   0xc   :  { %v504_v47 = vand.u32 4294901760, %v503_v38  ;;  %v629_v52 = vsub.f32 %v4811_v35, %v7576_v44  ;;  %v4854_v55 = vsub.f32 %v215_v18, %v4803_v30  ;;  %v161_v56 = vsel %vm81_vm0, %v47_v45, 0 }
   0xd   :  { %3814 = vmatprep.subr.mxu1 %v616_v46  ;;  %v517_v54 = vsub.f32 %v4824_v40, %v7575_v48  ;;  %v4858_v57 = vsub.f32 %v167_v25, %v4807_v33  ;;  %v511_v60 = vand.u32 4294901760, %v510_v42  ;;  %v4867_v61 = vand.u32 4294901760, %v209_v49 }
   0xe   :  { %3755 = vmatpush3.xpose.msra.mxu0 %v4784_v22  ;;  %3815 = vmatpush3.xpose.msra.mxu1 %v504_v47  ;;  %v206_v62 = vsel %vm81_vm0, %v62_v50, 0  ;;  %v4871_v63 = vsub.f32 %v212_v31, %v4833_v43  ;;  %v630_v0 = vand.u32 4294901760, %v629_v52  ;;  %v7574_v1 = vand.u32 4294901760, %v4854_v55 }
   0xf   :  { %3756 = vmatprep.subr.mxu0 %v4803_v30  ;;  %3816 = vmatprep.subr.mxu1 %v623_v51  ;;  %v4875_v2 = vand.u32 4294901760, %v161_v56  ;;  %v7571_v3 = vand.u32 4294901760, %v4858_v57  ;;  %v158_v5 = vsel %vm81_vm0, %v46_v58, 0  ;;  %v4881_v6 = vsub.f32 %v164_v39, %v4848_v53 }
  0x10   :  { %v7570_v4 = vand.u32 4294901760, %v4871_v63  ;;  %v203_v7 = vsel %vm81_vm0, %v61_v59, 0  ;;  %v518_v12 = vand.u32 4294901760, %v517_v54  ;;  %v636_v13 = vsub.f32 %v4854_v55, %v7574_v1 }
  0x11   :  { %7944 = vst [vmem:[#allocation6_spill] sm:$0xff] %v4875_v2  ;;  %v524_v14 = vsub.f32 %v4858_v57, %v7571_v3  ;;  %v4893_v16 = vand.u32 4294901760, %v206_v62  ;;  %v4902_v19 = vand.u32 4294901760, %v158_v5  ;;  %v7569_v25 = vand.u32 4294901760, %v4881_v6 }
  0x12   :  { %3757 = vmatpush3.xpose.msra.mxu0 %v4807_v33  ;;  %3817 = vmatpush3.xpose.msra.mxu1 %v511_v60  ;;  %v643_v18 = vsub.f32 %v4871_v63, %v7570_v4  ;;  %v4906_v27 = vsub.f32 %v209_v49, %v4867_v61 }
  0x13   :  { %7945 = vst [vmem:[#allocation7_spill] sm:$0xff] %v4893_v16  ;;  %7946 = vst [vmem:[#allocation8_spill] sm:$0xff] %v4902_v19 }
  0x14   :  { %10 = vsyncpa [#allocation3], 0  ;;  %3758 = vmatprep.subr.mxu0 %v4833_v43  ;;  %3818 = vmatprep.subr.mxu1 %v630_v0  ;;  %v637_v31 = vand.u32 4294901760, %v636_v13  ;;  %v4909_v36 = vand.u32 4294901760, %v203_v7  ;;  %v155_v37 = vsel %vm81_vm0, %v45_v8, 0  ;;  %v4913_v38 = vsub.f32 %v161_v56, %v4875_v2  ;;  %v44_v39 = vld [vmem:[%s7561_s1 + $0x38] sm:$0xff] }
  0x15   :  { %v7568_v41 = vand.u32 4294901760, %v4906_v27  ;;  %v200_v42 = vsel %vm81_vm0, %v60_v17, 0  ;;  %v525_v45 = vand.u32 4294901760, %v524_v14  ;;  %v531_v46 = vsub.f32 %v4881_v6, %v7569_v25  ;;  %v59_v50 = vld [vmem:[%s7561_s1 + $0xb0] sm:$0xff]  ;;  %v41_v3 = vld [vmem:[%s7561_s1 + $0x20] sm:$0xff] }
  0x16   :  { %7947 = vst [vmem:[#allocation9_spill] sm:$0xff] %v4909_v36  ;;  %v7567_v47 = vand.u32 4294901760, %v4913_v38  ;;  %v4925_v49 = vsub.f32 %v206_v62, %v4893_v16  ;;  %3759 = vmatpush3.xpose.msra.mxu0 %v4848_v53  ;;  %3819 = vmatpush3.xpose.msra.mxu1 %v518_v12  ;;  %v644_v51 = vand.u32 4294901760, %v643_v18  ;;  %v4931_v52 = vand.u32 4294901760, %v155_v37  ;;  %v43_v58 = vld [vmem:[%s7561_s1 + $0x30] sm:$0xff] }
  0x17   :  { %v152_v54 = vsel %vm81_vm0, %v44_v39, 0  ;;  %v4935_v56 = vsub.f32 %v158_v5, %v4902_v19  ;;  %3760 = vmatprep.subr.mxu0 %v4867_v61  ;;  %3820 = vmatprep.subr.mxu1 %v637_v31  ;;  %v650_v59 = vsub.f32 %v4906_v27, %v7568_v41  ;;  %v4944_v60 = vand.u32 4294901760, %v200_v42  ;;  %v58_v5 = vld [vmem:[%s7561_s1 + $0xa8] sm:$0xff] }
  0x18   :  { %7948 = vst [vmem:[#allocation10_spill] sm:$0xff] %v4931_v52  ;;  %v7566_v62 = vand.u32 4294901760, %v4925_v49  ;;  %v4948_v0 = vsub.f32 %v203_v7, %v4909_v36  ;;  %v197_v8 = vsel %vm81_vm0, %v59_v50, 0  ;;  %v532_v12 = vand.u32 4294901760, %v531_v46  ;;  %v42_v46 = vld [vmem:[%s7561_s1 + $0x28] sm:$0xff] }
  0x19   :  { %7949 = vst [vmem:[#allocation11_spill] sm:$0xff] %v4944_v60  ;;  %v538_v13 = vsub.f32 %v4913_v38, %v7567_v47  ;;  %v4957_v14 = vand.u32 4294901760, %v152_v54  ;;  %v149_v17 = vsel %vm81_vm0, %v43_v58, 0  ;;  %v7572_v18 = vand.u32 4294901760, %v4935_v56 }
  0x1a   :  { %3761 = vmatpush3.xpose.msra.mxu0 %v4875_v2  ;;  %3821 = vmatpush3.xpose.msra.mxu1 %v525_v45  ;;  %v657_v7 = vsub.f32 %v4925_v49, %v7566_v62  ;;  %v4966_v31 = vsub.f32 %v155_v37, %v4931_v52  ;;  %v194_v39 = vsel %vm81_vm0, %v58_v5, 0  ;;  %v651_v50 = vand.u32 4294901760, %v650_v59  ;;  %v57_v37 = vld [vmem:[%s7561_s1 + $0xa0] sm:$0xff] }
  0x1b   :  { %7950 = vst [vmem:[#allocation12_spill] sm:$0xff] %v4957_v14  ;;  %3762 = vmatprep.subr.mxu0 %v4893_v16  ;;  %3822 = vmatprep.subr.mxu1 %v644_v51  ;;  %v4973_v45 = vand.u32 4294901760, %v197_v8  ;;  %v7573_v58 = vand.u32 4294901760, %v4948_v0  ;;  %v4977_v62 = vsub.f32 %v200_v42, %v4944_v60  ;;  %v4979_v47 = vand.u32 4294901760, %v149_v17 }
  0x1c   :  { %v7577_v5 = vand.u32 4294901760, %v4966_v31  ;;  %v4985_v41 = vand.u32 4294901760, %v194_v39  ;;  %v146_v51 = vsel %vm81_vm0, %v42_v46, 0  ;;  %v539_v59 = vand.u32 4294901760, %v538_v13 }
  0x1d   :  { %7951 = vst [vmem:[#allocation13_spill] sm:$0xff] %v4973_v45  ;;  %7952 = vst [vmem:[#allocation14_spill] sm:$0xff] %v4977_v62  ;;  %v658_v25 = vand.u32 4294901760, %v657_v7  ;;  %v545_v42 = vsub.f32 %v4935_v56, %v7572_v18  ;;  %v4993_v4 = vsub.f32 %v152_v54, %v4957_v14  ;;  %v7580_v13 = vand.u32 4294901760, %v4977_v62 }
  0x1e   :  { %7953 = vst [vmem:[#allocation15_spill] sm:$0xff] %v4979_v47  ;;  %7954 = vst [vmem:[#allocation16_spill] sm:$0xff] %v4985_v41  ;;  %3763 = vmatpush3.xpose.msra.mxu0 %v4902_v19  ;;  %3823 = vmatpush3.xpose.msra.mxu1 %v532_v12  ;;  %v664_v12 = vsub.f32 %v4948_v0, %v7573_v58  ;;  %v191_v7 = vsel %vm81_vm0, %v57_v37, 0  ;;  %v5005_v46 = vsub.f32 %v197_v8, %v4973_v45 }
  0x1f   :  { %7955 = vst [vmem:[#allocation17_spill] sm:$0xff] %v4993_v4  ;;  %3764 = vmatprep.subr.mxu0 %v4909_v36  ;;  %3824 = vmatprep.subr.mxu1 %v651_v50  ;;  %v5007_v54 = vand.u32 4294901760, %v146_v51  ;;  %v5010_v18 = vsub.f32 %v149_v17, %v4979_v47  ;;  %v56_v50 = vld [vmem:[%s7561_s1 + $0x98] sm:$0xff]  ;;  %v552_v58 = vsub.f32 %v4966_v31, %v7577_v5  ;;  %v143_v1 = vsel %vm81_vm0, %v41_v3, 0 }
  0x20   :  { %7956 = vst [vmem:[#allocation18_spill] sm:$0xff] %v5005_v46  ;;  %v5020_v37 = vsub.f32 %v194_v39, %v4985_v41  ;;  %v546_v8 = vand.u32 4294901760, %v545_v42  ;;  %v7583_v17 = vand.u32 4294901760, %v4993_v4  ;;  %v5024_v48 = vand.u32 4294901760, %v191_v7 }
  0x21   :  { %7957 = vst [vmem:[#allocation19_spill] sm:$0xff] %v5007_v54  ;;  %7958 = vst [vmem:[#allocation20_spill] sm:$0xff] %v5010_v18  ;;  %v665_v44 = vand.u32 4294901760, %v664_v12  ;;  %v671_v5 = vsub.f32 %v4977_v62, %v7580_v13  ;;  %v7586_v3 = vand.u32 4294901760, %v5005_v46  ;;  %v188_v39 = vsel %vm81_vm0, %v56_v50, 0  ;;  %v55_v13 = vld [vmem:[%s7561_s1 + $0x90] sm:$0xff] }
  0x22   :  { %7959 = vst [vmem:[#allocation21_spill] sm:$0xff] %v5020_v37  ;;  %3765 = vmatpush3.xpose.msra.mxu0 %v4931_v52  ;;  %3825 = vmatpush3.xpose.msra.mxu1 %v539_v59  ;;  %7960 = vst [vmem:[#allocation22_spill] sm:$0xff] %v5024_v48  ;;  %v40_v59 = vld [vmem:[%s7561_s1 + $0x18] sm:$0xff]  ;;  %v5035_v42 = vand.u32 4294901760, %v143_v1  ;;  %v7589_v34 = vand.u32 4294901760, %v5010_v18  ;;  %v5039_v32 = vsub.f32 %v146_v51, %v5007_v54  ;;  %v5049_v29 = vand.u32 4294901760, %v188_v39 }
  0x23   :  { %3766 = vmatprep.subr.mxu0 %v4944_v60  ;;  %3826 = vmatprep.subr.mxu1 %v658_v25  ;;  %v553_v25 = vand.u32 4294901760, %v552_v58  ;;  %v559_v50 = vsub.f32 %v4993_v4, %v7583_v17  ;;  %v140_v28 = vsel %vm81_vm0, %v40_v59, 0  ;;  %v5053_v51 = vsub.f32 %v191_v7, %v5024_v48 }
  0x24   :  { %7961 = vst [vmem:[#allocation23_spill] sm:$0xff] %v5035_v42  ;;  %7962 = vst [vmem:[#allocation24_spill] sm:$0xff] %v5039_v32  ;;  %v672_v58 = vand.u32 4294901760, %v671_v5  ;;  %v678_v12 = vsub.f32 %v5005_v46, %v7586_v3  ;;  %v566_v17 = vsub.f32 %v5010_v18, %v7589_v34  ;;  %v185_v7 = vsel %vm81_vm0, %v55_v13, 0  ;;  %v21_v34 = vld [vmem:[%s7560_s0] sm:$0xff] }
  0x25   :  { %7963 = vst [vmem:[#allocation25_spill] sm:$0xff] %v5049_v29  ;;  %7964 = vst [vmem:[#allocation26_spill] sm:$0xff] %v5053_v51  ;;  %v7966_v5 = vand.u32 4294901760, %v5020_v37  ;;  %v560_v13 = vand.u32 4294901760, %v559_v50  ;;  %v5085_v60 = vsub.f32 %v188_v39, %v5049_v29 }
  0x26   :  { %3767 = vmatpush3.xpose.msra.mxu0 %v4957_v14  ;;  %3827 = vmatpush3.xpose.msra.mxu1 %v546_v8  ;;  %v39_v8 = vld [vmem:[%s7561_s1 + $0x10] sm:$0xff]  ;;  %v5076_v14 = vand.u32 4294901760, %v140_v28  ;;  %v567_v50 = vand.u32 4294901760, %v566_v17 }
  0x27   :  { %3768 = vmatprep.subr.mxu0 %v4973_v45  ;;  %3828 = vmatprep.subr.mxu1 %v665_v44  ;;  %v5068_v45 = vsub.f32 %v143_v1, %v5035_v42  ;;  %v54_v44 = vld [vmem:[%s7561_s1 + $0x88] sm:$0xff]  ;;  %v685_v3 = vsub.f32 %v5020_v37, %v7966_v5  ;;  %v137_v59 = vsel %vm81_vm0, %v39_v8, 0  ;;  %v679_v5 = vand.u32 4294901760, %v678_v12 }
  0x28   :  { %v5088_v37 = vand.u32 4294901760, %v185_v7  ;;  %v182_v52 = vsel %vm81_vm0, %v54_v44, 0  ;;  %v7968_v1 = vand.u32 4294901760, %v5039_v32  ;;  %v83_v12 = vsel %vm81_vm0, %v21_v34, 0  ;;  %v22_v44 = vld [vmem:[%s7560_s0 + $0x8] sm:$0xff] }
  0x29   :  { %7965 = vst [vmem:[#allocation27_spill] sm:$0xff] %v5068_v45  ;;  %v5108_v17 = vsub.f32 %v140_v28, %v5076_v14  ;;  %v5110_v18 = vand.u32 4294901760, %v83_v12  ;;  %v5116_v34 = vand.u32 4294901760, %v182_v52 }
  0x2a   :  { %3769 = vmatpush3.xpose.msra.mxu0 %v4979_v47  ;;  %3829 = vmatpush3.xpose.msra.mxu1 %v553_v25  ;;  %7967 = vst [vmem:[#allocation28_spill] sm:$0xff] %v5088_v37  ;;  %v38_v25 = vld [vmem:[%s7561_s1 + $0x8] sm:$0xff]  ;;  %v573_v8 = vsub.f32 %v5039_v32, %v7968_v1  ;;  %v5105_v47 = vand.u32 4294901760, %v137_v59  ;;  %v7971_v1 = vand.u32 4294901760, %v5053_v51  ;;  %v5123_v36 = vsub.f32 %v185_v7, %v5088_v37 }
  0x2b   :  { %3770 = vmatprep.subr.mxu0 %v4985_v41  ;;  %3830 = vmatprep.subr.mxu1 %v672_v58  ;;  %v53_v58 = vld [vmem:[%s7561_s1 + $0x80] sm:$0xff]  ;;  %v686_v41 = vand.u32 4294901760, %v685_v3  ;;  %7970 = vst [vmem:[#allocation30_spill] sm:$0xff] %v5110_v18  ;;  %7972 = vst [vmem:[#allocation31_spill] sm:$0xff] %v5116_v34  ;;  %v134_v3 = vsel %vm81_vm0, %v38_v25, 0  ;;  %v7980_v19 = vand.u32 4294901760, %v5108_v17 }
  0x2c   :  { %7969 = vst [vmem:[#allocation29_spill] sm:$0xff] %v5105_v47  ;;  %v692_v39 = vsub.f32 %v5053_v51, %v7971_v1  ;;  %v179_v28 = vsel %vm81_vm0, %v53_v58, 0  ;;  %v574_v1 = vand.u32 4294901760, %v573_v8  ;;  %v7974_v51 = vand.u32 4294901760, %v5068_v45  ;;  %v37_v25 = vld [vmem:[%s7561_s1] sm:$0xff]  ;;  %3846 = vmatprep.mubr.f32.mxu1 %v5110_v18 }
  0x2d   :  { %v5140_v58 = vsub.f32 %v137_v59, %v5105_v47  ;;  %v7979_v59 = vand.u32 4294901760, %v5085_v60  ;;  %v7628_v46 = vand.u32 4294901760, %v5123_v36  ;;  %v587_v4 = vsub.f32 %v5108_v17, %v7980_v19 }
  0x2e   :  { %3771 = vmatpush3.xpose.msra.mxu0 %v5007_v54  ;;  %3831 = vmatpush3.xpose.msra.mxu1 %v560_v13  ;;  %v5126_v13 = vsub.f32 %v83_v12, %v5110_v18  ;;  %v86_v54 = vsel %vm81_vm0, %v22_v44, 0  ;;  %v580_v32 = vsub.f32 %v5068_v45, %v7974_v51  ;;  %v23_v51 = vld [vmem:[%s7560_s0 + $0x10] sm:$0xff]  ;;  %v693_v8 = vand.u32 4294901760, %v692_v39 }
  0x2f   :  { %3772 = vmatprep.subr.mxu0 %v5024_v48  ;;  %3832 = vmatprep.subr.mxu1 %v679_v5  ;;  %v5136_v5 = vand.u32 4294901760, %v134_v3  ;;  %v5149_v44 = vand.u32 4294901760, %v179_v28  ;;  %v5152_v48 = vsub.f32 %v182_v52, %v5116_v34  ;;  %v5154_v7 = vand.u32 4294901760, %v86_v54 }
  0x30   :  { %7973 = vst [vmem:[#allocation32_spill] sm:$0xff] %v5126_v13  ;;  %v5143_v12 = vand.u32 4294901760, %v5126_v13  ;;  %v699_v45 = vsub.f32 %v5085_v60, %v7979_v59  ;;  %v581_v39 = vand.u32 4294901760, %v580_v32  ;;  %v89_v52 = vsel %vm81_vm0, %v23_v51, 0 }
  0x31   :  { %7975 = vst [vmem:[#allocation33_spill] sm:$0xff] %v5136_v5  ;;  %7977 = vst [vmem:[#allocation35_spill] sm:$0xff] %v5149_v44  ;;  %v5170_v16 = vsub.f32 %v134_v3, %v5136_v5  ;;  %v5180_v59 = vsub.f32 %v86_v54, %v5154_v7  ;;  %v5183_v19 = vsub.f32 %v179_v28, %v5149_v44  ;;  %v588_v51 = vand.u32 4294901760, %v587_v4 }
  0x32   :  { %7976 = vst [vmem:[#allocation34_spill] sm:$0xff] %v5143_v12  ;;  %3773 = vmatpush3.xpose.msra.mxu0 %v5035_v42  ;;  %3833 = vmatpush3.xpose.msra.mxu1 %v567_v50  ;;  %7978 = vst [vmem:[#allocation36_spill] sm:$0xff] %v5154_v7  ;;  %v131_v42 = vsel %vm81_vm0, %v37_v25, 0  ;;  %v326_v50 = vsub.f32 %v5126_v13, %v5143_v12  ;;  %v24_v25 = vld [vmem:[%s7560_s0 + $0x18] sm:$0xff]  ;;  %v700_v3 = vand.u32 4294901760, %v699_v45  ;;  %v7983_v54 = vand.u32 4294901760, %v5140_v58 }
  0x33   :  { %3774 = vmatprep.subr.mxu0 %v5049_v29  ;;  %3834 = vmatprep.subr.mxu1 %v686_v41  ;;  %v5176_v32 = vand.u32 4294901760, %v131_v42  ;;  %7981 = vst [vmem:[#allocation37_spill] sm:$0xff] %v5180_v59  ;;  %v5189_v41 = vand.u32 4294901760, %v89_v52  ;;  %v25_v45 = vld [vmem:[%s7560_s0 + $0x20] sm:$0xff]  ;;  %v7988_v4 = vand.u32 4294901760, %v5170_v16 }
  0x34   :  { %v327_v29 = vand.u32 4294901760, %v326_v50  ;;  %v706_v50 = vsub.f32 %v5123_v36, %v7628_v46  ;;  %v594_v12 = vsub.f32 %v5140_v58, %v7983_v54 }
  0x35   :  { %7982 = vst [vmem:[#allocation38_spill] sm:$0xff] %v5189_v41  ;;  %v5208_v54 = vsub.f32 %v131_v42, %v5176_v32  ;;  %v5212_v13 = vsub.f32 %v89_v52, %v5189_v41  ;;  %v601_v42 = vsub.f32 %v5170_v16, %v7988_v4 }
  0x36   :  { %3775 = vmatpush3.xpose.msra.mxu0 %v5076_v14  ;;  %3835 = vmatpush3.xpose.msra.mxu1 %v574_v1  ;;  %v92_v1 = vsel %vm81_vm0, %v24_v25, 0  ;;  %v5204_v25 = vand.u32 4294901760, %v5180_v59  ;;  %v707_v28 = vand.u32 4294901760, %v706_v50  ;;  %v7989_v50 = vand.u32 4294901760, %v5183_v19 }
  0x37   :  { %3776 = vmatprep.subr.mxu0 %v5088_v37  ;;  %3836 = vmatprep.subr.mxu1 %v693_v8  ;;  %v7984_v8 = vand.u32 4294901760, %v5152_v48  ;;  %7986 = vst [vmem:[#allocation40_spill] sm:$0xff] %v5212_v13  ;;  %v595_v37 = vand.u32 4294901760, %v594_v12  ;;  %v5232_v12 = vand.u32 4294901760, %v5212_v13 }
  0x38   :  { %3782 = vmatprep.mubr.f32.mxu0 %v327_v29  ;;  %7985 = vst [vmem:[#allocation39_spill] sm:$0xff] %v5204_v25  ;;  %v337_v52 = vsub.f32 %v5180_v59, %v5204_v25  ;;  %v27_v25 = vld [vmem:[%s7560_s0 + $0x30] sm:$0xff] }
  0x39   :  { %v713_v46 = vsub.f32 %v5152_v48, %v7984_v8  ;;  %v26_v8 = vld [vmem:[%s7560_s0 + $0x28] sm:$0xff]  ;;  %7990 = vst [vmem:[#allocation42_spill] sm:$0xff] %v5232_v12 }
  0x3a   :  { %3777 = vmatpush3.xpose.msra.mxu0 %v5105_v47  ;;  %3837 = vmatpush3.xpose.msra.mxu1 %v581_v39  ;;  %v5214_v39 = vand.u32 4294901760, %v92_v1  ;;  %v95_v47 = vsel %vm81_vm0, %v25_v45, 0  ;;  %v720_v45 = vsub.f32 %v5183_v19, %v7989_v50  ;;  %v602_v50 = vand.u32 4294901760, %v601_v42  ;;  %v28_v42 = vld [vmem:[%s7560_s0 + $0x38] sm:$0xff] }
  0x3b   :  { %3778 = vmatprep.subr.mxu0 %v5116_v34  ;;  %3838 = vmatprep.subr.mxu1 %v700_v3  ;;  %v714_v3 = vand.u32 4294901760, %v713_v46  ;;  %v98_v46 = vsel %vm81_vm0, %v26_v8, 0  ;;  %v348_v8 = vsub.f32 %v5212_v13, %v5232_v12 }
  0x3c   :  { %7987 = vst [vmem:[#allocation41_spill] sm:$0xff] %v5214_v39  ;;  %v5235_v4 = vsub.f32 %v92_v1, %v5214_v39  ;;  %v721_v34 = vand.u32 4294901760, %v720_v45  ;;  %v5247_v59 = vand.u32 4294901760, %v98_v46  ;;  %v338_v1 = vand.u32 4294901760, %v337_v52 }
  0x3d   :  { %v101_v45 = vsel %vm81_vm0, %v27_v25, 0 }
  0x3e   :  { %3779 = vmatpush3.xpose.msra.mxu0 %v5136_v5  ;;  %3839 = vmatpush3.xpose.msra.mxu1 %v588_v51  ;;  %v5237_v51 = vand.u32 4294901760, %v95_v47  ;;  %7993 = vst [vmem:[#allocation44_spill] sm:$0xff] %v5247_v59  ;;  %v5253_v5 = vand.u32 4294901760, %v5235_v4  ;;  %v5264_v52 = vsub.f32 %v98_v46, %v5247_v59  ;;  %v5272_v25 = vand.u32 4294901760, %v101_v45 }
  0x3f   :  { %3780 = vmatprep.subr.mxu0 %v5149_v44  ;;  %3840 = vmatprep.subr.mxu1 %v707_v28  ;;  %v7992_v28 = vand.u32 4294901760, %v5208_v54 }
  0x40   :  { %7991 = vst [vmem:[#allocation43_spill] sm:$0xff] %v5237_v51  ;;  %v359_v12 = vsub.f32 %v5235_v4, %v5253_v5  ;;  %7995 = vst [vmem:[#allocation46_spill] sm:$0xff] %v5272_v25 }
  0x41   :  { %v608_v44 = vsub.f32 %v5208_v54, %v7992_v28  ;;  %v104_v28 = vsel %vm81_vm0, %v28_v42, 0  ;;  %v5289_v42 = vsub.f32 %v101_v45, %v5272_v25 }
  0x42   :  { %3781 = vmatpush3.xpose.msra.mxu0 %v5176_v32  ;;  %3841 = vmatpush3.xpose.msra.mxu1 %v595_v37  ;;  %v5256_v37 = vsub.f32 %v95_v47, %v5237_v51  ;;  %v349_v47 = vand.u32 4294901760, %v348_v8  ;;  %v360_v46 = vand.u32 4294901760, %v359_v12  ;;  %v5286_v8 = vand.u32 4294901760, %v5264_v52 }
  0x43   :  { %3842 = vmatprep.subr.mxu1 %v714_v3  ;;  %3878 = vmatprep.subr.mxu0 %v4782_v21  ;;  %v609_v3 = vand.u32 4294901760, %v608_v44  ;;  %7998 = vst [vmem:[#allocation49_spill] sm:$0xff] %v5289_v42 }
  0x44   :  { %v5270_v13 = vand.u32 4294901760, %v5256_v37  ;;  %7997 = vst [vmem:[#allocation48_spill] sm:$0xff] %v5286_v8 }
  0x45   :  { %3783 = vmatmul.mubr.f32.vlgmr.msra.gmra.mxu0 %v327_v29  ;;  %v29_v29 = vld [vmem:[%s7560_s0 + $0x40] sm:$0xff] }
  0x46   :  { %3843 = vmatpush3.xpose.msra.mxu1 %v602_v50  ;;  %3879 = vmatpush3.xpose.msra.mxu0 %v4787_v23  ;;  %7994 = vst [vmem:[#allocation45_spill] sm:$0xff] %v5270_v13  ;;  %v107_v44 = vsel %vm81_vm0, %v29_v29, 0  ;;  %v370_v50 = vsub.f32 %v5256_v37, %v5270_v13 }
  0x47   :  { %3784 = vmatprep.mubr.f32.mxu0 %v338_v1  ;;  %3844 = vmatprep.subr.mxu1 %v721_v34  ;;  %v5279_v34 = vand.u32 4294901760, %v104_v28  ;;  %v5298_v12 = vand.u32 4294901760, %v107_v44 }
  0x48   :  { %3880 = vmatprep.subr.mxu0 %v4791_v24  ;;  %v371_v45 = vand.u32 4294901760, %v370_v50  ;;  %v31_v50 = vld [vmem:[%s7560_s0 + $0x50] sm:$0xff] }
  0x49   :  { %3785 = vmatmul.mubr.f32.gmra.mxu0 %v338_v1  ;;  %7996 = vst [vmem:[#allocation47_spill] sm:$0xff] %v5279_v34  ;;  %v30_v1 = vld [vmem:[%s7560_s0 + $0x48] sm:$0xff]  ;;  %7999 = vst [vmem:[#allocation50_spill] sm:$0xff] %v5298_v12  ;;  %v5307_v29 = vsub.f32 %v104_v28, %v5279_v34  ;;  %v5319_v28 = vsub.f32 %v107_v44, %v5298_v12  ;;  %v113_v13 = vsel %vm81_vm0, %v31_v50, 0  ;;  %v32_v44 = vld [vmem:[%s7560_s0 + $0x58] sm:$0xff] }
  0x4a   :  { %3845 = vmatpush3.xpose.msra.mxu1 %v609_v3  ;;  %3881 = vmatpush3.xpose.msra.mxu0 %v4795_v26  ;;  %v381_v3 = vsub.f32 %v5264_v52, %v5286_v8 }
  0x4b   :  { %3786 = vmatprep.mubr.f32.mxu0 %v349_v47  ;;  %3882 = vmatprep.subr.mxu0 %v4811_v35  ;;  %8001 = vst [vmem:[#allocation52_spill] sm:$0xff] %v5307_v29  ;;  %8002 = vst [vmem:[#allocation53_spill] sm:$0xff] %v5319_v28 }
  0x4c   :  { %3942 = vmatprep.subr.mxu1 %v4757_v9  ;;  %v382_v8 = vand.u32 4294901760, %v381_v3  ;;  %v5339_v3 = vand.u32 4294901760, %v5319_v28 }
  0x4d   :  { %3787 = vmatmul.mubr.f32.gmra.mxu0 %v349_v47  ;;  %3847 = vmatmul.mubr.f32.vlgmr.msra.gmra.mxu1 %v5110_v18  ;;  %v5304_v47 = vand.u32 4294901760, %v5289_v42  ;;  %v110_v18 = vsel %vm81_vm0, %v30_v1, 0  ;;  %v5325_v1 = vand.u32 4294901760, %v5307_v29 }
  0x4e   :  { %3883 = vmatpush3.xpose.msra.mxu0 %v4824_v40  ;;  %3943 = vmatpush3.xpose.msra.mxu1 %v4759_v10  ;;  %8005 = vst [vmem:[#allocation56_spill] sm:$0xff] %v5339_v3 }
  0x4f   :  { %3788 = vmatprep.mubr.f32.mxu0 %v360_v46  ;;  %3848 = vmatprep.mubr.f32.mxu1 %v5154_v7  ;;  %8000 = vst [vmem:[#allocation51_spill] sm:$0xff] %v5304_v47  ;;  %8003 = vst [vmem:[#allocation54_spill] sm:$0xff] %v5325_v1 }
  0x50   :  { %3884 = vmatprep.subr.mxu0 %v4854_v55  ;;  %3944 = vmatprep.subr.mxu1 %v4761_v11 }
  0x51   :  { %3789 = vmatmul.mubr.f32.gmra.mxu0 %v360_v46  ;;  %3849 = vmatmul.mubr.f32.gmra.mxu1 %v5154_v7  ;;  %v392_v46 = vsub.f32 %v5289_v42, %v5304_v47  ;;  %v5327_v7 = vand.u32 4294901760, %v110_v18  ;;  %v116_v42 = vsel %vm81_vm0, %v32_v44, 0 }
  0x52   :  { %3885 = vmatpush3.xpose.msra.mxu0 %v4858_v57  ;;  %3945 = vmatpush3.xpose.msra.mxu1 %v4770_v15 }
  0x53   :  { %3790 = vmatprep.mubr.f32.mxu0 %v371_v45  ;;  %3850 = vmatprep.mubr.f32.mxu1 %v5189_v41  ;;  %8004 = vst [vmem:[#allocation55_spill] sm:$0xff] %v5327_v7  ;;  %v393_v47 = vand.u32 4294901760, %v392_v46  ;;  %v5345_v50 = vsub.f32 %v110_v18, %v5327_v7  ;;  %v33_v46 = vld [vmem:[%s7560_s0 + $0x60] sm:$0xff]  ;;  %v414_v18 = vsub.f32 %v5319_v28, %v5339_v3 }
  0x54   :  { %3886 = vmatprep.subr.mxu0 %v4871_v63  ;;  %3946 = vmatprep.subr.mxu1 %v4779_v20  ;;  %v119_v3 = vsel %vm81_vm0, %v33_v46, 0 }
  0x55   :  { %3791 = vmatmul.mubr.f32.gmra.mxu0 %v371_v45  ;;  %3851 = vmatmul.mubr.f32.gmra.mxu1 %v5189_v41  ;;  %v403_v45 = vsub.f32 %v5307_v29, %v5325_v1  ;;  %8006 = vst [vmem:[#allocation57_spill] sm:$0xff] %v5345_v50  ;;  %v5347_v41 = vand.u32 4294901760, %v113_v13  ;;  %v5362_v44 = vand.u32 4294901760, %v5345_v50  ;;  %v34_v29 = vld [vmem:[%s7560_s0 + $0x68] sm:$0xff]  ;;  %v5388_v46 = vand.u32 4294901760, %v119_v3 }
  0x56   :  { %3887 = vmatpush3.xpose.msra.mxu0 %v4881_v6  ;;  %3947 = vmatpush3.xpose.msra.mxu1 %v4784_v22 }
  0x57   :  { %3792 = vmatprep.mubr.f32.mxu0 %v382_v8  ;;  %3852 = vmatprep.mubr.f32.mxu1 %v5214_v39  ;;  %8007 = vst [vmem:[#allocation58_spill] sm:$0xff] %v5347_v41  ;;  %v404_v1 = vand.u32 4294901760, %v403_v45  ;;  %8008 = vst [vmem:[#allocation59_spill] sm:$0xff] %v5362_v44  ;;  %v122_v45 = vsel %vm81_vm0, %v34_v29, 0  ;;  %v425_v28 = vsub.f32 %v5345_v50, %v5362_v44 }
  0x58   :  { %3888 = vmatprep.subr.mxu0 %v4906_v27  ;;  %3948 = vmatprep.subr.mxu1 %v4803_v30  ;;  %8013 = vst [vmem:[#allocation64_spill] sm:$0xff] %v5388_v46  ;;  %v5398_v29 = vand.u32 4294901760, %v122_v45 }
  0x59   :  { %3793 = vmatmul.mubr.f32.gmra.mxu0 %v382_v8  ;;  %3853 = vmatmul.mubr.f32.gmra.mxu1 %v5214_v39  ;;  %v5365_v8 = vsub.f32 %v113_v13, %v5347_v41  ;;  %v5367_v39 = vand.u32 4294901760, %v116_v42  ;;  %v415_v13 = vand.u32 4294901760, %v414_v18  ;;  %v35_v18 = vld [vmem:[%s7560_s0 + $0x70] sm:$0xff] }
  0x5a   :  { %3889 = vmatpush3.xpose.msra.mxu0 %v4913_v38  ;;  %3949 = vmatpush3.xpose.msra.mxu1 %v4807_v33  ;;  %8014 = vst [vmem:[#allocation65_spill] sm:$0xff] %v5398_v29 }
  0x5b   :  { %3794 = vmatprep.mubr.f32.mxu0 %v393_v47  ;;  %3854 = vmatprep.mubr.f32.mxu1 %v5237_v51  ;;  %8009 = vst [vmem:[#allocation60_spill] sm:$0xff] %v5365_v8  ;;  %8010 = vst [vmem:[#allocation61_spill] sm:$0xff] %v5367_v39 }
  0x5c   :  { %3890 = vmatprep.subr.mxu0 %v4925_v49  ;;  %3950 = vmatprep.subr.mxu1 %v4833_v43  ;;  %v5383_v43 = vand.u32 4294901760, %v5365_v8 }
  0x5d   :  { %3795 = vmatmul.mubr.f32.gmra.mxu0 %v393_v47  ;;  %3855 = vmatmul.mubr.f32.gmra.mxu1 %v5237_v51  ;;  %v5386_v47 = vsub.f32 %v116_v42, %v5367_v39  ;;  %v125_v42 = vsel %vm81_vm0, %v35_v18, 0  ;;  %v426_v51 = vand.u32 4294901760, %v425_v28  ;;  %v8017_v18 = vld [vmem:[#allocation7_spill] sm:$0xff]  ;;  %v8018_v28 = vld [vmem:[#allocation17_spill] sm:$0xff] }
  0x5e   :  { %3891 = vmatpush3.xpose.msra.mxu0 %v4935_v56  ;;  %3951 = vmatpush3.xpose.msra.mxu1 %v4848_v53  ;;  %8011 = vst [vmem:[#allocation62_spill] sm:$0xff] %v5383_v43  ;;  %v436_v44 = vsub.f32 %v5365_v8, %v5383_v43  ;;  %v8019_v43 = vld [vmem:[#allocation8_spill] sm:$0xff]  ;;  %v5418_v8 = vand.u32 4294901760, %v125_v42 }
  0x5f   :  { %3796 = vmatprep.mubr.f32.mxu0 %v404_v1  ;;  %3856 = vmatprep.mubr.f32.mxu1 %v5247_v59  ;;  %8012 = vst [vmem:[#allocation63_spill] sm:$0xff] %v5386_v47  ;;  %v5405_v50 = vand.u32 4294901760, %v5386_v47 }
  0x60   :  { %3892 = vmatprep.subr.mxu0 %v4948_v0  ;;  %3952 = vmatprep.subr.mxu1 %v4867_v61 }
  0x61   :  { %3797 = vmatmul.mubr.f32.gmra.mxu0 %v404_v1  ;;  %3857 = vmatmul.mubr.f32.gmra.mxu1 %v5247_v59  ;;  %8015 = vst [vmem:[#allocation66_spill] sm:$0xff] %v5405_v50  ;;  %v5408_v1 = vsub.f32 %v119_v3, %v5388_v46  ;;  %v36_v59 = vld [vmem:[%s7560_s0 + $0x78] sm:$0xff] }
  0x62   :  { %3893 = vmatpush3.xpose.msra.mxu0 %v4966_v31  ;;  %3953 = vmatpush3.xpose.msra.mxu1 %v4875_v2  ;;  %v128_v3 = vsel %vm81_vm0, %v36_v59, 0  ;;  %v437_v2 = vand.u32 4294901760, %v436_v44  ;;  %v8024_v59 = vld [vmem:[#allocation20_spill] sm:$0xff] }
  0x63   :  { %3798 = vmatprep.mubr.f32.mxu0 %v415_v13  ;;  %3858 = vmatprep.mubr.f32.mxu1 %v5272_v25  ;;  %8016 = vst [vmem:[#allocation67_spill] sm:$0xff] %v5408_v1  ;;  %v5435_v44 = vand.u32 4294901760, %v128_v3 }
  0x64   :  { %3894 = vmatprep.subr.mxu0 %v4977_v62  ;;  %3954 = vmatprep.subr.mxu1 %v8017_v18  ;;  %v447_v62 = vsub.f32 %v5386_v47, %v5405_v50  ;;  %v5425_v18 = vand.u32 4294901760, %v5408_v1 }
  0x65   :  { %3799 = vmatmul.mubr.f32.gmra.mxu0 %v415_v13  ;;  %3859 = vmatmul.mubr.f32.gmra.mxu1 %v5272_v25  ;;  %v5428_v13 = vsub.f32 %v122_v45, %v5398_v29  ;;  %v8022_v25 = vld [vmem:[#allocation18_spill] sm:$0xff] }
  0x66   :  { %3895 = vmatpush3.xpose.msra.mxu0 %v8018_v28  ;;  %3955 = vmatpush3.xpose.msra.mxu1 %v8019_v43  ;;  %8020 = vst [vmem:[#allocation68_spill] sm:$0xff] %v5425_v18  ;;  %v8023_v43 = vld [vmem:[#allocation9_spill] sm:$0xff]  ;;  %v8025_v28 = vld [vmem:[#allocation10_spill] sm:$0xff]  ;;  %v448_v50 = vand.u32 4294901760, %v447_v62  ;;  %v458_v45 = vsub.f32 %v5408_v1, %v5425_v18  ;;  %v5458_v1 = vsub.f32 %v128_v3, %v5435_v44 }
  0x67   :  { %3800 = vmatprep.mubr.f32.mxu0 %v426_v51  ;;  %3860 = vmatprep.mubr.f32.mxu1 %v5279_v34  ;;  %8021 = vst [vmem:[#allocation69_spill] sm:$0xff] %v5428_v13  ;;  %v5441_v47 = vand.u32 4294901760, %v5428_v13 }
  0x68   :  { %3896 = vmatprep.subr.mxu0 %v8022_v25  ;;  %3956 = vmatprep.subr.mxu1 %v8023_v43  ;;  %v8030_v43 = vld [vmem:[#allocation12_spill] sm:$0xff]  ;;  %v459_v62 = vand.u32 4294901760, %v458_v45  ;;  %v5469_v3 = vand.u32 4294901760, %v5458_v1 }
  0x69   :  { %3801 = vmatmul.mubr.f32.gmra.mxu0 %v426_v51  ;;  %3861 = vmatmul.mubr.f32.gmra.mxu1 %v5279_v34  ;;  %8026 = vst [vmem:[#allocation18_spill] sm:$0xff] %v5441_v47  ;;  %v5444_v51 = vsub.f32 %v125_v42, %v5418_v8  ;;  %v8027_v34 = vld [vmem:[#allocation21_spill] sm:$0xff]  ;;  %v469_v18 = vsub.f32 %v5428_v13, %v5441_v47  ;;  %v8037_v13 = vld [vmem:[#allocation16_spill] sm:$0xff] }
  0x6a   :  { %3897 = vmatpush3.xpose.msra.mxu0 %v8024_v59  ;;  %3957 = vmatpush3.xpose.msra.mxu1 %v8025_v28  ;;  %v8028_v59 = vld [vmem:[#allocation11_spill] sm:$0xff]  ;;  %v8029_v28 = vld [vmem:[#allocation24_spill] sm:$0xff] }
  0x6b   :  { %3802 = vmatprep.mubr.f32.mxu0 %v437_v2  ;;  %3862 = vmatprep.mubr.f32.mxu1 %v5298_v12  ;;  %v5455_v42 = vand.u32 4294901760, %v5444_v51  ;;  %v470_v45 = vand.u32 4294901760, %v469_v18  ;;  %8036 = vst [vmem:[#allocation11_spill] sm:$0xff] %v5469_v3 }
  0x6c   :  { %3898 = vmatprep.subr.mxu0 %v8027_v34  ;;  %3958 = vmatprep.subr.mxu1 %v8028_v59 }
  0x6d   :  { %3803 = vmatmul.mubr.f32.gmra.mxu0 %v437_v2  ;;  %3863 = vmatmul.mubr.f32.gmra.mxu1 %v5298_v12  ;;  %8031 = vst [vmem:[#allocation21_spill] sm:$0xff] %v5455_v42  ;;  %v8032_v2 = vld [vmem:[#allocation26_spill] sm:$0xff]  ;;  %v8033_v12 = vld [vmem:[#allocation13_spill] sm:$0xff]  ;;  %v480_v47 = vsub.f32 %v5444_v51, %v5455_v42 }
  0x6e   :  { %3899 = vmatpush3.xpose.msra.mxu0 %v8029_v28  ;;  %3959 = vmatpush3.xpose.msra.mxu1 %v8030_v43  ;;  %v8034_v43 = vld [vmem:[#allocation27_spill] sm:$0xff]  ;;  %v8039_v42 = vld [vmem:[#allocation22_spill] sm:$0xff] }
  0x6f   :  { %3804 = vmatprep.mubr.f32.mxu0 %v448_v50  ;;  %3864 = vmatprep.mubr.f32.mxu1 %v5327_v7  ;;  %v8035_v28 = vld [vmem:[#allocation15_spill] sm:$0xff]  ;;  %v481_v18 = vand.u32 4294901760, %v480_v47  ;;  %v8041_v47 = vld [vmem:[#allocation25_spill] sm:$0xff] }
  0x70   :  { %3900 = vmatprep.subr.mxu0 %v8032_v2  ;;  %3960 = vmatprep.subr.mxu1 %v8033_v12 }
  0x71   :  { %3805 = vmatmul.mubr.f32.gmra.mxu0 %v448_v50  ;;  %3865 = vmatmul.mubr.f32.gmra.mxu1 %v5327_v7  ;;  %v8038_v50 = vld [vmem:[#allocation19_spill] sm:$0xff]  ;;  %v491_v7 = vsub.f32 %v5458_v1, %v5469_v3  ;;  %v8049_v3 = vld [vmem:[#allocation37_spill] sm:$0xff] }
  0x72   :  { %3901 = vmatpush3.xpose.msra.mxu0 %v8034_v43  ;;  %3961 = vmatpush3.xpose.msra.mxu1 %v8035_v28 }
  0x73   :  { %3806 = vmatprep.mubr.f32.mxu0 %v459_v62  ;;  %3866 = vmatprep.mubr.f32.mxu1 %v5347_v41 }
  0x74   :  { %3902 = vmatprep.subr.mxu0 %v5085_v60  ;;  %3962 = vmatprep.subr.mxu1 %v8037_v13 }
  0x75   :  { %3807 = vmatmul.mubr.f32.gmra.mxu0 %v459_v62  ;;  %3867 = vmatmul.mubr.f32.gmra.mxu1 %v5347_v41  ;;  %v8040_v62 = vld [vmem:[#allocation23_spill] sm:$0xff]  ;;  %v492_v41 = vand.u32 4294901760, %v491_v7  ;;  %v8043_v7 = vld [vmem:[#allocation29_spill] sm:$0xff] }
  0x76   :  { %3903 = vmatpush3.xpose.msra.mxu0 %v5108_v17  ;;  %3963 = vmatpush3.xpose.msra.mxu1 %v8038_v50 }
  0x77   :  { %3808 = vmatprep.mubr.f32.mxu0 %v470_v45  ;;  %3868 = vmatprep.mubr.f32.mxu1 %v5367_v39 }
  0x78   :  { %3904 = vmatprep.subr.mxu0 %v5123_v36  ;;  %3964 = vmatprep.subr.mxu1 %v8039_v42 }
  0x79   :  { %3809 = vmatmul.mubr.f32.gmra.mxu0 %v470_v45  ;;  %3869 = vmatmul.mubr.f32.gmra.mxu1 %v5367_v39  ;;  %v8042_v45 = vld [vmem:[#allocation28_spill] sm:$0xff]  ;;  %v8046_v39 = vand.u32 4294901760, %v4782_v21  ;;  %v8052_v21 = vand.u32 4294901760, %v4795_v26  ;;  %v8057_v26 = vld [vmem:[#allocation39_spill] sm:$0xff] }
  0x7a   :  { %3905 = vmatpush3.xpose.msra.mxu0 %v5140_v58  ;;  %3965 = vmatpush3.xpose.msra.mxu1 %v8040_v62 }
  0x7b   :  { %3810 = vmatprep.mubr.f32.mxu0 %v481_v18  ;;  %3870 = vmatprep.mubr.f32.mxu1 %v5388_v46 }
  0x7c   :  { %3906 = vmatprep.subr.mxu0 %v5152_v48  ;;  %3966 = vmatprep.subr.mxu1 %v8041_v47 }
  0x7d   :  { %3811 = vmatmul.mubr.f32.gmra.mxu0 %v481_v18  ;;  %3871 = vmatmul.mubr.f32.gmra.mxu1 %v5388_v46  ;;  %v8044_v18 = vld [vmem:[#allocation32_spill] sm:$0xff]  ;;  %v8045_v46 = vld [vmem:[#allocation31_spill] sm:$0xff] }
  0x7e   :  { %3907 = vmatpush3.xpose.msra.mxu0 %v5170_v16  ;;  %3967 = vmatpush3.xpose.msra.mxu1 %v5076_v14 }
  0x7f   :  { %3812 = vmatprep.mubr.f32.mxu0 %v492_v41  ;;  %3872 = vmatprep.mubr.f32.mxu1 %v5398_v29 }
  0x80   :  { %3908 = vmatprep.subr.mxu0 %v5183_v19  ;;  %3968 = vmatprep.subr.mxu1 %v8042_v45 }
  0x81   :  { %3813 = vmatmul.mubr.f32.gmra.mxu0 %v492_v41  ;;  %3873 = vmatmul.mubr.f32.gmra.mxu1 %v5398_v29  ;;  %v8047_v41 = vld [vmem:[#allocation33_spill] sm:$0xff]  ;;  %v8048_v29 = vand.u32 4294901760, %v4787_v23  ;;  %v8053_v23 = vld [vmem:[#allocation40_spill] sm:$0xff] }
  0x82   :  { %3909 = vmatpush3.xpose.msra.mxu0 %v5208_v54  ;;  %3969 = vmatpush3.xpose.msra.mxu1 %v8043_v7  ;;  %v8050_v7 = vld [vmem:[#allocation35_spill] sm:$0xff] }
  0x83   :  { %3874 = vmatprep.mubr.f32.mxu1 %v5418_v8  ;;  %3910 = vmatprep.mubr.f32.mxu0 %v8044_v18 }
  0x84   :  { %3970 = vmatprep.subr.mxu1 %v8045_v46  ;;  %4006 = vmatprep.subr.mxu0 %v8046_v39  ;;  %v8051_v46 = vand.u32 4294901760, %v4791_v24  ;;  %v8054_v39 = vld [vmem:[#allocation34_spill] sm:$0xff]  ;;  %v8056_v24 = vand.u32 4294901760, %v4824_v40  ;;  %v8065_v40 = vld [vmem:[#allocation49_spill] sm:$0xff] }
  0x85   :  { %3875 = vmatmul.mubr.f32.gmra.mxu1 %v5418_v8  ;;  %3911 = vmatmul.mubr.f32.vlgmr.msra.gmra.mxu0 %v8044_v18  ;;  %v8086_v18 = vld [vmem:[#allocation9_spill] sm:$0xff] }
  0x86   :  { %3971 = vmatpush3.xpose.msra.mxu1 %v8047_v41  ;;  %4007 = vmatpush3.xpose.msra.mxu0 %v8048_v29  ;;  %v8055_v29 = vand.u32 4294901760, %v4811_v35  ;;  %v8061_v35 = vand.u32 4294901760, %v4871_v63  ;;  %v8070_v63 = vld [vmem:[#allocation52_spill] sm:$0xff] }
  0x87   :  { %3876 = vmatprep.mubr.f32.mxu1 %v5435_v44  ;;  %3912 = vmatprep.mubr.f32.mxu0 %v8049_v3 }
  0x88   :  { %3972 = vmatprep.subr.mxu1 %v8050_v7  ;;  %4008 = vmatprep.subr.mxu0 %v8051_v46  ;;  %v8058_v46 = vand.u32 4294901760, %v4854_v55  ;;  %v8067_v55 = vand.u32 4294901760, %v4925_v49  ;;  %v8075_v49 = vld [vmem:[#allocation53_spill] sm:$0xff] }
  0x89   :  { %3877 = vmatmul.mubr.f32.gmra.mxu1 %v5435_v44  ;;  %3913 = vmatmul.mubr.f32.gmra.mxu0 %v8049_v3  ;;  %v8085_v3 = vand.u32 4294901760, %v8022_v25  ;;  %v8093_v25 = vld [vmem:[#allocation24_spill] sm:$0xff] }
  0x8a   :  { %3973 = vmatpush3.xpose.msra.mxu1 %v5176_v32  ;;  %4009 = vmatpush3.xpose.msra.mxu0 %v8052_v21  ;;  %v8087_v21 = vld [vmem:[#allocation20_spill] sm:$0xff] }
  0x8b   :  { %3914 = vmatprep.mubr.f32.mxu0 %v8053_v23  ;;  %3974 = vmatprep.mubr.f32.mxu1 %v8054_v39 }
  0x8c   :  { %4010 = vmatprep.subr.mxu0 %v8055_v29  ;;  %4070 = vmatprep.subr.mxu1 %v4757_v9  ;;  %v8059_v9 = vand.u32 4294901760, %v4858_v57  ;;  %v8068_v57 = vld [vmem:[#allocation5_spill] sm:$0xff]  ;;  %v8090_v29 = vld [vmem:[#allocation60_spill] sm:$0xff] }
  0x8d   :  { %3915 = vmatmul.mubr.f32.gmra.mxu0 %v8053_v23  ;;  %3975 = vmatmul.mubr.f32.vlgmr.msra.gmra.mxu1 %v8054_v39  ;;  %v8088_v23 = vand.u32 4294901760, %v8087_v21  ;;  %v8089_v39 = vld [vmem:[#allocation10_spill] sm:$0xff] }
  0x8e   :  { %4011 = vmatpush3.xpose.msra.mxu0 %v8056_v24  ;;  %4071 = vmatpush3.xpose.msra.mxu1 %v4759_v10  ;;  %v8060_v10 = vld [vmem:[#allocation42_spill] sm:$0xff]  ;;  %v8091_v24 = vld [vmem:[#allocation56_spill] sm:$0xff] }
  0x8f   :  { %3916 = vmatprep.mubr.f32.mxu0 %v5235_v4  ;;  %3976 = vmatprep.mubr.f32.mxu1 %v8057_v26  ;;  %v2005_v21 = vld [vmem:[%s7563_s3 + $0xe8] sm:$0xff] }
  0x90   :  { %4012 = vmatprep.subr.mxu0 %v8058_v46  ;;  %4072 = vmatprep.subr.mxu1 %v4761_v11  ;;  %v8062_v11 = vand.u32 4294901760, %v4881_v6  ;;  %v8072_v6 = vand.u32 4294901760, %v4948_v0  ;;  %v8079_v0 = vld [vmem:[#allocation7_spill] sm:$0xff]  ;;  %v8094_v46 = vand.u32 4294901760, %v8093_v25 }
  0x91   :  { %3917 = vmatmul.mubr.f32.gmra.mxu0 %v5235_v4  ;;  %3977 = vmatmul.mubr.f32.gmra.mxu1 %v8057_v26  ;;  %v8092_v26 = vand.u32 4294901760, %v8027_v34  ;;  %v8099_v34 = vand.u32 4294901760, %v8034_v43  ;;  %v8104_v43 = vld [vmem:[#allocation69_spill] sm:$0xff] }
  0x92   :  { %4013 = vmatpush3.xpose.msra.mxu0 %v8059_v9  ;;  %4073 = vmatpush3.xpose.msra.mxu1 %v4770_v15  ;;  %v8063_v15 = vand.u32 4294901760, %v4906_v27  ;;  %v8073_v27 = vand.u32 4294901760, %v4966_v31  ;;  %v8082_v31 = vld [vmem:[#allocation8_spill] sm:$0xff] }
  0x93   :  { %3918 = vmatprep.mubr.f32.mxu0 %v5256_v37  ;;  %3978 = vmatprep.mubr.f32.mxu1 %v8060_v10  ;;  %v8095_v9 = vld [vmem:[#allocation12_spill] sm:$0xff] }
  0x94   :  { %4014 = vmatprep.subr.mxu0 %v8061_v35  ;;  %4074 = vmatprep.subr.mxu1 %v4779_v20  ;;  %v8064_v20 = vand.u32 4294901760, %v4913_v38  ;;  %v8074_v38 = vld [vmem:[#allocation6_spill] sm:$0xff]  ;;  %v8097_v35 = vld [vmem:[#allocation59_spill] sm:$0xff] }
  0x95   :  { %3919 = vmatmul.mubr.f32.gmra.mxu0 %v5256_v37  ;;  %3979 = vmatmul.mubr.f32.gmra.mxu1 %v8060_v10  ;;  %v8083_v37 = vld [vmem:[#allocation57_spill] sm:$0xff]  ;;  %v8096_v10 = vld [vmem:[#allocation63_spill] sm:$0xff] }
  0x96   :  { %4015 = vmatpush3.xpose.msra.mxu0 %v8062_v11  ;;  %4075 = vmatpush3.xpose.msra.mxu1 %v4784_v22  ;;  %v8066_v22 = vld [vmem:[#allocation45_spill] sm:$0xff]  ;;  %v8098_v11 = vand.u32 4294901760, %v8032_v2  ;;  %v8106_v2 = vand.u32 4294901760, %v5123_v36  ;;  %v8110_v36 = vand.u32 4294901760, %v5170_v16 }
  0x97   :  { %3920 = vmatprep.mubr.f32.mxu0 %v5264_v52  ;;  %3980 = vmatprep.mubr.f32.mxu1 %v5253_v5  ;;  %v8114_v16 = vld [vmem:[#allocation29_spill] sm:$0xff] }
  0x98   :  { %4016 = vmatprep.subr.mxu0 %v8063_v15  ;;  %4076 = vmatprep.subr.mxu1 %v4803_v30  ;;  %v8069_v30 = vand.u32 4294901760, %v4935_v56  ;;  %v8077_v56 = vld [vmem:[#allocation14_spill] sm:$0xff] }
  0x99   :  { %3921 = vmatmul.mubr.f32.gmra.mxu0 %v5264_v52  ;;  %3981 = vmatmul.mubr.f32.gmra.mxu1 %v5253_v5  ;;  %v8078_v5 = vand.u32 4294901760, %v8077_v56  ;;  %v8084_v52 = vld [vmem:[#allocation54_spill] sm:$0xff]  ;;  %v1990_v56 = vld [vmem:[%s7563_s3 + $0x70] sm:$0xff] }
  0x9a   :  { %4017 = vmatpush3.xpose.msra.mxu0 %v8064_v20  ;;  %4077 = vmatpush3.xpose.msra.mxu1 %v4807_v33  ;;  %v8071_v33 = vld [vmem:[#allocation48_spill] sm:$0xff]  ;;  %v8101_v15 = vld [vmem:[#allocation62_spill] sm:$0xff]  ;;  %v8102_v20 = vand.u32 4294901760, %v5085_v60  ;;  %v8107_v60 = vand.u32 4294901760, %v5140_v58 }
  0x9b   :  { %3922 = vmatprep.mubr.f32.mxu0 %v8065_v40  ;;  %3982 = vmatprep.mubr.f32.mxu1 %v8066_v22  ;;  %v8111_v58 = vld [vmem:[#allocation18_spill] sm:$0xff] }
  0x9c   :  { %4018 = vmatprep.subr.mxu0 %v8067_v55  ;;  %4078 = vmatprep.subr.mxu1 %v8068_v57  ;;  %v8129_v55 = vld [vmem:[#allocation61_spill] sm:$0xff]  ;;  %v8130_v57 = vld [vmem:[#allocation64_spill] sm:$0xff] }
  0x9d   :  { %3923 = vmatmul.mubr.f32.gmra.mxu0 %v8065_v40  ;;  %3983 = vmatmul.mubr.f32.gmra.mxu1 %v8066_v22  ;;  %v8127_v40 = vld [vmem:[#allocation55_spill] sm:$0xff]  ;;  %v8128_v22 = vld [vmem:[#allocation58_spill] sm:$0xff] }
  0x9e   :  { %4019 = vmatpush3.xpose.msra.mxu0 %v8069_v30  ;;  %4079 = vmatpush3.xpose.msra.mxu1 %v4848_v53  ;;  %v8076_v53 = vld [vmem:[#allocation51_spill] sm:$0xff]  ;;  %v2007_v30 = vld [vmem:[%s7563_s3 + $0xf8] sm:$0xff] }
  0x9f   :  { %3924 = vmatprep.mubr.f32.mxu0 %v8070_v63  ;;  %3984 = vmatprep.mubr.f32.mxu1 %v8071_v33 }
  0xa0   :  { %4020 = vmatprep.subr.mxu0 %v8072_v6  ;;  %4080 = vmatprep.subr.mxu1 %v4867_v61  ;;  %v8080_v61 = vld [vmem:[#allocation17_spill] sm:$0xff] }
  0xa1   :  { %3925 = vmatmul.mubr.f32.gmra.mxu0 %v8070_v63  ;;  %3985 = vmatmul.mubr.f32.gmra.mxu1 %v8071_v33  ;;  %v8081_v4 = vand.u32 4294901760, %v8080_v61  ;;  %v1991_v63 = vld [vmem:[%s7563_s3 + $0x78] sm:$0xff]  ;;  %v5716_v33 = vand.u32 4294901760, %v2007_v30 }
  0xa2   :  { %4021 = vmatpush3.xpose.msra.mxu0 %v8073_v27  ;;  %4081 = vmatpush3.xpose.msra.mxu1 %v8074_v38  ;;  %v5718_v6 = vand.u32 4294901760, %v1991_v63 }
  0xa3   :  { %3926 = vmatprep.mubr.f32.mxu0 %v8075_v49  ;;  %3986 = vmatprep.mubr.f32.mxu1 %v8076_v53  ;;  %8131 = vst [vmem:[#allocation26_spill] sm:$0xff] %v5716_v33  ;;  %v5726_v38 = vsub.f32 %v2007_v30, %v5716_v33 }
  0xa4   :  { %4022 = vmatprep.subr.mxu0 %v8078_v5  ;;  %4082 = vmatprep.subr.mxu1 %v8079_v0  ;;  %8132 = vst [vmem:[#allocation13_spill] sm:$0xff] %v5718_v6  ;;  %v5723_v27 = vsub.f32 %v1991_v63, %v5718_v6 }
  0xa5   :  { %3927 = vmatmul.mubr.f32.gmra.mxu0 %v8075_v49  ;;  %3987 = vmatmul.mubr.f32.gmra.mxu1 %v8076_v53  ;;  %8134 = vst [vmem:[#allocation15_spill] sm:$0xff] %v5726_v38  ;;  %v8135_v49 = vld [vmem:[#allocation65_spill] sm:$0xff]  ;;  %v2006_v53 = vld [vmem:[%s7563_s3 + $0xf0] sm:$0xff]  ;;  %v7734_v5 = vand.u32 4294901760, %v5726_v38 }
  0xa6   :  { %4023 = vmatpush3.xpose.msra.mxu0 %v8081_v4  ;;  %4083 = vmatpush3.xpose.msra.mxu1 %v8082_v31  ;;  %8133 = vst [vmem:[#allocation27_spill] sm:$0xff] %v5723_v27  ;;  %v7733_v0 = vand.u32 4294901760, %v5723_v27  ;;  %v5739_v61 = vand.u32 4294901760, %v2006_v53  ;;  %v5741_v4 = vand.u32 4294901760, %v1990_v56 }
  0xa7   :  { %3928 = vmatprep.mubr.f32.mxu0 %v8083_v37  ;;  %3988 = vmatprep.mubr.f32.mxu1 %v8084_v52  ;;  %v2468_v31 = vsub.f32 %v5726_v38, %v7734_v5 }
  0xa8   :  { %4024 = vmatprep.subr.mxu0 %v8085_v3  ;;  %4084 = vmatprep.subr.mxu1 %v8086_v18  ;;  %8136 = vst [vmem:[#allocation16_spill] sm:$0xff] %v5739_v61  ;;  %8137 = vst [vmem:[#allocation19_spill] sm:$0xff] %v5741_v4  ;;  %v71_v3 = vlaneseq  ;;  %v5758_v18 = vsub.f32 %v2006_v53, %v5739_v61 }
  0xa9   :  { %3929 = vmatmul.mubr.f32.gmra.mxu0 %v8083_v37  ;;  %3989 = vmatmul.mubr.f32.gmra.mxu1 %v8084_v52  ;;  %v2356_v37 = vsub.f32 %v5723_v27, %v7733_v0  ;;  %v5753_v52 = vsub.f32 %v1990_v56, %v5741_v4 }
  0xaa   :  { %4025 = vmatpush3.xpose.msra.mxu0 %v8088_v23  ;;  %4085 = vmatpush3.xpose.msra.mxu1 %v8089_v39  ;;  %8139 = vst [vmem:[#allocation23_spill] sm:$0xff] %v5758_v18  ;;  %v1989_v23 = vld [vmem:[%s7563_s3 + $0x68] sm:$0xff]  ;;  %v2469_v39 = vand.u32 4294901760, %v2468_v31  ;;  %v7732_v25 = vand.u32 4294901760, %v5758_v18 }
  0xab   :  { %3930 = vmatprep.mubr.f32.mxu0 %v8090_v29  ;;  %3990 = vmatprep.mubr.f32.mxu1 %v8091_v24  ;;  %8138 = vst [vmem:[#allocation22_spill] sm:$0xff] %v5753_v52 }
  0xac   :  { %4026 = vmatprep.subr.mxu0 %v8092_v26  ;;  %4086 = vmatprep.subr.mxu1 %v8028_v59  ;;  %v8100_v59 = vld [vmem:[#allocation67_spill] sm:$0xff]  ;;  %v2357_v26 = vand.u32 4294901760, %v2356_v37 }
  0xad   :  { %3931 = vmatmul.mubr.f32.gmra.mxu0 %v8090_v29  ;;  %3991 = vmatmul.mubr.f32.gmra.mxu1 %v8091_v24  ;;  %v7730_v29 = vand.u32 4294901760, %v5753_v52  ;;  %v5768_v24 = vand.u32 4294901760, %v2005_v21 }
  0xae   :  { %4027 = vmatpush3.xpose.msra.mxu0 %v8094_v46  ;;  %4087 = vmatpush3.xpose.msra.mxu1 %v8095_v9  ;;  %v5772_v46 = vand.u32 4294901760, %v1989_v23 }
  0xaf   :  { %3932 = vmatprep.mubr.f32.mxu0 %v8096_v10  ;;  %3992 = vmatprep.mubr.f32.mxu1 %v8097_v35  ;;  %8140 = vst [vmem:[#allocation25_spill] sm:$0xff] %v5768_v24  ;;  %v2363_v9 = vsub.f32 %v5753_v52, %v7730_v29 }
  0xb0   :  { %4028 = vmatprep.subr.mxu0 %v8098_v11  ;;  %4088 = vmatprep.subr.mxu1 %v8033_v12  ;;  %v8103_v12 = vand.u32 4294901760, %v5108_v17  ;;  %v8108_v17 = vld [vmem:[#allocation68_spill] sm:$0xff]  ;;  %8141 = vst [vmem:[#allocation28_spill] sm:$0xff] %v5772_v46  ;;  %v2475_v11 = vsub.f32 %v5758_v18, %v7732_v25 }
  0xb1   :  { %3933 = vmatmul.mubr.f32.gmra.mxu0 %v8096_v10  ;;  %3993 = vmatmul.mubr.f32.gmra.mxu1 %v8097_v35  ;;  %v5780_v10 = vsub.f32 %v2005_v21, %v5768_v24  ;;  %v5784_v35 = vshrl.u32 %v71_v3, 7 }
  0xb2   :  { %4029 = vmatpush3.xpose.msra.mxu0 %v8099_v34  ;;  %4089 = vmatpush3.xpose.msra.mxu1 %v8035_v28  ;;  %v8105_v28 = vld [vmem:[#allocation66_spill] sm:$0xff]  ;;  %v5790_v34 = vsub.f32 %v1989_v23, %v5772_v46 }
  0xb3   :  { %3934 = vmatprep.mubr.f32.mxu0 %v8100_v59  ;;  %3994 = vmatprep.mubr.f32.mxu1 %v8101_v15  ;;  %8142 = vst [vmem:[#allocation32_spill] sm:$0xff] %v5780_v10 }
  0xb4   :  { %4030 = vmatprep.subr.mxu0 %v8102_v20  ;;  %4090 = vmatprep.subr.mxu1 %v8037_v13  ;;  %v8109_v13 = vand.u32 4294901760, %v5152_v48  ;;  %v8113_v48 = vand.u32 4294901760, %v5208_v54  ;;  %v8120_v54 = vld [vmem:[#allocation38_spill] sm:$0xff]  ;;  %8143 = vst [vmem:[#allocation33_spill] sm:$0xff] %v5790_v34  ;;  %v2364_v20 = vand.u32 4294901760, %v2363_v9 }
  0xb5   :  { %3935 = vmatmul.mubr.f32.gmra.mxu0 %v8100_v59  ;;  %3995 = vmatmul.mubr.f32.gmra.mxu1 %v8101_v15  ;;  %v2004_v59 = vld [vmem:[%s7563_s3 + $0xe0] sm:$0xff] }
  0xb6   :  { %4031 = vmatpush3.xpose.msra.mxu0 %v8103_v12  ;;  %4091 = vmatpush3.xpose.msra.mxu1 %v8038_v50  ;;  %v8117_v50 = vld [vmem:[#allocation31_spill] sm:$0xff]  ;;  %v1988_v15 = vld [vmem:[%s7563_s3 + $0x60] sm:$0xff]  ;;  %v7729_v12 = vand.u32 4294901760, %v5780_v10 }
  0xb7   :  { %3936 = vmatprep.mubr.f32.mxu0 %v8104_v43  ;;  %3996 = vmatprep.mubr.f32.mxu1 %v8105_v28 }
  0xb8   :  { %4032 = vmatprep.subr.mxu0 %v8106_v2  ;;  %4092 = vmatprep.subr.mxu1 %v8039_v42  ;;  %v8112_v42 = vand.u32 4294901760, %v5183_v19  ;;  %v8118_v19 = vld [vmem:[#allocation11_spill] sm:$0xff]  ;;  %v2476_v2 = vand.u32 4294901760, %v2475_v11 }
  0xb9   :  { %3937 = vmatmul.mubr.f32.gmra.mxu0 %v8104_v43  ;;  %3997 = vmatmul.mubr.f32.gmra.mxu1 %v8105_v28  ;;  %v5800_v43 = vand.u32 4294901760, %v2004_v59  ;;  %v5802_v28 = vand.u32 4294901760, %v1988_v15 }
  0xba   :  { %4033 = vmatpush3.xpose.msra.mxu0 %v8107_v60  ;;  %4093 = vmatpush3.xpose.msra.mxu1 %v8040_v62  ;;  %v8121_v62 = vld [vmem:[#allocation41_spill] sm:$0xff]  ;;  %v7728_v60 = vand.u32 4294901760, %v5790_v34 }
  0xbb   :  { %3938 = vmatprep.mubr.f32.mxu0 %v5444_v51  ;;  %3998 = vmatprep.mubr.f32.mxu1 %v8108_v17  ;;  %8144 = vst [vmem:[#allocation37_spill] sm:$0xff] %v5800_v43  ;;  %8145 = vst [vmem:[#allocation35_spill] sm:$0xff] %v5802_v28 }
  0xbc   :  { %4034 = vmatprep.subr.mxu0 %v8109_v13  ;;  %4094 = vmatprep.subr.mxu1 %v8041_v47  ;;  %v8122_v47 = vld [vmem:[#allocation43_spill] sm:$0xff]  ;;  %v5812_v13 = vsub.f32 %v1988_v15, %v5802_v28 }
  0xbd   :  { %3939 = vmatmul.mubr.f32.gmra.mxu0 %v5444_v51  ;;  %3999 = vmatmul.mubr.f32.gmra.mxu1 %v8108_v17  ;;  %v8115_v51 = vld [vmem:[#allocation21_spill] sm:$0xff]  ;;  %v2482_v17 = vsub.f32 %v5780_v10, %v7729_v12 }
  0xbe   :  { %4035 = vmatpush3.xpose.msra.mxu0 %v8110_v36  ;;  %4095 = vmatpush3.xpose.msra.mxu1 %v5076_v14  ;;  %v8116_v14 = vld [vmem:[#allocation30_spill] sm:$0xff]  ;;  %8146 = vst [vmem:[#allocation40_spill] sm:$0xff] %v5812_v13  ;;  %v5815_v36 = vsub.f32 %v2004_v59, %v5800_v43 }
  0xbf   :  { %3940 = vmatprep.mubr.f32.mxu0 %v5458_v1  ;;  %4000 = vmatprep.mubr.f32.mxu1 %v8111_v58 }
  0xc0   :  { %4036 = vmatprep.subr.mxu0 %v8112_v42  ;;  %4096 = vmatprep.subr.mxu1 %v8042_v45  ;;  %v8124_v45 = vld [vmem:[#allocation46_spill] sm:$0xff]  ;;  %8147 = vst [vmem:[#allocation34_spill] sm:$0xff] %v5815_v36  ;;  %v2370_v42 = vsub.f32 %v5790_v34, %v7728_v60 }
  0xc1   :  { %3941 = vmatmul.mubr.f32.gmra.mxu0 %v5458_v1  ;;  %4001 = vmatmul.mubr.f32.gmra.mxu1 %v8111_v58  ;;  %v8119_v1 = vld [vmem:[#allocation36_spill] sm:$0xff]  ;;  %v73_v58 = vsub.s32 0, %v5784_v35 }
  0xc2   :  { %4037 = vmatpush3.xpose.msra.mxu0 %v8113_v48  ;;  %4097 = vmatpush3.xpose.msra.mxu1 %v8114_v16  ;;  %v2003_v48 = vld [vmem:[%s7563_s3 + $0xd8] sm:$0xff] }
  0xc3   :  { %4002 = vmatprep.mubr.f32.mxu1 %v8115_v51  ;;  %4038 = vmatprep.mubr.f32.mxu0 %v8116_v14  ;;  %v1987_v16 = vld [vmem:[%s7563_s3 + $0x58] sm:$0xff] }
  0xc4   :  { %4098 = vmatprep.subr.mxu1 %v8117_v50  ;;  %4134 = vmatprep.subr.mxu0 %v5716_v33  ;;  %v7727_v50 = vand.u32 4294901760, %v5815_v36 }
  0xc5   :  { %4003 = vmatmul.mubr.f32.gmra.mxu1 %v8115_v51  ;;  %4039 = vmatmul.mubr.f32.vlgmr.msra.gmra.mxu0 %v8116_v14  ;;  %v5831_v51 = vld [vmem:[%s7562_s2] sm:$0x3] }
  0xc6   :  { %4099 = vmatpush3.xpose.msra.mxu1 %v8047_v41  ;;  %4004 = vmatprep.mubr.f32.mxu1 %v8118_v19  ;;  %v8126_v41 = vld [vmem:[#allocation50_spill] sm:$0xff] }
  0xc7   :  { %4040 = vmatprep.mubr.f32.mxu0 %v8119_v1  ;;  %4100 = vmatprep.subr.mxu1 %v8050_v7  ;;  %v8125_v7 = vld [vmem:[#allocation47_spill] sm:$0xff] }
  0xc8   :  { %4135 = vmatpush3.msra.mxu0 %v5718_v6 }
  0xc9   :  { %4005 = vmatmul.mubr.f32.gmra.mxu1 %v8118_v19  ;;  %4041 = vmatmul.mubr.f32.gmra.mxu0 %v8119_v1  ;;  %v7724_v19 = vand.u32 4294901760, %v5812_v13 }
  0xca   :  { %4101 = vmatpush3.xpose.msra.mxu1 %v5176_v32  ;;  %4042 = vmatprep.mubr.f32.mxu0 %v8120_v54  ;;  %v8123_v32 = vld [vmem:[#allocation44_spill] sm:$0xff] }
  0xcb   :  { %4102 = vmatprep.mubr.f32.mxu1 %v8116_v14  ;;  %4136 = vmatprep.subr.mxu0 %v5739_v61 }
  0xcc   :  { %4137 = vmatpush3.msra.mxu0 %v5741_v4  ;;  %4214 = vmatprep.subr.mxu1 %v2469_v39 }
  0xcd   :  { %4043 = vmatmul.mubr.f32.gmra.mxu0 %v8120_v54  ;;  %4103 = vmatmul.mubr.f32.vlgmr.msra.gmra.mxu1 %v8116_v14  ;;  %v2483_v14 = vand.u32 4294901760, %v2482_v17 }
  0xce   :  { %4044 = vmatprep.mubr.f32.mxu0 %v8121_v62  ;;  %4104 = vmatprep.mubr.f32.mxu1 %v8119_v1 }
  0xcf   :  { %4138 = vmatprep.subr.mxu0 %v5768_v24  ;;  %4215 = vmatpush3.msra.mxu1 %v2357_v26  ;;  %v1985_v26 = vld [vmem:[%s7563_s3 + $0x48] sm:$0xff] }
  0xd0   :  { %4139 = vmatpush3.msra.mxu0 %v5772_v46  ;;  %4216 = vmatprep.subr.mxu1 %v2476_v2 }
  0xd1   :  { %4045 = vmatmul.mubr.f32.gmra.mxu0 %v8121_v62  ;;  %4105 = vmatmul.mubr.f32.gmra.mxu1 %v8119_v1  ;;  %v5836_v1 = vand.u32 4294901760, %v2003_v48 }
  0xd2   :  { %4046 = vmatprep.mubr.f32.mxu0 %v8122_v47  ;;  %4106 = vmatprep.mubr.f32.mxu1 %v8120_v54 }
  0xd3   :  { %4217 = vmatpush3.msra.mxu1 %v2364_v20  ;;  %4140 = vmatprep.subr.mxu0 %v5800_v43  ;;  %8148 = vst [vmem:[#allocation39_spill] sm:$0xff] %v5836_v1  ;;  %v5901_v20 = vand.u32 4294901760, %v1985_v26 }
  0xd4   :  { %4141 = vmatpush3.msra.mxu0 %v5802_v28  ;;  %4218 = vmatprep.subr.mxu1 %v2483_v14 }
  0xd5   :  { %4047 = vmatmul.mubr.f32.gmra.mxu0 %v8122_v47  ;;  %4107 = vmatmul.mubr.f32.gmra.mxu1 %v8120_v54  ;;  %v2371_v54 = vand.u32 4294901760, %v2370_v42  ;;  %8157 = vst [vmem:[#allocation51_spill] sm:$0xff] %v5901_v20  ;;  %v5912_v14 = vsub.f32 %v1985_v26, %v5901_v20  ;;  %v1999_v26 = vld [vmem:[%s7563_s3 + $0xb8] sm:$0xff] }
  0xd6   :  { %4048 = vmatprep.mubr.f32.mxu0 %v8123_v32  ;;  %4108 = vmatprep.mubr.f32.mxu1 %v8121_v62 }
  0xd7   :  { %4219 = vmatpush3.msra.mxu1 %v2371_v54  ;;  %4142 = vmatprep.subr.mxu0 %v5836_v1  ;;  %8158 = vst [vmem:[#allocation14_spill] sm:$0xff] %v5912_v14 }
  0xd9   :  { %4049 = vmatmul.mubr.f32.gmra.mxu0 %v8123_v32  ;;  %4109 = vmatmul.mubr.f32.gmra.mxu1 %v8121_v62  ;;  %v5839_v62 = vand.u32 4294901760, %v1987_v16 }
  0xda   :  { %4050 = vmatprep.mubr.f32.mxu0 %v8124_v45  ;;  %4110 = vmatprep.mubr.f32.mxu1 %v8122_v47 }
  0xdb   :  { %8149 = vst [vmem:[#allocation42_spill] sm:$0xff] %v5839_v62  ;;  %4143 = vmatpush3.msra.mxu0 %v5839_v62 }
  0xdd   :  { %4051 = vmatmul.mubr.f32.gmra.mxu0 %v8124_v45  ;;  %4111 = vmatmul.mubr.f32.gmra.mxu1 %v8122_v47 }
  0xde   :  { %4052 = vmatprep.mubr.f32.mxu0 %v8125_v7  ;;  %4112 = vmatprep.mubr.f32.mxu1 %v8123_v32 }
  0xe1   :  { %4053 = vmatmul.mubr.f32.gmra.mxu0 %v8125_v7  ;;  %4113 = vmatmul.mubr.f32.gmra.mxu1 %v8123_v32  ;;  %v2489_v32 = vsub.f32 %v5815_v36, %v7727_v50 }
  0xe2   :  { %4054 = vmatprep.mubr.f32.mxu0 %v8126_v41  ;;  %4114 = vmatprep.mubr.f32.mxu1 %v8124_v45 }
  0xe5   :  { %4055 = vmatmul.mubr.f32.gmra.mxu0 %v8126_v41  ;;  %4115 = vmatmul.mubr.f32.gmra.mxu1 %v8124_v45  ;;  %v2377_v45 = vsub.f32 %v5812_v13, %v7724_v19 }
  0xe6   :  { %4056 = vmatprep.mubr.f32.mxu0 %v8127_v40  ;;  %4116 = vmatprep.mubr.f32.mxu1 %v8125_v7 }
  0xe7   :  { %v2378_v30 = vand.u32 4294901760, %v2377_v45 }
  0xe9   :  { %4057 = vmatmul.mubr.f32.gmra.mxu0 %v8127_v40  ;;  %4117 = vmatmul.mubr.f32.gmra.mxu1 %v8125_v7  ;;  %v5849_v7 = vsub.f32 %v2003_v48, %v5836_v1 }
  0xea   :  { %4058 = vmatprep.mubr.f32.mxu0 %v8128_v22  ;;  %4118 = vmatprep.mubr.f32.mxu1 %v8126_v41 }
  0xeb   :  { %8150 = vst [vmem:[#allocation49_spill] sm:$0xff] %v5849_v7  ;;  %v7723_v63 = vand.u32 4294901760, %v5849_v7 }
  0xed   :  { %4059 = vmatmul.mubr.f32.gmra.mxu0 %v8128_v22  ;;  %4119 = vmatmul.mubr.f32.gmra.mxu1 %v8126_v41  ;;  %v5852_v41 = vrot.slane %v5831_v51, %v73_v58  ;;  %v2496_v37 = vsub.f32 %v5849_v7, %v7723_v63  ;;  %v2000_v58 = vld [vmem:[%s7563_s3 + $0xc0] sm:$0xff] }
  0xee   :  { %4060 = vmatprep.mubr.f32.mxu0 %v8129_v55  ;;  %4120 = vmatprep.mubr.f32.mxu1 %v8127_v40 }
  0xef   :  { %v2497_v11 = vand.u32 4294901760, %v2496_v37 }
  0xf1   :  { %4061 = vmatmul.mubr.f32.gmra.mxu0 %v8129_v55  ;;  %4121 = vmatmul.mubr.f32.gmra.mxu1 %v8127_v40  ;;  %v2002_v40 = vld [vmem:[%s7563_s3 + $0xd0] sm:$0xff] }
  0xf2   :  { %4062 = vmatprep.mubr.f32.mxu0 %v8130_v57  ;;  %4122 = vmatprep.mubr.f32.mxu1 %v8128_v22 }
  0xf5   :  { %4063 = vmatmul.mubr.f32.gmra.mxu0 %v8130_v57  ;;  %4123 = vmatmul.mubr.f32.gmra.mxu1 %v8128_v22  ;;  %v1986_v22 = vld [vmem:[%s7563_s3 + $0x50] sm:$0xff] }
  0xf6   :  { %4064 = vmatprep.mubr.f32.mxu0 %v8135_v49  ;;  %4124 = vmatprep.mubr.f32.mxu1 %v8129_v55  ;;  %v5872_v56 = vand.u32 4294901760, %v1986_v22 }
  0xf8   :  { %8153 = vst [vmem:[#allocation52_spill] sm:$0xff] %v5872_v56  ;;  %v5887_v39 = vsub.f32 %v1986_v22, %v5872_v56 }
  0xf9   :  { %4065 = vmatmul.mubr.f32.gmra.mxu0 %v8135_v49  ;;  %4125 = vmatmul.mubr.f32.gmra.mxu1 %v8129_v55 }
  0xfa   :  { %4066 = vmatprep.mubr.f32.mxu0 %v5418_v8  ;;  %4126 = vmatprep.mubr.f32.mxu1 %v8130_v57  ;;  %8155 = vst [vmem:[#allocation6_spill] sm:$0xff] %v5887_v39  ;;  %v7720_v17 = vand.u32 4294901760, %v5887_v39 }
  0xfc   :  { %v2391_v22 = vsub.f32 %v5887_v39, %v7720_v17 }
  0xfd   :  { %4067 = vmatmul.mubr.f32.gmra.mxu0 %v5418_v8  ;;  %4127 = vmatmul.mubr.f32.gmra.mxu1 %v8130_v57  ;;  %v2490_v57 = vand.u32 4294901760, %v2489_v32  ;;  %v1984_v32 = vld [vmem:[%s7563_s3 + $0x40] sm:$0xff] }
  0xfe   :  { %4068 = vmatprep.mubr.f32.mxu0 %v5435_v44  ;;  %4128 = vmatprep.mubr.f32.mxu1 %v8135_v49 }
  0xff   :  { %4220 = vmatprep.subr.mxu1 %v2490_v57  ;;  %v5929_v57 = vand.u32 4294901760, %v1984_v32 }
 0x100   :  { %4221 = vmatpush3.msra.mxu1 %v2378_v30 }
 0x101   :  { %4069 = vmatmul.mubr.f32.gmra.mxu0 %v5435_v44  ;;  %4129 = vmatmul.mubr.f32.gmra.mxu1 %v8135_v49  ;;  %v5868_v49 = vand.u32 4294901760, %v2002_v40  ;;  %8161 = vst [vmem:[#allocation8_spill] sm:$0xff] %v5929_v57 }
 0x102   :  { %4130 = vmatprep.mubr.f32.mxu1 %v5418_v8  ;;  %4222 = vmatprep.subr.mxu1 %v2497_v11  ;;  %v2392_v11 = vand.u32 4294901760, %v2391_v22 }
 0x103   :  { %8152 = vst [vmem:[#allocation5_spill] sm:$0xff] %v5868_v49  ;;  %v5879_v3 = vsub.f32 %v2002_v40, %v5868_v49  ;;  %4144 = vmatprep.subr.mxu0 %v5868_v49 }
 0x104   :  { %4145 = vmatpush3.msra.mxu0 %v5872_v56 }
 0x105   :  { %v329_v47 = vpop.f32.mrf.mxu0  ;;  %4131 = vmatmul.mubr.f32.gmra.mxu1 %v5418_v8  ;;  %v5856_v8 = vsub.f32 %v1987_v16, %v5839_v62  ;;  %8154 = vst [vmem:[#allocation48_spill] sm:$0xff] %v5879_v3  ;;  %v7721_v59 = vand.u32 4294901760, %v5879_v3 }
 0x106   :  { %4132 = vmatprep.mubr.f32.mxu1 %v5435_v44  ;;  %v330_v21 = vadd.f32 %v329_v47, %v5852_v41  ;;  %v5917_v47 = vand.u32 4294901760, %v2000_v58 }
 0x107   :  { %8151 = vst [vmem:[#allocation45_spill] sm:$0xff] %v5856_v8  ;;  %v5864_v55 = vpop.f32.mrf.mxu0  ;;  %v7722_v53 = vand.u32 4294901760, %v5856_v8  ;;  %v2503_v16 = vsub.f32 %v5879_v3, %v7721_v59 }
 0x108   :  { %8160 = vst [vmem:[#allocation17_spill] sm:$0xff] %v5917_v47 }
 0x109   :  { %v340_v31 = vpop.f32.mrf.mxu0  ;;  %4133 = vmatmul.mubr.f32.gmra.mxu1 %v5435_v44  ;;  %v2384_v23 = vsub.f32 %v5856_v8, %v7722_v53  ;;  %v2001_v44 = vld [vmem:[%s7563_s3 + $0xc8] sm:$0xff]  ;;  %v5958_v53 = vand.u32 4294901760, %v1999_v26 }
 0x10a   :  { %v5899_v15 = vand.u32 4294901760, %v2001_v44  ;;  %v341_v45 = vadd.f32 %v340_v31, %v5852_v41  ;;  %v7726_v31 = vand.u32 4294901760, %v5912_v14 }
 0x10b   :  { %v5895_v9 = vpop.f32.mrf.mxu0  ;;  %v2385_v2 = vand.u32 4294901760, %v2384_v23  ;;  %v2504_v23 = vand.u32 4294901760, %v2503_v16  ;;  %8164 = vst [vmem:[#allocation9_spill] sm:$0xff] %v5958_v53 }
 0x10c   :  { %8156 = vst [vmem:[#allocation53_spill] sm:$0xff] %v5899_v15  ;;  %4146 = vmatprep.subr.mxu0 %v5899_v15  ;;  %v5915_v54 = vsub.f32 %v2001_v44, %v5899_v15  ;;  %v2398_v22 = vsub.f32 %v5912_v14, %v7726_v31  ;;  %v1982_v31 = vld [vmem:[%s7563_s3 + $0x30] sm:$0xff] }
 0x10d   :  { %v351_v42 = vpop.f32.mrf.mxu0  ;;  %v726_v48 = vpop.f32.mrf.mxu1  ;;  %4223 = vmatpush3.msra.mxu1 %v2385_v2  ;;  %4147 = vmatpush3.msra.mxu0 %v5901_v20  ;;  %v5946_v2 = vsub.f32 %v1984_v32, %v5929_v57  ;;  %v5996_v5 = vand.u32 4294901760, %v1982_v31 }
 0x10e   :  { %8159 = vst [vmem:[#allocation7_spill] sm:$0xff] %v5915_v54  ;;  %v5923_v40 = vadd.f32 %v726_v48, %v330_v21  ;;  %v7725_v44 = vand.u32 4294901760, %v5915_v54  ;;  %4148 = vmatprep.subr.mxu0 %v5917_v47  ;;  %v5939_v21 = vsub.f32 %v2000_v58, %v5917_v47  ;;  %v1983_v48 = vld [vmem:[%s7563_s3 + $0x38] sm:$0xff]  ;;  %4224 = vmatprep.subr.mxu1 %v2504_v23 }
 0x10f   :  { %v5931_v30 = vpop.f32.mrf.mxu0  ;;  %v5933_v37 = vpop.f32.mrf.mxu1  ;;  %4149 = vmatpush3.msra.mxu0 %v5929_v57  ;;  %8163 = vst [vmem:[#allocation54_spill] sm:$0xff] %v5946_v2  ;;  %v352_v32 = vadd.f32 %v351_v42, %v5852_v41  ;;  %4225 = vmatpush3.msra.mxu1 %v2392_v11  ;;  %v7735_v19 = vand.u32 4294901760, %v5946_v2  ;;  %v5964_v23 = vand.u32 4294901760, %v1983_v48  ;;  %v5981_v11 = vsub.f32 %v1999_v26, %v5958_v53 }
 0x110   :  { %8162 = vst [vmem:[#allocation57_spill] sm:$0xff] %v5939_v21  ;;  %v2510_v58 = vsub.f32 %v5915_v54, %v7725_v44  ;;  %v7731_v59 = vand.u32 4294901760, %v5939_v21  ;;  %v1998_v44 = vld [vmem:[%s7563_s3 + $0xb0] sm:$0xff]  ;;  %4150 = vmatprep.subr.mxu0 %v5958_v53  ;;  %8169 = vst [vmem:[#allocation24_spill] sm:$0xff] %v5996_v5  ;;  %v6014_v39 = vsub.f32 %v1982_v31, %v5996_v5 }
 0x111   :  { %v362_v16 = vpop.f32.mrf.mxu0  ;;  %v733_v17 = vpop.f32.mrf.mxu1  ;;  %8165 = vst [vmem:[#allocation20_spill] sm:$0xff] %v5964_v23  ;;  %8166 = vst [vmem:[#allocation10_spill] sm:$0xff] %v5981_v11  ;;  %v2405_v12 = vsub.f32 %v5946_v2, %v7735_v19  ;;  %4151 = vmatpush3.msra.mxu0 %v5964_v23  ;;  %v5988_v29 = vsub.f32 %v1983_v48, %v5964_v23  ;;  %v7746_v26 = vand.u32 4294901760, %v5981_v11  ;;  %v5994_v0 = vand.u32 4294901760, %v1998_v44  ;;  %v1981_v19 = vld [vmem:[%s7563_s3 + $0x28] sm:$0xff] }
 0x112   :  { %v5961_v63 = vadd.f32 %v733_v17, %v341_v45  ;;  %v2511_v42 = vand.u32 4294901760, %v2510_v58  ;;  %v2399_v17 = vand.u32 4294901760, %v2398_v22  ;;  %v2517_v45 = vsub.f32 %v5939_v21, %v7731_v59  ;;  %v1997_v58 = vld [vmem:[%s7563_s3 + $0xa8] sm:$0xff]  ;;  %8170 = vst [vmem:[#allocation12_spill] sm:$0xff] %v6014_v39 }
 0x113   :  { %v5972_v50 = vpop.f32.mrf.mxu0  ;;  %v5974_v60 = vpop.f32.mrf.mxu1  ;;  %8167 = vst [vmem:[#allocation60_spill] sm:$0xff] %v5988_v29  ;;  %8168 = vst [vmem:[#allocation56_spill] sm:$0xff] %v5994_v0  ;;  %v363_v48 = vadd.f32 %v362_v16, %v5852_v41  ;;  %v2406_v21 = vand.u32 4294901760, %v2405_v12  ;;  %v7749_v14 = vand.u32 4294901760, %v5988_v29  ;;  %v2524_v54 = vsub.f32 %v5981_v11, %v7746_v26  ;;  %4152 = vmatprep.subr.mxu0 %v5994_v0 }
 0x114   :  { %4226 = vmatprep.subr.mxu1 %v2511_v42  ;;  %v2518_v25 = vand.u32 4294901760, %v2517_v45  ;;  %v6019_v12 = vand.u32 4294901760, %v1997_v58  ;;  %4153 = vmatpush3.msra.mxu0 %v5996_v5 }
 0x115   :  { %v373_v22 = vpop.f32.mrf.mxu0  ;;  %v740_v59 = vpop.f32.mrf.mxu1  ;;  %4227 = vmatpush3.msra.mxu1 %v2399_v17  ;;  %v2412_v16 = vsub.f32 %v5988_v29, %v7749_v14  ;;  %v2525_v26 = vand.u32 4294901760, %v2524_v54  ;;  %v1980_v14 = vld [vmem:[%s7563_s3 + $0x20] sm:$0xff] }
 0x116   :  { %v6002_v2 = vadd.f32 %v740_v59, %v352_v32  ;;  %4228 = vmatprep.subr.mxu1 %v2518_v25  ;;  %v6017_v59 = vsub.f32 %v1998_v44, %v5994_v0  ;;  %8172 = vst [vmem:[#allocation59_spill] sm:$0xff] %v6019_v12  ;;  %v6025_v25 = vand.u32 4294901760, %v1981_v19  ;;  %v1996_v32 = vld [vmem:[%s7563_s3 + $0xa0] sm:$0xff]  ;;  %4154 = vmatprep.subr.mxu0 %v6019_v12  ;;  %v8177_v0 = vand.u32 4294901760, %v6014_v39 }
 0x117   :  { %v6005_v42 = vpop.f32.mrf.mxu0  ;;  %v6007_v45 = vpop.f32.mrf.mxu1  ;;  %4229 = vmatpush3.msra.mxu1 %v2406_v21  ;;  %v6034_v21 = vsub.f32 %v1997_v58, %v6019_v12  ;;  %v374_v29 = vadd.f32 %v373_v22, %v5852_v41  ;;  %v2413_v3 = vand.u32 4294901760, %v2412_v16  ;;  %v6057_v16 = vand.u32 4294901760, %v1996_v32 }
 0x118   :  { %8171 = vst [vmem:[#allocation63_spill] sm:$0xff] %v6017_v59  ;;  %8173 = vst [vmem:[#allocation67_spill] sm:$0xff] %v6025_v25  ;;  %4155 = vmatpush3.msra.mxu0 %v6025_v25  ;;  %v6044_v54 = vsub.f32 %v1981_v19, %v6025_v25  ;;  %4230 = vmatprep.subr.mxu1 %v2525_v26  ;;  %v8176_v58 = vand.u32 4294901760, %v6017_v59  ;;  %v2419_v22 = vsub.f32 %v6014_v39, %v8177_v0  ;;  %v1995_v26 = vld [vmem:[%s7563_s3 + $0x98] sm:$0xff] }
 0x119   :  { %v384_v31 = vpop.f32.mrf.mxu0  ;;  %v747_v17 = vpop.f32.mrf.mxu1  ;;  %8174 = vst [vmem:[#allocation62_spill] sm:$0xff] %v6034_v21  ;;  %8178 = vst [vmem:[#allocation66_spill] sm:$0xff] %v6057_v16  ;;  %4231 = vmatpush3.msra.mxu1 %v2413_v3  ;;  %4156 = vmatprep.subr.mxu0 %v6057_v16  ;;  %v6073_v19 = vsub.f32 %v1996_v32, %v6057_v16 }
 0x11a   :  { %v6040_v5 = vadd.f32 %v747_v17, %v363_v48  ;;  %8175 = vst [vmem:[#allocation69_spill] sm:$0xff] %v6044_v54  ;;  %v2531_v12 = vsub.f32 %v6017_v59, %v8176_v58  ;;  %v7774_v48 = vand.u32 4294901760, %v6034_v21  ;;  %v6060_v17 = vand.u32 4294901760, %v1980_v14  ;;  %v1979_v58 = vld [vmem:[%s7563_s3 + $0x18] sm:$0xff] }
 0x11b   :  { %v6046_v11 = vpop.f32.mrf.mxu0  ;;  %v6048_v44 = vpop.f32.mrf.mxu1  ;;  %v2420_v39 = vand.u32 4294901760, %v2419_v22  ;;  %8180 = vst [vmem:[#allocation18_spill] sm:$0xff] %v6073_v19  ;;  %v385_v8 = vadd.f32 %v384_v31, %v5852_v41  ;;  %v8181_v7 = vand.u32 4294901760, %v6044_v54  ;;  %v1994_v22 = vld [vmem:[%s7563_s3 + $0x90] sm:$0xff]  ;;  %v6093_v31 = vand.u32 4294901760, %v1995_v26 }
 0x11c   :  { %8179 = vst [vmem:[#allocation68_spill] sm:$0xff] %v6060_v17  ;;  %v2532_v0 = vand.u32 4294901760, %v2531_v12  ;;  %v2538_v3 = vsub.f32 %v6034_v21, %v7774_v48  ;;  %4157 = vmatpush3.msra.mxu0 %v6060_v17  ;;  %v6083_v12 = vsub.f32 %v1980_v14, %v6060_v17  ;;  %v1978_v14 = vld [vmem:[%s7563_s3 + $0x10] sm:$0xff]  ;;  %v6111_v34 = vand.u32 4294901760, %v1994_v22 }
 0x11d   :  { %v395_v59 = vpop.f32.mrf.mxu0  ;;  %v754_v25 = vpop.f32.mrf.mxu1  ;;  %v2426_v13 = vsub.f32 %v6044_v54, %v8181_v7  ;;  %8183 = vst [vmem:[#allocation21_spill] sm:$0xff] %v6093_v31  ;;  %v6095_v7 = vand.u32 4294901760, %v1979_v58  ;;  %4158 = vmatprep.subr.mxu0 %v6093_v31 }
 0x11e   :  { %v6076_v23 = vadd.f32 %v754_v25, %v374_v29  ;;  %8182 = vst [vmem:[#allocation29_spill] sm:$0xff] %v6083_v12  ;;  %4232 = vmatprep.subr.mxu1 %v2532_v0  ;;  %v2539_v29 = vand.u32 4294901760, %v2538_v3  ;;  %v7787_v25 = vand.u32 4294901760, %v6073_v19  ;;  %v7790_v21 = vand.u32 4294901760, %v6083_v12  ;;  %8187 = vst [vmem:[#allocation36_spill] sm:$0xff] %v6111_v34 }
 0x11f   :  { %v6088_v48 = vpop.f32.mrf.mxu0  ;;  %v6090_v32 = vpop.f32.mrf.mxu1  ;;  %8184 = vst [vmem:[#allocation30_spill] sm:$0xff] %v6095_v7  ;;  %4233 = vmatpush3.msra.mxu1 %v2420_v39  ;;  %v2427_v54 = vand.u32 4294901760, %v2426_v13  ;;  %v6106_v3 = vsub.f32 %v1995_v26, %v6093_v31  ;;  %v6109_v36 = vsub.f32 %v1979_v58, %v6095_v7  ;;  %v396_v13 = vadd.f32 %v395_v59, %v5852_v41  ;;  %v1993_v26 = vld [vmem:[%s7563_s3 + $0x88] sm:$0xff] }
 0x120   :  { %4234 = vmatprep.subr.mxu1 %v2539_v29  ;;  %v2545_v0 = vsub.f32 %v6073_v19, %v7787_v25  ;;  %v2433_v29 = vsub.f32 %v6083_v12, %v7790_v21  ;;  %4159 = vmatpush3.msra.mxu0 %v6095_v7  ;;  %v6120_v25 = vand.u32 4294901760, %v1978_v14  ;;  %v1977_v21 = vld [vmem:[%s7563_s3 + $0x8] sm:$0xff]  ;;  %v6149_v10 = vand.u32 4294901760, %v1993_v26 }
 0x121   :  { %v406_v17 = vpop.f32.mrf.mxu0  ;;  %v761_v16 = vpop.f32.mrf.mxu1  ;;  %8185 = vst [vmem:[#allocation31_spill] sm:$0xff] %v6106_v3  ;;  %8186 = vst [vmem:[#allocation11_spill] sm:$0xff] %v6109_v36  ;;  %4235 = vmatpush3.msra.mxu1 %v2427_v54  ;;  %v7806_v54 = vand.u32 4294901760, %v6109_v36  ;;  %4160 = vmatprep.subr.mxu0 %v6111_v34 }
 0x122   :  { %v6114_v39 = vadd.f32 %v761_v16, %v385_v8  ;;  %8188 = vst [vmem:[#allocation38_spill] sm:$0xff] %v6120_v25  ;;  %v2546_v59 = vand.u32 4294901760, %v2545_v0  ;;  %v7805_v8 = vand.u32 4294901760, %v6106_v3  ;;  %v6132_v16 = vsub.f32 %v1994_v22, %v6111_v34  ;;  %4161 = vmatpush3.msra.mxu0 %v6120_v25  ;;  %8191 = vst [vmem:[#allocation44_spill] sm:$0xff] %v6149_v10 }
 0x123   :  { %v6125_v58 = vpop.f32.mrf.mxu0  ;;  %v6127_v19 = vpop.f32.mrf.mxu1  ;;  %v2434_v12 = vand.u32 4294901760, %v2433_v29  ;;  %v6139_v7 = vsub.f32 %v1978_v14, %v6120_v25  ;;  %v2440_v34 = vsub.f32 %v6109_v36, %v7806_v54  ;;  %v407_v14 = vadd.f32 %v406_v17, %v5852_v41  ;;  %v1976_v54 = vld [vmem:[%s7563_s3] sm:$0xff]  ;;  %4162 = vmatprep.subr.mxu0 %v6149_v10 }
 0x124   :  { %8189 = vst [vmem:[#allocation41_spill] sm:$0xff] %v6132_v16  ;;  %4236 = vmatprep.subr.mxu1 %v2546_v59  ;;  %v2552_v22 = vsub.f32 %v6106_v3, %v7805_v8  ;;  %v6155_v59 = vand.u32 4294901760, %v1977_v21  ;;  %v1992_v8 = vld [vmem:[%s7563_s3 + $0x80] sm:$0xff]  ;;  %v6171_v25 = vsub.f32 %v1993_v26, %v6149_v10  ;;  %v6184_v26 = vand.u32 4294901760, %v1976_v54 }
 0x125   :  { %8190 = vst [vmem:[#allocation43_spill] sm:$0xff] %v6139_v7  ;;  %v417_v0 = vpop.f32.mrf.mxu0  ;;  %v768_v31 = vpop.f32.mrf.mxu1  ;;  %4237 = vmatpush3.msra.mxu1 %v2434_v12  ;;  %v8193_v12 = vand.u32 4294901760, %v6132_v16  ;;  %v8195_v3 = vand.u32 4294901760, %v6139_v7 }
 0x126   :  { %v6152_v29 = vadd.f32 %v768_v31, %v396_v13  ;;  %8192 = vst [vmem:[#allocation46_spill] sm:$0xff] %v6155_v59  ;;  %v2553_v17 = vand.u32 4294901760, %v2552_v22  ;;  %v2441_v31 = vand.u32 4294901760, %v2440_v34  ;;  %8194 = vst [vmem:[#allocation47_spill] sm:$0xff] %v6171_v25  ;;  %v6178_v52 = vsub.f32 %v1977_v21, %v6155_v59  ;;  %4163 = vmatpush3.msra.mxu0 %v6155_v59 }
 0x127   :  { %v6163_v53 = vpop.f32.mrf.mxu0  ;;  %v6165_v36 = vpop.f32.mrf.mxu1  ;;  %v2559_v13 = vsub.f32 %v6132_v16, %v8193_v12  ;;  %v2447_v57 = vsub.f32 %v6139_v7, %v8195_v3  ;;  %v7827_v12 = vand.u32 4294901760, %v6171_v25  ;;  %v6182_v16 = vand.u32 4294901760, %v1992_v8  ;;  %8198 = vst [vmem:[#allocation58_spill] sm:$0xff] %v6184_v26 }
 0x128   :  { %8196 = vst [vmem:[#allocation50_spill] sm:$0xff] %v6178_v52  ;;  %4238 = vmatprep.subr.mxu1 %v2553_v17  ;;  %v418_v10 = vadd.f32 %v417_v0, %v5852_v41  ;;  %v7832_v21 = vand.u32 4294901760, %v6178_v52  ;;  %v6201_v0 = vsub.f32 %v1976_v54, %v6184_v26 }
 0x129   :  { %v428_v22 = vpop.f32.mrf.mxu0  ;;  %v775_v34 = vpop.f32.mrf.mxu1  ;;  %v2560_v47 = vand.u32 4294901760, %v2559_v13  ;;  %8197 = vst [vmem:[#allocation55_spill] sm:$0xff] %v6182_v16  ;;  %4239 = vmatpush3.msra.mxu1 %v2441_v31  ;;  %v2448_v3 = vand.u32 4294901760, %v2447_v57  ;;  %v2566_v17 = vsub.f32 %v6171_v25, %v7827_v12  ;;  %v6198_v13 = vsub.f32 %v1992_v8, %v6182_v16  ;;  %4164 = vmatprep.subr.mxu0 %v6182_v16 }
 0x12a   :  { %v6187_v18 = vadd.f32 %v775_v34, %v407_v14  ;;  %8200 = vst [vmem:[#allocation64_spill] sm:$0xff] %v6201_v0  ;;  %v2454_v57 = vsub.f32 %v6178_v52, %v7832_v21  ;;  %4165 = vmatpush3.msra.mxu0 %v6184_v26  ;;  %v7841_v8 = vand.u32 4294901760, %v6201_v0  ;;  %v429_v54 = vadd.f32 %v428_v22, %v5852_v41 }
 0x12b   :  { %v6190_v7 = vpop.f32.mrf.mxu0  ;;  %v6192_v59 = vpop.f32.mrf.mxu1  ;;  %4240 = vmatprep.subr.mxu1 %v2560_v47  ;;  %8199 = vst [vmem:[#allocation61_spill] sm:$0xff] %v6198_v13  ;;  %v2567_v31 = vand.u32 4294901760, %v2566_v17  ;;  %v7838_v34 = vand.u32 4294901760, %v6198_v13  ;;  %4294 = vmatprep.subr.mxu0 %v5726_v38 }
 0x12c   :  { %4241 = vmatpush3.msra.mxu1 %v2448_v3  ;;  %v2455_v3 = vand.u32 4294901760, %v2454_v57  ;;  %v2461_v21 = vsub.f32 %v6201_v0, %v7841_v8 }
 0x12d   :  { %v439_v47 = vpop.f32.mrf.mxu0  ;;  %v782_v14 = vpop.f32.mrf.mxu1  ;;  %4242 = vmatprep.subr.mxu1 %v2567_v31  ;;  %v2573_v17 = vsub.f32 %v6198_v13, %v7838_v34 }
 0x12e   :  { %v6212_v12 = vadd.f32 %v782_v14, %v418_v10  ;;  %4243 = vmatpush3.msra.mxu1 %v2455_v3  ;;  %v2462_v10 = vand.u32 4294901760, %v2461_v21  ;;  %v440_v57 = vadd.f32 %v439_v47, %v5852_v41 }
 0x12f   :  { %v6214_v25 = vpop.f32.mrf.mxu0  ;;  %v6216_v16 = vpop.f32.mrf.mxu1  ;;  %v2574_v22 = vand.u32 4294901760, %v2573_v17 }
 0x131   :  { %v450_v38 = vpop.f32.mrf.mxu0  ;;  %v789_v26 = vpop.f32.mrf.mxu1  ;;  %4244 = vmatprep.subr.mxu1 %v2574_v22 }
 0x132   :  { %v6225_v14 = vadd.f32 %v789_v26, %v429_v54  ;;  %4245 = vmatpush3.msra.mxu1 %v2462_v10  ;;  %v451_v3 = vadd.f32 %v450_v38, %v5852_v41 }
 0x133   :  { %v6227_v52 = vpop.f32.mrf.mxu0  ;;  %v6229_v31 = vpop.f32.mrf.mxu1  ;;  %4374 = vmatprep.subr.mxu1 %v5716_v33 }
 0x135   :  { %v461_v34 = vpop.f32.mrf.mxu0  ;;  %v796_v13 = vpop.f32.mrf.mxu1 }
 0x136   :  { %v462_v8 = vadd.f32 %v461_v34, %v5852_v41  ;;  %v6234_v17 = vadd.f32 %v796_v13, %v440_v57 }
 0x137   :  { %v6236_v21 = vpop.f32.mrf.mxu0  ;;  %v6238_v26 = vpop.f32.mrf.mxu1 }
 0x139   :  { %v472_v47 = vpop.f32.mrf.mxu0  ;;  %v803_v54 = vpop.f32.mrf.mxu1 }
 0x13a   :  { %v473_v0 = vadd.f32 %v472_v47, %v5852_v41  ;;  %v6241_v22 = vadd.f32 %v803_v54, %v451_v3 }
 0x13b   :  { %v6243_v10 = vpop.f32.mrf.mxu0  ;;  %v6245_v27 = vpop.f32.mrf.mxu1 }
 0x13d   :  { %v483_v33 = vpop.f32.mrf.mxu0  ;;  %v810_v38 = vpop.f32.mrf.mxu1 }
 0x13e   :  { %v484_v34 = vadd.f32 %v483_v33, %v5852_v41  ;;  %v6248_v13 = vadd.f32 %v810_v38, %v462_v8 }
 0x13f   :  { %v6250_v57 = vpop.f32.mrf.mxu0  ;;  %v6252_v20 = vpop.f32.mrf.mxu1 }
 0x140   :  { %8201 = vst [vmem:[#allocation65_spill] sm:$0xff] %v6252_v20 }
 0x141   :  { %v494_v15 = vpop.f32.mrf.mxu0  ;;  %v817_v56 = vpop.f32.mrf.mxu1 }
 0x142   :  { %v495_v47 = vadd.f32 %v494_v15, %v5852_v41  ;;  %v6255_v3 = vadd.f32 %v817_v56, %v473_v0 }
 0x143   :  { %v6257_v54 = vpop.f32.mrf.mxu0  ;;  %v6259_v49 = vpop.f32.mrf.mxu1 }
 0x144   :  { %8202 = vst [vmem:[#allocation70_spill] sm:$0xff] %v6257_v54  ;;  %8203 = vst [vmem:[#allocation71_spill] sm:$0xff] %v6259_v49 }
 0x145   :  { %v824_v62 = vpop.f32.mrf.mxu1  ;;  %v6261_v1 = vpop.f32.mrf.mxu0 }
 0x146   :  { %v6263_v33 = vadd.f32 %v824_v62, %v484_v34 }
 0x147   :  { %v6265_v8 = vpop.f32.mrf.mxu1  ;;  %v6267_v38 = vpop.f32.mrf.mxu0 }
 0x148   :  { %8204 = vst [vmem:[#allocation72_spill] sm:$0xff] %v6265_v8 }
 0x149   :  { %v831_v28 = vpop.f32.mrf.mxu1  ;;  %v976_v43 = vpop.f32.mrf.mxu0 }
 0x14a   :  { %v6269_v46 = vadd.f32 %v831_v28, %v495_v47  ;;  %v977_v41 = vadd.f32 %v976_v43, %v5961_v63 }
 0x14b   :  { %v6272_v56 = vpop.f32.mrf.mxu1  ;;  %v6274_v15 = vpop.f32.mrf.mxu0 }
 0x14c   :  { %8205 = vst [vmem:[#allocation73_spill] sm:$0xff] %v6272_v56 }
 0x14d   :  { %v984_v0 = vpop.f32.mrf.mxu0  ;;  %v6276_v24 = vpop.f32.mrf.mxu1 }
 0x14e   :  { %v985_v62 = vadd.f32 %v984_v0, %v6002_v2 }
 0x14f   :  { %v6279_v34 = vpop.f32.mrf.mxu0  ;;  %v6281_v4 = vpop.f32.mrf.mxu1 }
 0x150   :  { %8206 = vst [vmem:[#allocation74_spill] sm:$0xff] %v6279_v34 }
 0x151   :  { %v992_v61 = vpop.f32.mrf.mxu0  ;;  %v1203_v6 = vpop.f32.mrf.mxu1 }
 0x152   :  { %v993_v28 = vadd.f32 %v992_v61, %v6040_v5  ;;  %v6284_v47 = vadd.f32 %v1203_v6, %v977_v41 }
 0x153   :  { %v6286_v43 = vpop.f32.mrf.mxu0  ;;  %v6288_v63 = vpop.f32.mrf.mxu1 }
 0x154   :  { %8207 = vst [vmem:[#allocation75_spill] sm:$0xff] %v6284_v47  ;;  %8208 = vst [vmem:[#allocation76_spill] sm:$0xff] %v6286_v43 }
 0x155   :  { %v1000_v56 = vpop.f32.mrf.mxu0  ;;  %v1212_v8 = vpop.f32.mrf.mxu1 }
 0x156   :  { %v1001_v49 = vadd.f32 %v1000_v56, %v6076_v23  ;;  %v6291_v54 = vadd.f32 %v1212_v8, %v985_v62 }
 0x157   :  { %v6293_v2 = vpop.f32.mrf.mxu0  ;;  %v6295_v0 = vpop.f32.mrf.mxu1 }
 0x158   :  { %8209 = vst [vmem:[#allocation77_spill] sm:$0xff] %v6291_v54  ;;  %8210 = vst [vmem:[#allocation78_spill] sm:$0xff] %v6295_v0 }
 0x159   :  { %v1008_v34 = vpop.f32.mrf.mxu0  ;;  %v1221_v20 = vpop.f32.mrf.mxu1 }
 0x15a   :  { %v1009_v5 = vadd.f32 %v1008_v34, %v6114_v39  ;;  %v6298_v6 = vadd.f32 %v1221_v20, %v993_v28 }
 0x15b   :  { %v6300_v61 = vpop.f32.mrf.mxu0  ;;  %v6302_v41 = vpop.f32.mrf.mxu1 }
 0x15c   :  { %8211 = vst [vmem:[#allocation79_spill] sm:$0xff] %v6298_v6  ;;  %8212 = vst [vmem:[#allocation80_spill] sm:$0xff] %v6302_v41 }
 0x15d   :  { %v1016_v43 = vpop.f32.mrf.mxu0  ;;  %v1230_v47 = vpop.f32.mrf.mxu1 }
 0x15e   :  { %v1017_v23 = vadd.f32 %v1016_v43, %v6152_v29  ;;  %v6305_v8 = vadd.f32 %v1230_v47, %v1001_v49 }
 0x15f   :  { %v6307_v56 = vpop.f32.mrf.mxu0  ;;  %v6309_v62 = vpop.f32.mrf.mxu1 }
 0x160   :  { %8213 = vst [vmem:[#allocation81_spill] sm:$0xff] %v6305_v8  ;;  %8214 = vst [vmem:[#allocation82_spill] sm:$0xff] %v6309_v62 }
 0x161   :  { %v1024_v54 = vpop.f32.mrf.mxu0  ;;  %v1239_v0 = vpop.f32.mrf.mxu1 }
 0x162   :  { %v1025_v39 = vadd.f32 %v1024_v54, %v6187_v18  ;;  %v6312_v20 = vadd.f32 %v1239_v0, %v1009_v5 }
 0x163   :  { %v6314_v34 = vpop.f32.mrf.mxu0  ;;  %v6316_v28 = vpop.f32.mrf.mxu1 }
 0x164   :  { %8215 = vst [vmem:[#allocation83_spill] sm:$0xff] %v6312_v20  ;;  %8216 = vst [vmem:[#allocation84_spill] sm:$0xff] %v6316_v28 }
 0x165   :  { %v1032_v6 = vpop.f32.mrf.mxu0  ;;  %v1248_v41 = vpop.f32.mrf.mxu1 }
 0x166   :  { %v1033_v29 = vadd.f32 %v1032_v6, %v6212_v12  ;;  %v6319_v49 = vadd.f32 %v1248_v41, %v1017_v23 }
 0x167   :  { %v6321_v47 = vpop.f32.mrf.mxu0  ;;  %v6323_v43 = vpop.f32.mrf.mxu1 }
 0x168   :  { %8217 = vst [vmem:[#allocation85_spill] sm:$0xff] %v6319_v49  ;;  %8218 = vst [vmem:[#allocation86_spill] sm:$0xff] %v6323_v43 }
 0x169   :  { %v1040_v8 = vpop.f32.mrf.mxu0  ;;  %v1257_v62 = vpop.f32.mrf.mxu1 }
 0x16a   :  { %v1041_v18 = vadd.f32 %v1040_v8, %v6225_v14  ;;  %v6326_v54 = vadd.f32 %v1257_v62, %v1025_v39 }
 0x16b   :  { %v6328_v0 = vpop.f32.mrf.mxu0  ;;  %v6330_v5 = vpop.f32.mrf.mxu1 }
 0x16c   :  { %8219 = vst [vmem:[#allocation87_spill] sm:$0xff] %v6326_v54  ;;  %8220 = vst [vmem:[#allocation88_spill] sm:$0xff] %v6330_v5 }
 0x16d   :  { %v1048_v20 = vpop.f32.mrf.mxu0  ;;  %v1266_v28 = vpop.f32.mrf.mxu1 }
 0x16e   :  { %v1049_v12 = vadd.f32 %v1048_v20, %v6234_v17  ;;  %v6333_v6 = vadd.f32 %v1266_v28, %v1033_v29 }
 0x16f   :  { %v6335_v41 = vpop.f32.mrf.mxu0  ;;  %v6337_v23 = vpop.f32.mrf.mxu1 }
 0x170   :  { %8221 = vst [vmem:[#allocation89_spill] sm:$0xff] %v6333_v6  ;;  %8222 = vst [vmem:[#allocation90_spill] sm:$0xff] %v6337_v23 }
 0x171   :  { %v1056_v49 = vpop.f32.mrf.mxu0  ;;  %v1275_v43 = vpop.f32.mrf.mxu1 }
 0x172   :  { %v1057_v14 = vadd.f32 %v1056_v49, %v6241_v22  ;;  %v6340_v8 = vadd.f32 %v1275_v43, %v1041_v18 }
 0x173   :  { %v6342_v62 = vpop.f32.mrf.mxu0  ;;  %v6344_v39 = vpop.f32.mrf.mxu1 }
 0x174   :  { %8223 = vst [vmem:[#allocation91_spill] sm:$0xff] %v6340_v8  ;;  %8224 = vst [vmem:[#allocation92_spill] sm:$0xff] %v6344_v39 }
 0x175   :  { %v1064_v54 = vpop.f32.mrf.mxu0  ;;  %v1284_v5 = vpop.f32.mrf.mxu1 }
 0x176   :  { %v1065_v17 = vadd.f32 %v1064_v54, %v6248_v13  ;;  %v6347_v20 = vadd.f32 %v1284_v5, %v1049_v12  ;;  %v77_v13 = vsub.s32 1, %v5784_v35 }
 0x177   :  { %v6349_v28 = vpop.f32.mrf.mxu0  ;;  %v6351_v29 = vpop.f32.mrf.mxu1 }
 0x178   :  { %8225 = vst [vmem:[#allocation93_spill] sm:$0xff] %v6347_v20  ;;  %8226 = vst [vmem:[#allocation94_spill] sm:$0xff] %v6351_v29 }
 0x179   :  { %v1072_v6 = vpop.f32.mrf.mxu0  ;;  %v1293_v23 = vpop.f32.mrf.mxu1 }
 0x17a   :  { %v1073_v22 = vadd.f32 %v1072_v6, %v6255_v3  ;;  %v6354_v49 = vadd.f32 %v1293_v23, %v1057_v14  ;;  %v78_v6 = vrot.slane %v5831_v51, %v77_v13 }
 0x17b   :  { %v6356_v43 = vpop.f32.mrf.mxu0  ;;  %v6358_v18 = vpop.f32.mrf.mxu1 }
 0x17c   :  { %8227 = vst [vmem:[#allocation95_spill] sm:$0xff] %v6354_v49  ;;  %8228 = vst [vmem:[#allocation96_spill] sm:$0xff] %v6358_v18  ;;  %v365_v51 = vadd.f32 %v5972_v50, %v78_v6  ;;  %v398_v50 = vadd.f32 %v6088_v48, %v78_v6 }
 0x17d   :  { %v1080_v8 = vpop.f32.mrf.mxu0  ;;  %v1302_v39 = vpop.f32.mrf.mxu1 }
 0x17e   :  { %v1081_v54 = vadd.f32 %v1080_v8, %v6263_v33  ;;  %v6362_v5 = vadd.f32 %v1302_v39, %v1065_v17  ;;  %v332_v8 = vadd.f32 %v5864_v55, %v78_v6  ;;  %v343_v39 = vadd.f32 %v5895_v9, %v78_v6 }
 0x17f   :  { %v6364_v12 = vpop.f32.mrf.mxu0  ;;  %v6366_v20 = vpop.f32.mrf.mxu1  ;;  %v969_v55 = vadd.f32 %v6261_v1, %v5923_v40 }
 0x180   :  { %8229 = vst [vmem:[#allocation97_spill] sm:$0xff] %v6362_v5  ;;  %v354_v5 = vadd.f32 %v5931_v30, %v78_v6  ;;  %v750_v30 = vadd.f32 %v6048_v44, %v365_v51 }
 0x181   :  { %v1088_v29 = vpop.f32.mrf.mxu0  ;;  %v1311_v3 = vpop.f32.mrf.mxu1 }
 0x182   :  { %v1089_v23 = vadd.f32 %v1088_v29, %v6269_v46  ;;  %v6370_v14 = vadd.f32 %v1311_v3, %v1073_v22  ;;  %v729_v29 = vadd.f32 %v5933_v37, %v332_v8  ;;  %v736_v22 = vadd.f32 %v5974_v60, %v343_v39 }
 0x183   :  { %v6372_v49 = vpop.f32.mrf.mxu0  ;;  %v6374_v18 = vpop.f32.mrf.mxu1  ;;  %v376_v3 = vadd.f32 %v6005_v42, %v78_v6  ;;  %v743_v9 = vadd.f32 %v6007_v45, %v354_v5  ;;  %v1195_v60 = vadd.f32 %v6276_v24, %v969_v55  ;;  %v431_v45 = vadd.f32 %v6190_v7, %v78_v6  ;;  %v8234_v55 = vld [vmem:[#allocation71_spill] sm:$0xff] }
 0x184   :  { %8230 = vst [vmem:[#allocation98_spill] sm:$0xff] %v6370_v14  ;;  %v409_v14 = vadd.f32 %v6125_v58, %v78_v6  ;;  %v971_v37 = vadd.f32 %v6267_v38, %v729_v29  ;;  %v771_v5 = vadd.f32 %v6165_v36, %v398_v50  ;;  %v464_v39 = vadd.f32 %v6236_v21, %v78_v6  ;;  %v8236_v50 = vld [vmem:[#allocation75_spill] sm:$0xff] }
 0x185   :  { %v1320_v35 = vpop.f32.mrf.mxu1  ;;  %v1497_v33 = vpop.f32.mrf.mxu0  ;;  %v757_v1 = vadd.f32 %v6090_v32, %v376_v3  ;;  %v979_v51 = vadd.f32 %v6274_v15, %v736_v22 }
 0x186   :  { %v6378_v17 = vadd.f32 %v1320_v35, %v1081_v54  ;;  %v387_v54 = vadd.f32 %v6046_v11, %v78_v6  ;;  %v420_v11 = vadd.f32 %v6163_v53, %v78_v6  ;;  %v778_v58 = vadd.f32 %v6192_v59, %v409_v14 }
 0x187   :  { %v6382_v13 = vpop.f32.mrf.mxu1  ;;  %v1499_v46 = vpop.f32.mrf.mxu0  ;;  %v1197_v38 = vadd.f32 %v6281_v4, %v971_v37  ;;  %v1498_v24 = vadd.f32 %v1497_v33, %v1195_v60  ;;  %v792_v53 = vadd.f32 %v6229_v31, %v431_v45  ;;  %v475_v59 = vadd.f32 %v6243_v10, %v78_v6  ;;  %v8232_v31 = vld [vmem:[#allocation65_spill] sm:$0xff]  ;;  %v8237_v37 = vld [vmem:[#allocation74_spill] sm:$0xff] }
 0x188   :  { %8231 = vst [vmem:[#allocation99_spill] sm:$0xff] %v6378_v17  ;;  %v764_v40 = vadd.f32 %v6127_v19, %v387_v54  ;;  %v785_v32 = vadd.f32 %v6216_v16, %v420_v11  ;;  %v453_v19 = vadd.f32 %v6227_v52, %v78_v6  ;;  %v486_v16 = vadd.f32 %v6250_v57, %v78_v6  ;;  %v8235_v54 = vld [vmem:[#allocation72_spill] sm:$0xff]  ;;  %v8238_v45 = vld [vmem:[#allocation73_spill] sm:$0xff] }
 0x189   :  { %v1329_v35 = vpop.f32.mrf.mxu1  ;;  %v1504_v17 = vpop.f32.mrf.mxu0  ;;  %v1500_v36 = vadd.f32 %v1499_v46, %v1197_v38  ;;  %v813_v33 = vadd.f32 %v8232_v31, %v464_v39  ;;  %v1206_v3 = vadd.f32 %v6288_v63, %v979_v51  ;;  %v8233_v46 = vld [vmem:[#allocation70_spill] sm:$0xff]  ;;  %v987_v60 = vadd.f32 %v8237_v37, %v743_v9 }
 0x18a   :  { %v6396_v42 = vadd.f32 %v1329_v35, %v1089_v23  ;;  %v442_v23 = vadd.f32 %v6214_v25, %v78_v6  ;;  %v806_v25 = vadd.f32 %v6245_v27, %v453_v19  ;;  %v497_v22 = vadd.f32 %v8233_v46, %v78_v6  ;;  %v8240_v51 = vld [vmem:[#allocation78_spill] sm:$0xff] }
 0x18b   :  { %v6402_v44 = vpop.f32.mrf.mxu1  ;;  %v1506_v48 = vpop.f32.mrf.mxu0  ;;  %v827_v10 = vadd.f32 %v8235_v54, %v486_v16  ;;  %v1505_v27 = vadd.f32 %v1504_v17, %v8236_v50  ;;  %v1003_v6 = vadd.f32 %v6293_v2, %v757_v1  ;;  %v1215_v17 = vadd.f32 %v8240_v51, %v987_v60  ;;  %v8242_v16 = vld [vmem:[#allocation80_spill] sm:$0xff]  ;;  %v8245_v50 = vld [vmem:[#allocation86_spill] sm:$0xff] }
 0x18c   :  { %v799_v4 = vadd.f32 %v6238_v26, %v442_v23  ;;  %v820_v26 = vadd.f32 %v8234_v55, %v475_v59  ;;  %v1507_v11 = vadd.f32 %v1506_v48, %v1206_v3  ;;  %v834_v38 = vadd.f32 %v8238_v45, %v497_v22  ;;  %v8243_v3 = vld [vmem:[#allocation82_spill] sm:$0xff]  ;;  %v8244_v55 = vld [vmem:[#allocation84_spill] sm:$0xff] }
 0x18d   :  { %v1511_v8 = vpop.f32.mrf.mxu0  ;;  %v1706_v7 = vpop.f32.mrf.mxu1  ;;  %v1011_v48 = vadd.f32 %v6300_v61, %v764_v40  ;;  %v1019_v31 = vadd.f32 %v6307_v56, %v771_v5  ;;  %v1027_v46 = vadd.f32 %v6314_v34, %v778_v58  ;;  %v1035_v61 = vadd.f32 %v6321_v47, %v785_v32  ;;  %v8247_v60 = vld [vmem:[#allocation88_spill] sm:$0xff]  ;;  %v8248_v45 = vld [vmem:[#allocation90_spill] sm:$0xff] }
 0x18e   :  { %v6413_v29 = vadd.f32 %v1706_v7, %v1498_v24  ;;  %v8239_v24 = vld [vmem:[#allocation76_spill] sm:$0xff]  ;;  %v1043_v58 = vadd.f32 %v6328_v0, %v792_v53  ;;  %v1067_v0 = vadd.f32 %v6349_v28, %v813_v33 }
 0x18f   :  { %v1513_v52 = vpop.f32.mrf.mxu0  ;;  %v1708_v14 = vpop.f32.mrf.mxu1  ;;  %v995_v23 = vadd.f32 %v8239_v24, %v750_v30  ;;  %v6449_v54 = vadd.f32 %v8244_v55, %v1011_v48  ;;  %v6463_v24 = vadd.f32 %v8248_v45, %v1035_v61 }
 0x190   :  { %v1848_v21 = vmul.f32 0.70710677, %v6413_v29  ;;  %v6422_v15 = vadd.f32 %v1708_v14, %v1500_v36  ;;  %v8241_v36 = vld [vmem:[#allocation77_spill] sm:$0xff]  ;;  %v1514_v40 = vadd.f32 %v1513_v52, %v1215_v17  ;;  %v1816_v55 = vmul.f32 0.5, %v6413_v29 }
 0x191   :  { %v1518_v35 = vpop.f32.mrf.mxu0  ;;  %v1713_v57 = vpop.f32.mrf.mxu1  ;;  %v1512_v59 = vadd.f32 %v1511_v8, %v8241_v36  ;;  %v1224_v14 = vadd.f32 %v8242_v16, %v995_v23  ;;  %v8251_v16 = vld [vmem:[#allocation96_spill] sm:$0xff] }
 0x192   :  { %4617 = verf.f32 %v1848_v21  ;;  %v1849_v63 = vmul.f32 0.70710677, %v6422_v15  ;;  %v6433_v19 = vadd.f32 %v1713_v57, %v1505_v27  ;;  %v1233_v21 = vadd.f32 %v8243_v3, %v1003_v6  ;;  %v8246_v57 = vld [vmem:[#allocation79_spill] sm:$0xff] }
 0x193   :  { %v1520_v7 = vpop.f32.mrf.mxu0  ;;  %v1715_v39 = vpop.f32.mrf.mxu1  ;;  %v6453_v27 = vadd.f32 %v8245_v50, %v1019_v31  ;;  %v1519_v37 = vadd.f32 %v1518_v35, %v8246_v57  ;;  %v1059_v35 = vadd.f32 %v6342_v62, %v806_v25  ;;  %v1083_v62 = vadd.f32 %v6364_v12, %v827_v10  ;;  %v8252_v25 = vld [vmem:[#allocation81_spill] sm:$0xff] }
 0x194   :  { %4619 = verf.f32 %v1849_v63  ;;  %v6437_v9 = vadd.f32 %v1715_v39, %v1507_v11  ;;  %v1850_v30 = vmul.f32 0.70710677, %v6433_v19  ;;  %v6459_v11 = vadd.f32 %v8247_v60, %v1027_v46  ;;  %v8249_v39 = vld [vmem:[#allocation92_spill] sm:$0xff] }
 0x195   :  { %v1525_v2 = vpop.f32.mrf.mxu0  ;;  %v1720_v1 = vpop.f32.mrf.mxu1  ;;  %v1051_v63 = vadd.f32 %v6335_v41, %v799_v4  ;;  %v1521_v23 = vadd.f32 %v1520_v7, %v1224_v14  ;;  %v6469_v51 = vadd.f32 %v8249_v39, %v1043_v58  ;;  %v8250_v4 = vld [vmem:[#allocation94_spill] sm:$0xff]  ;;  %v6478_v14 = vadd.f32 %v8251_v16, %v1059_v35 }
 0x196   :  { %v1851_v22 = vmul.f32 0.70710677, %v6437_v9  ;;  %v6446_v8 = vadd.f32 %v1720_v1, %v1512_v59  ;;  %4621 = verf.f32 %v1850_v30  ;;  %v1075_v59 = vadd.f32 %v6356_v43, %v820_v26 }
 0x197   :  { %v1527_v56 = vpop.f32.mrf.mxu0  ;;  %v1722_v5 = vpop.f32.mrf.mxu1  ;;  %v6473_v36 = vadd.f32 %v8250_v4, %v1051_v63  ;;  %v1526_v31 = vadd.f32 %v1525_v2, %v8252_v25  ;;  %v6483_v30 = vadd.f32 %v6366_v20, %v1067_v0  ;;  %v1091_v26 = vadd.f32 %v6372_v49, %v834_v38  ;;  %v8253_v38 = vld [vmem:[#allocation83_spill] sm:$0xff] }
 0x198   :  { %4623 = verf.f32 %v1851_v22  ;;  %v1852_v34 = vmul.f32 0.70710677, %v6446_v8  ;;  %v1723_v47 = vadd.f32 %v1722_v5, %v1514_v40  ;;  %v1528_v1 = vadd.f32 %v1527_v56, %v1233_v21 }
 0x199   :  { %v1532_v32 = vpop.f32.mrf.mxu0  ;;  %v1727_v52 = vpop.f32.mrf.mxu1  ;;  %v6487_v46 = vadd.f32 %v6374_v18, %v1075_v59  ;;  %v6490_v22 = vadd.f32 %v6382_v13, %v1083_v62  ;;  %v6494_v40 = vadd.f32 %v6402_v44, %v1091_v26  ;;  %v1817_v49 = vmul.f32 0.5, %v6422_v15 }
 0x19a   :  { %4625 = verf.f32 %v1852_v34  ;;  %v6465_v6 = vadd.f32 %v1727_v52, %v1519_v37  ;;  %v1853_v53 = vmul.f32 0.70710677, %v1723_v47  ;;  %v1533_v18 = vadd.f32 %v1532_v32, %v8253_v38 }
 0x19b   :  { %v1534_v17 = vpop.f32.mrf.mxu0  ;;  %v1729_v41 = vpop.f32.mrf.mxu1  ;;  %v1818_v37 = vmul.f32 0.5, %v6433_v19  ;;  %v1819_v29 = vmul.f32 0.5, %v6437_v9  ;;  %v1820_v32 = vmul.f32 0.5, %v6446_v8  ;;  %v6504_v45 = vmul.f32 0.5, %v1723_v47 }
 0x19c   :  { %v1854_v7 = vmul.f32 0.70710677, %v6465_v6  ;;  %v1730_v48 = vadd.f32 %v1729_v41, %v1521_v23  ;;  %4627 = verf.f32 %v1853_v53  ;;  %v1535_v58 = vadd.f32 %v1534_v17, %v6449_v54  ;;  %v8255_v23 = vld [vmem:[#allocation85_spill] sm:$0xff] }
 0x19d   :  { %v1539_v28 = vpop.f32.mrf.mxu0  ;;  %v1734_v33 = vpop.f32.mrf.mxu1  ;;  %v1822_v4 = vmul.f32 0.5, %v6465_v6  ;;  %v8256_v6 = vld [vmem:[#allocation87_spill] sm:$0xff] }
 0x19e   :  { %4629 = verf.f32 %v1854_v7  ;;  %v1855_v3 = vmul.f32 0.70710677, %v1730_v48  ;;  %v1735_v12 = vadd.f32 %v1734_v33, %v1526_v31  ;;  %v1540_v35 = vadd.f32 %v1539_v28, %v8255_v23 }
 0x19f   :  { %v4618_v43 = vpop.eup %4617  ;;  %v1541_v10 = vpop.f32.mrf.mxu0  ;;  %v6513_v28 = vmul.f32 0.5, %v1730_v48 }
 0x1a0   :  { %v1736_v2 = vpop.f32.mrf.mxu1  ;;  %v1912_v61 = vadd.f32 1.0, %v4618_v43  ;;  %4631 = verf.f32 %v1855_v3  ;;  %v1856_v56 = vmul.f32 0.70710677, %v1735_v12  ;;  %v6515_v33 = vmul.f32 0.5, %v1735_v12 }
 0x1a1   :  { %v1737_v20 = vadd.f32 %v1736_v2, %v1528_v1  ;;  %v4620_v21 = vpop.eup %4619  ;;  %v1546_v5 = vpop.f32.mrf.mxu0  ;;  %v1542_v1 = vadd.f32 %v1541_v10, %v6453_v27 }
 0x1a2   :  { %v1741_v13 = vpop.f32.mrf.mxu1  ;;  %v1944_v50 = vmul.f32 %v1912_v61, %v1816_v55  ;;  %v1913_v57 = vadd.f32 1.0, %v4620_v21  ;;  %4633 = verf.f32 %v1856_v56  ;;  %v1547_v26 = vadd.f32 %v1546_v5, %v8256_v6 }
 0x1a3   :  { %v1857_v34 = vmul.f32 0.70710677, %v1737_v20  ;;  %v1742_v60 = vadd.f32 %v1741_v13, %v1533_v18  ;;  %v1548_v44 = vpop.f32.mrf.mxu0  ;;  %v4622_v52 = vpop.eup %4621  ;;  %v6519_v43 = vmul.f32 0.5, %v1737_v20 }
 0x1a4   :  { %v1743_v63 = vpop.f32.mrf.mxu1  ;;  %v6501_v15 = vand.u32 4294901760, %v1944_v50  ;;  %v1914_v19 = vadd.f32 1.0, %v4622_v52  ;;  %v6510_v41 = vmul.f32 %v1913_v57, %v1817_v49  ;;  %v1549_v10 = vadd.f32 %v1548_v44, %v6459_v11  ;;  %v8259_v57 = vld [vmem:[#allocation89_spill] sm:$0xff] }
 0x1a5   :  { %v4624_v39 = vpop.eup %4623  ;;  %4635 = verf.f32 %v1857_v34  ;;  %v1858_v0 = vmul.f32 0.70710677, %v1742_v60  ;;  %v1744_v9 = vadd.f32 %v1743_v63, %v1535_v58  ;;  %v1553_v53 = vpop.f32.mrf.mxu0 }
 0x1a6   :  { %8254 = vst [vmem:[#allocation65_spill] sm:$0xff] %v6501_v15  ;;  %v1748_v54 = vpop.f32.mrf.mxu1  ;;  %v6508_v17 = vsub.f32 %v1944_v50, %v6501_v15  ;;  %v1946_v47 = vmul.f32 %v1914_v19, %v1818_v37  ;;  %v1915_v7 = vadd.f32 1.0, %v4624_v39  ;;  %v6523_v48 = vand.u32 4294901760, %v6510_v41  ;;  %v8261_v39 = vld [vmem:[#allocation13_spill] sm:$0xff] }
 0x1a7   :  { %v1749_v59 = vadd.f32 %v1748_v54, %v1540_v35  ;;  %v4626_v8 = vpop.eup %4625  ;;  %4637 = verf.f32 %v1858_v0  ;;  %v1859_v16 = vmul.f32 0.70710677, %v1744_v9  ;;  %v1555_v62 = vpop.f32.mrf.mxu0  ;;  %v6530_v50 = vmul.f32 0.5, %v1742_v60 }
 0x1a8   :  { %v1750_v25 = vpop.f32.mrf.mxu1  ;;  %v1916_v31 = vadd.f32 1.0, %v4626_v8  ;;  %v7873_v3 = vand.u32 4294901760, %v6508_v17  ;;  %8257 = vst [vmem:[#allocation70_spill] sm:$0xff] %v6523_v48  ;;  %v6525_v18 = vand.u32 4294901760, %v1946_v47  ;;  %v6527_v27 = vmul.f32 %v1915_v7, %v1819_v29  ;;  %2577 = vmatprep.mubr.f32.mxu1 %v6523_v48  ;;  %v8263_v8 = vld [vmem:[#allocation16_spill] sm:$0xff] }
 0x1a9   :  { %v1860_v2 = vmul.f32 0.70710677, %v1749_v59  ;;  %v1560_v55 = vpop.f32.mrf.mxu0  ;;  %v4628_v21 = vpop.eup %4627  ;;  %4639 = verf.f32 %v1859_v16  ;;  %v1751_v38 = vadd.f32 %v1750_v25, %v1542_v1  ;;  %v1554_v37 = vadd.f32 %v1553_v53, %v8259_v57  ;;  %2579 = vmatmul.mubr.f32.vlgmr.msra.gmra.mxu1 %v6501_v15  ;;  %v8265_v1 = vld [vmem:[#allocation19_spill] sm:$0xff] }
 0x1aa   :  { %v1755_v61 = vpop.f32.mrf.mxu1  ;;  %v1948_v49 = vmul.f32 %v1916_v31, %v1820_v32  ;;  %8258 = vst [vmem:[#allocation71_spill] sm:$0xff] %v6525_v18  ;;  %v1917_v5 = vadd.f32 1.0, %v4628_v21  ;;  %v6537_v58 = vsub.f32 %v6508_v17, %v7873_v3  ;;  %v6539_v29 = vmul.f32 0.5, %v1744_v9  ;;  %4375 = vmatpush3.msra.mxu1 %v8261_v39  ;;  %v8281_v15 = vld [vmem:[#allocation51_spill] sm:$0xff] }
 0x1ab   :  { %v4630_v12 = vpop.eup %4629  ;;  %4641 = verf.f32 %v1860_v2  ;;  %v1562_v20 = vpop.f32.mrf.mxu0  ;;  %v6541_v11 = vmul.f32 0.5, %v1749_v59  ;;  %v1756_v44 = vadd.f32 %v1755_v61, %v1547_v26  ;;  %v1556_v32 = vadd.f32 %v1555_v62, %v6463_v24  ;;  %4376 = vmatprep.subr.mxu1 %v8263_v8  ;;  %v8264_v62 = vld [vmem:[#allocation91_spill] sm:$0xff]  ;;  %v8266_v2 = vld [vmem:[#allocation25_spill] sm:$0xff] }
 0x1ac   :  { %v1757_v56 = vpop.f32.mrf.mxu1  ;;  %v1918_v13 = vadd.f32 1.0, %v4630_v12  ;;  %v6544_v52 = vand.u32 4294901760, %v1948_v49  ;;  %v1861_v23 = vmul.f32 0.70710677, %v1751_v38  ;;  %v6549_v19 = vsub.f32 %v1946_v47, %v6525_v18  ;;  %4377 = vmatpush3.msra.mxu1 %v8265_v1 }
 0x1ad   :  { %v4632_v34 = vpop.eup %4631  ;;  %v1567_v63 = vpop.f32.mrf.mxu0  ;;  %v1758_v35 = vadd.f32 %v1757_v56, %v1549_v10  ;;  %v1862_v9 = vmul.f32 0.70710677, %v1756_v44  ;;  %v6552_v53 = vand.u32 4294901760, %v6527_v27  ;;  %v6556_v16 = vmul.f32 %v1917_v5, %v6504_v45  ;;  %4378 = vmatprep.subr.mxu1 %v8266_v2 }
 0x1ae   :  { %v1762_v60 = vpop.f32.mrf.mxu1  ;;  %8260 = vst [vmem:[#allocation72_spill] sm:$0xff] %v6544_v52  ;;  %v1950_v0 = vmul.f32 %v1918_v13, %v1822_v4  ;;  %v1919_v24 = vadd.f32 1.0, %v4632_v34  ;;  %v1561_v25 = vadd.f32 %v1560_v55, %v8264_v62  ;;  %v6564_v45 = vsub.f32 %v1948_v49, %v6544_v52 }
 0x1af   :  { %8262 = vst [vmem:[#allocation75_spill] sm:$0xff] %v6552_v53  ;;  %v1569_v54 = vpop.f32.mrf.mxu0  ;;  %v4634_v7 = vpop.eup %4633  ;;  %v1863_v31 = vmul.f32 0.70710677, %v1758_v35  ;;  %4643 = verf.f32 %v1862_v9  ;;  %2584 = vmatprep.mubr.f32.mxu1 %v6552_v53  ;;  %v1763_v6 = vadd.f32 %v1762_v60, %v1554_v37  ;;  %v6566_v21 = vmul.f32 0.5, %v1751_v38  ;;  %v8268_v37 = vld [vmem:[#allocation28_spill] sm:$0xff]  ;;  %v8271_v9 = vld [vmem:[#allocation35_spill] sm:$0xff] }
 0x1b0   :  { %v1764_v59 = vpop.f32.mrf.mxu1  ;;  %v1920_v47 = vadd.f32 1.0, %v4634_v7  ;;  %4645 = verf.f32 %v1861_v23  ;;  %v1563_v55 = vadd.f32 %v1562_v20, %v6469_v51  ;;  %2586 = vmatmul.mubr.f32.gmra.mxu1 %v6525_v18  ;;  %v6570_v12 = vand.u32 4294901760, %v1950_v0  ;;  %v8270_v20 = vld [vmem:[#allocation37_spill] sm:$0xff] }
 0x1b1   :  { %v6572_v10 = vmul.f32 0.5, %v1756_v44  ;;  %v1864_v56 = vmul.f32 0.70710677, %v1763_v6  ;;  %v1765_v5 = vadd.f32 %v1764_v59, %v1556_v32  ;;  %v1574_v13 = vpop.f32.mrf.mxu0  ;;  %4379 = vmatpush3.msra.mxu1 %v8268_v37  ;;  %v6576_v49 = vmul.f32 %v1919_v24, %v6513_v28  ;;  %v8272_v24 = vld [vmem:[#allocation39_spill] sm:$0xff] }
 0x1b2   :  { %v1769_v26 = vpop.f32.mrf.mxu1  ;;  %v4636_v61 = vpop.eup %4635  ;;  %8267 = vst [vmem:[#allocation74_spill] sm:$0xff] %v6570_v12  ;;  %4647 = verf.f32 %v1863_v31  ;;  %v6580_v51 = vsub.f32 %v6510_v41, %v6523_v48  ;;  %v6583_v38 = vand.u32 4294901760, %v6556_v16  ;;  %4380 = vmatprep.subr.mxu1 %v8270_v20  ;;  %v1952_v44 = vmul.f32 %v1920_v47, %v6515_v33  ;;  %v8273_v47 = vld [vmem:[#allocation93_spill] sm:$0xff] }
 0x1b3   :  { %v1921_v60 = vadd.f32 1.0, %v4636_v61  ;;  %4649 = verf.f32 %v1864_v56  ;;  %4381 = vmatpush3.msra.mxu1 %v8271_v9  ;;  %v6588_v28 = vmul.f32 0.5, %v1758_v35  ;;  %v1865_v59 = vmul.f32 0.70710677, %v1765_v5  ;;  %v1576_v35 = vpop.f32.mrf.mxu0 }
 0x1b4   :  { %v1771_v57 = vpop.f32.mrf.mxu1  ;;  %v4638_v34 = vpop.eup %4637  ;;  %8269 = vst [vmem:[#allocation73_spill] sm:$0xff] %v6583_v38  ;;  %v7876_v7 = vand.u32 4294901760, %v6580_v51  ;;  %2591 = vmatprep.mubr.f32.mxu1 %v6583_v38  ;;  %v1770_v41 = vadd.f32 %v1769_v26, %v1561_v25  ;;  %4382 = vmatprep.subr.mxu1 %v8272_v24  ;;  %v6594_v31 = vsub.f32 %v1950_v0, %v6570_v12  ;;  %v8274_v0 = vld [vmem:[#allocation42_spill] sm:$0xff]  ;;  %v6604_v18 = vand.u32 4294901760, %v1952_v44 }
 0x1b5   :  { %v1922_v32 = vadd.f32 1.0, %v4638_v34  ;;  %v1568_v61 = vadd.f32 %v1567_v63, %v8273_v47  ;;  %2593 = vmatmul.mubr.f32.gmra.mxu1 %v6544_v52  ;;  %v1772_v56 = vadd.f32 %v1771_v57, %v1563_v55  ;;  %v1570_v4 = vadd.f32 %v1569_v54, %v6473_v36  ;;  %v8276_v57 = vld [vmem:[#allocation5_spill] sm:$0xff]  ;;  %v8277_v47 = vld [vmem:[#allocation52_spill] sm:$0xff] }
 0x1b6   :  { %v1776_v23 = vpop.f32.mrf.mxu1  ;;  %v4640_v62 = vpop.eup %4639  ;;  %4651 = verf.f32 %v1865_v59  ;;  %v2114_v25 = vsub.f32 %v6580_v51, %v7876_v7  ;;  %v1866_v26 = vmul.f32 0.70710677, %v1770_v41  ;;  %4383 = vmatpush3.msra.mxu1 %v8274_v0  ;;  %8275 = vst [vmem:[#allocation76_spill] sm:$0xff] %v6604_v18  ;;  %v6614_v59 = vsub.f32 %v6527_v27, %v6552_v53  ;;  %v8294_v0 = vld [vmem:[#allocation97_spill] sm:$0xff] }
 0x1b7   :  { %v1954_v33 = vmul.f32 %v1922_v32, %v6530_v50  ;;  %v6607_v50 = vmul.f32 %v1921_v60, %v6519_v43  ;;  %v6609_v32 = vmul.f32 0.5, %v1763_v6  ;;  %4384 = vmatprep.subr.mxu1 %v8276_v57  ;;  %v1867_v54 = vmul.f32 0.70710677, %v1772_v56  ;;  %v1581_v6 = vpop.f32.mrf.mxu0  ;;  %v8293_v57 = vld [vmem:[#allocation33_spill] sm:$0xff] }
 0x1b8   :  { %v1778_v34 = vpop.f32.mrf.mxu1  ;;  %v4642_v3 = vpop.eup %4641  ;;  %v2115_v36 = vand.u32 4294901760, %v2114_v25  ;;  %4653 = verf.f32 %v1866_v26  ;;  %4385 = vmatpush3.msra.mxu1 %v8277_v47  ;;  %v1923_v52 = vadd.f32 1.0, %v4640_v62  ;;  %v8280_v25 = vld [vmem:[#allocation53_spill] sm:$0xff]  ;;  %v7885_v27 = vand.u32 4294901760, %v6614_v59 }
 0x1b9   :  { %v1924_v63 = vadd.f32 1.0, %v4642_v3  ;;  %v6617_v7 = vand.u32 4294901760, %v1954_v33  ;;  %v6623_v3 = vand.u32 4294901760, %v6576_v49  ;;  %4386 = vmatprep.subr.mxu1 %v8280_v25  ;;  %4655 = verf.f32 %v1867_v54  ;;  %v8292_v25 = vld [vmem:[#allocation9_spill] sm:$0xff] }
 0x1ba   :  { %v1783_v55 = vpop.f32.mrf.mxu1  ;;  %2116 = vmatprep.mubr.f32.mxu0 %v2115_v36  ;;  %v1777_v26 = vadd.f32 %v1776_v23, %v1568_v61  ;;  %v7886_v53 = vand.u32 4294901760, %v6549_v19  ;;  %4387 = vmatpush3.msra.mxu1 %v8281_v15  ;;  %v6631_v62 = vmul.f32 0.5, %v1765_v5  ;;  %v8283_v48 = vand.u32 4294901760, %v6537_v58  ;;  %v8284_v61 = vld [vmem:[#allocation27_spill] sm:$0xff] }
 0x1bb   :  { %8278 = vst [vmem:[#allocation78_spill] sm:$0xff] %v6617_v7  ;;  %v6620_v43 = vmul.f32 %v1924_v63, %v6541_v11  ;;  %8279 = vst [vmem:[#allocation77_spill] sm:$0xff] %v6623_v3  ;;  %v8282_v11 = vld [vmem:[#allocation95_spill] sm:$0xff]  ;;  %v1577_v47 = vadd.f32 %v1576_v35, %v6478_v14  ;;  %2598 = vmatprep.mubr.f32.mxu1 %v6623_v3  ;;  %v6638_v36 = vadd.f32 %v1778_v34, %v1570_v4 }
 0x1bc   :  { %v6625_v60 = vpop.f32.mrf.mxu1  ;;  %v1575_v63 = vadd.f32 %v1574_v13, %v8282_v11  ;;  %2122 = vmatmul.mubr.f32.vlgmr.msra.gmra.mxu0 %v8283_v48  ;;  %v4644_v54 = vpop.eup %4643  ;;  %v6641_v23 = vsub.f32 %v1952_v44, %v6604_v18  ;;  %v2129_v5 = vsub.f32 %v6614_v59, %v7885_v27  ;;  %v1868_v13 = vmul.f32 0.70710677, %v1777_v26  ;;  %2600 = vmatmul.mubr.f32.gmra.mxu1 %v6570_v12  ;;  %v8285_v11 = vld [vmem:[#allocation23_spill] sm:$0xff] }
 0x1bd   :  { %4295 = vmatpush3.msra.mxu0 %v8284_v61  ;;  %v2135_v48 = vsub.f32 %v6549_v19, %v7886_v53  ;;  %v4646_v58 = vpop.eup %4645  ;;  %v6654_v4 = vmul.f32 %v1923_v52, %v6539_v29  ;;  %v1926_v44 = vadd.f32 1.0, %v4644_v54  ;;  %v6656_v35 = vmul.f32 0.5, %v1770_v41  ;;  %v1583_v27 = vpop.f32.mrf.mxu0  ;;  %v8286_v61 = vld [vmem:[#allocation17_spill] sm:$0xff]  ;;  %v8288_v29 = vld [vmem:[#allocation22_spill] sm:$0xff]  ;;  %v8289_v52 = vld [vmem:[#allocation8_spill] sm:$0xff] }
 0x1be   :  { %v6651_v14 = vpop.f32.mrf.mxu1  ;;  %v6658_v34 = vmul.f32 0.5, %v1772_v56  ;;  %4296 = vmatprep.subr.mxu0 %v8285_v11  ;;  %4388 = vmatprep.subr.mxu1 %v8286_v61  ;;  %v6663_v53 = vsub.f32 %v1954_v33, %v6617_v7  ;;  %v6666_v12 = vand.u32 4294901760, %v6620_v43  ;;  %v2130_v15 = vand.u32 4294901760, %v2129_v5  ;;  %v8291_v61 = vld [vmem:[#allocation32_spill] sm:$0xff] }
 0x1bf   :  { %4657 = verf.f32 %v1868_v13  ;;  %4297 = vmatpush3.msra.mxu0 %v8288_v29  ;;  %4389 = vmatpush3.msra.mxu1 %v8289_v52  ;;  %v4648_v41 = vpop.eup %4647  ;;  %v2136_v56 = vand.u32 4294901760, %v2135_v48  ;;  %v1869_v54 = vmul.f32 0.70710677, %v6638_v36  ;;  %v6673_v11 = vsub.f32 %v6556_v16, %v6583_v38 }
 0x1c0   :  { %8287 = vst [vmem:[#allocation80_spill] sm:$0xff] %v6666_v12  ;;  %v6676_v33 = vand.u32 4294901760, %v6607_v50  ;;  %4298 = vmatprep.subr.mxu0 %v8291_v61  ;;  %4390 = vmatprep.subr.mxu1 %v8292_v25  ;;  %v4650_v5 = vpop.eup %4649  ;;  %v1925_v13 = vadd.f32 1.0, %v4646_v58  ;;  %v6681_v29 = vmul.f32 %v1926_v44, %v6572_v10  ;;  %v1784_v48 = vadd.f32 %v1783_v55, %v1575_v63  ;;  %v6685_v16 = vpop.f32.mrf.mxu1  ;;  %v8295_v44 = vld [vmem:[#allocation34_spill] sm:$0xff] }
 0x1c1   :  { %2131 = vmatprep.mubr.f32.mxu0 %v2130_v15  ;;  %v7891_v52 = vand.u32 4294901760, %v6564_v45  ;;  %4299 = vmatpush3.msra.mxu0 %v8293_v57  ;;  %v1928_v38 = vadd.f32 1.0, %v4650_v5  ;;  %v1582_v24 = vadd.f32 %v1581_v6, %v8294_v0  ;;  %4659 = verf.f32 %v1869_v54  ;;  %v1588_v58 = vpop.f32.mrf.mxu0  ;;  %v8301_v57 = vld [vmem:[#allocation56_spill] sm:$0xff] }
 0x1c2   :  { %8290 = vst [vmem:[#allocation82_spill] sm:$0xff] %v6676_v33  ;;  %2137 = vmatmul.mubr.f32.gmra.mxu0 %v2136_v56  ;;  %v7894_v25 = vand.u32 4294901760, %v6673_v11  ;;  %2605 = vmatprep.mubr.f32.mxu1 %v6676_v33  ;;  %v6690_v10 = vmul.f32 0.5, %v1777_v26  ;;  %v1584_v15 = vadd.f32 %v1583_v27, %v6483_v30  ;;  %v1870_v55 = vmul.f32 0.70710677, %v1784_v48  ;;  %v8296_v27 = vld [vmem:[#allocation40_spill] sm:$0xff] }
 0x1c3   :  { %v2150_v63 = vsub.f32 %v6564_v45, %v7891_v52  ;;  %2607 = vmatmul.mubr.f32.gmra.mxu1 %v6604_v18  ;;  %4300 = vmatprep.subr.mxu0 %v8295_v44  ;;  %v4652_v0 = vpop.eup %4651  ;;  %v6700_v6 = vsub.f32 %v6620_v43, %v6666_v12  ;;  %v1927_v56 = vadd.f32 1.0, %v4648_v41  ;;  %v1786_v30 = vadd.f32 %v6625_v60, %v1577_v47  ;;  %v6718_v41 = vpop.f32.mrf.mxu1  ;;  %v8298_v18 = vld [vmem:[#allocation49_spill] sm:$0xff] }
 0x1c4   :  { %v2144_v26 = vsub.f32 %v6673_v11, %v7894_v25  ;;  %4301 = vmatpush3.msra.mxu0 %v8296_v27  ;;  %v6708_v54 = vmul.f32 %v1925_v13, %v6566_v21  ;;  %v6711_v5 = vand.u32 4294901760, %v6681_v29  ;;  %v1960_v52 = vmul.f32 %v1928_v38, %v6609_v32  ;;  %v8299_v25 = vld [vmem:[#allocation20_spill] sm:$0xff]  ;;  %v1590_v21 = vpop.f32.mrf.mxu0  ;;  %v8300_v44 = vld [vmem:[#allocation45_spill] sm:$0xff] }
 0x1c5   :  { %v6716_v43 = vsub.f32 %v6576_v49, %v6623_v3  ;;  %4302 = vmatprep.subr.mxu0 %v8298_v18  ;;  %4391 = vmatpush3.msra.mxu1 %v8299_v25  ;;  %v4654_v47 = vpop.eup %4653  ;;  %v1929_v60 = vadd.f32 1.0, %v4652_v0  ;;  %4661 = verf.f32 %v1870_v55  ;;  %v1871_v13 = vmul.f32 0.70710677, %v1786_v30  ;;  %v8303_v18 = vld [vmem:[#allocation48_spill] sm:$0xff] }
 0x1c6   :  { %8297 = vst [vmem:[#allocation84_spill] sm:$0xff] %v6711_v5  ;;  %v2145_v27 = vand.u32 4294901760, %v2144_v26  ;;  %4303 = vmatpush3.msra.mxu0 %v8300_v44  ;;  %4392 = vmatprep.subr.mxu1 %v8301_v57  ;;  %v1930_v38 = vadd.f32 1.0, %v4654_v47  ;;  %v2151_v32 = vand.u32 4294901760, %v2150_v63  ;;  %v6726_v3 = vand.u32 4294901760, %v6654_v4  ;;  %v8304_v25 = vld [vmem:[#allocation24_spill] sm:$0xff]  ;;  %v4656_v0 = vpop.eup %4655 }
 0x1c7   :  { %4304 = vmatprep.subr.mxu0 %v8303_v18  ;;  %4393 = vmatpush3.msra.mxu1 %v8304_v25  ;;  %v6731_v55 = vmul.f32 %v1927_v56, %v6588_v28  ;;  %v6734_v26 = vmul.f32 0.5, %v6638_v36  ;;  %4663 = verf.f32 %v1871_v13  ;;  %v1791_v63 = vadd.f32 %v6651_v14, %v1582_v24  ;;  %v8305_v47 = vld [vmem:[#allocation6_spill] sm:$0xff]  ;;  %v1799_v36 = vpop.f32.mrf.mxu1  ;;  %v1595_v24 = vpop.f32.mrf.mxu0 }
 0x1c8   :  { %8302 = vst [vmem:[#allocation86_spill] sm:$0xff] %v6726_v3  ;;  %2146 = vmatprep.mubr.f32.mxu0 %v2145_v27  ;;  %4305 = vmatpush3.msra.mxu0 %v8305_v47  ;;  %v6738_v49 = vand.u32 4294901760, %v1960_v52  ;;  %v1931_v57 = vadd.f32 1.0, %v4656_v0  ;;  %v8307_v44 = vld [vmem:[#allocation98_spill] sm:$0xff]  ;;  %v8308_v25 = vand.u32 4294901760, %v6716_v43  ;;  %v6745_v56 = vmul.f32 0.5, %v1784_v48 }
 0x1c9   :  { %v1589_v18 = vadd.f32 %v1588_v58, %v8307_v44  ;;  %2152 = vmatmul.mubr.f32.gmra.mxu0 %v2151_v32  ;;  %2612 = vmatprep.mubr.f32.mxu1 %v6726_v3  ;;  %v1591_v27 = vadd.f32 %v1590_v21, %v6487_v46  ;;  %v1872_v14 = vmul.f32 0.70710677, %v1791_v63  ;;  %v7899_v13 = vand.u32 4294901760, %v6594_v31  ;;  %v8309_v0 = vld [vmem:[#allocation7_spill] sm:$0xff]  ;;  %v8310_v32 = vld [vmem:[#allocation14_spill] sm:$0xff] }
 0x1ca   :  { %8306 = vst [vmem:[#allocation79_spill] sm:$0xff] %v6738_v49  ;;  %v2159_v28 = vsub.f32 %v6716_v43, %v8308_v25  ;;  %2614 = vmatmul.mubr.f32.gmra.mxu1 %v6617_v7  ;;  %4306 = vmatprep.subr.mxu0 %v8309_v0  ;;  %v6753_v58 = vsub.f32 %v6681_v29, %v6711_v5  ;;  %v8311_v46 = vld [vmem:[#allocation59_spill] sm:$0xff]  ;;  %v6759_v47 = vmul.f32 0.5, %v1786_v30 }
 0x1cb   :  { %v1961_v25 = vmul.f32 %v1929_v60, %v6631_v62  ;;  %v1962_v44 = vmul.f32 %v1930_v38, %v6656_v35  ;;  %4307 = vmatpush3.msra.mxu0 %v8310_v32  ;;  %4394 = vmatprep.subr.mxu1 %v8311_v46  ;;  %v2165_v7 = vsub.f32 %v6594_v31, %v7899_v13  ;;  %v8313_v62 = vld [vmem:[#allocation57_spill] sm:$0xff]  ;;  %v8314_v35 = vld [vmem:[#allocation67_spill] sm:$0xff]  ;;  %4665 = verf.f32 %v1872_v14  ;;  %v1597_v13 = vpop.f32.mrf.mxu0 }
 0x1cc   :  { %v2160_v48 = vand.u32 4294901760, %v2159_v28  ;;  %v4658_v21 = vpop.eup %4657  ;;  %v1793_v0 = vadd.f32 %v6685_v16, %v1584_v15  ;;  %v6767_v29 = vsub.f32 %v6607_v50, %v6676_v33  ;;  %4308 = vmatprep.subr.mxu0 %v8313_v62  ;;  %4395 = vmatpush3.msra.mxu1 %v8314_v35  ;;  %v6772_v60 = vsub.f32 %v1960_v52, %v6738_v49  ;;  %v1804_v28 = vpop.f32.mrf.mxu1  ;;  %v8316_v16 = vld [vmem:[#allocation54_spill] sm:$0xff]  ;;  %v8321_v14 = vld [vmem:[#allocation99_spill] sm:$0xff] }
 0x1cd   :  { %v1963_v30 = vmul.f32 %v1931_v57, %v6658_v34  ;;  %v6776_v38 = vand.u32 4294901760, %v6708_v54  ;;  %4309 = vmatpush3.msra.mxu0 %v8316_v16  ;;  %v1932_v15 = vadd.f32 1.0, %v4658_v21  ;;  %v2166_v50 = vand.u32 4294901760, %v2165_v7  ;;  %v8317_v35 = vld [vmem:[#allocation10_spill] sm:$0xff] }
 0x1ce   :  { %8312 = vst [vmem:[#allocation88_spill] sm:$0xff] %v6767_v29  ;;  %2161 = vmatprep.mubr.f32.mxu0 %v2160_v48  ;;  %v1873_v33 = vmul.f32 0.70710677, %v1793_v0  ;;  %v7902_v46 = vand.u32 4294901760, %v6767_v29  ;;  %4310 = vmatprep.subr.mxu0 %v8317_v35  ;;  %v8318_v52 = vld [vmem:[#allocation66_spill] sm:$0xff]  ;;  %v4660_v62 = vpop.eup %4659  ;;  %v6782_v57 = vand.u32 4294901760, %v1961_v25  ;;  %v1596_v48 = vadd.f32 %v1595_v24, %v8321_v14  ;;  %v1806_v61 = vpop.f32.mrf.mxu1 }
 0x1cf   :  { %8315 = vst [vmem:[#allocation90_spill] sm:$0xff] %v6776_v38  ;;  %4396 = vmatprep.subr.mxu1 %v8318_v52  ;;  %v6784_v34 = vand.u32 4294901760, %v1962_v44  ;;  %2619 = vmatprep.mubr.f32.mxu1 %v6776_v38  ;;  %v1798_v21 = vadd.f32 %v6718_v41, %v1589_v18  ;;  %v1933_v7 = vadd.f32 1.0, %v4660_v62  ;;  %v7907_v52 = vand.u32 4294901760, %v6641_v23  ;;  %v8323_v18 = vld [vmem:[#allocation60_spill] sm:$0xff] }
 0x1d0   :  { %8319 = vst [vmem:[#allocation92_spill] sm:$0xff] %v6782_v57  ;;  %2167 = vmatmul.mubr.f32.gmra.mxu0 %v2166_v50  ;;  %4667 = verf.f32 %v1873_v33  ;;  %v2174_v35 = vsub.f32 %v6767_v29, %v7902_v46  ;;  %2621 = vmatmul.mubr.f32.gmra.mxu1 %v6666_v12  ;;  %v6794_v16 = vand.u32 4294901760, %v1963_v30  ;;  %v6796_v32 = vmul.f32 0.5, %v1791_v63  ;;  %v8324_v41 = vld [vmem:[#allocation68_spill] sm:$0xff]  ;;  %v8325_v12 = vld [vmem:[#allocation63_spill] sm:$0xff]  ;;  %v8326_v63 = vld [vmem:[#allocation21_spill] sm:$0xff] }
 0x1d1   :  { %8320 = vst [vmem:[#allocation94_spill] sm:$0xff] %v6784_v34  ;;  %v1598_v24 = vadd.f32 %v1597_v13, %v6490_v22  ;;  %v1874_v14 = vmul.f32 0.70710677, %v1798_v21  ;;  %4311 = vmatpush3.msra.mxu0 %v8323_v18  ;;  %4397 = vmatpush3.msra.mxu1 %v8324_v41  ;;  %v1964_v33 = vmul.f32 %v1932_v15, %v6690_v10  ;;  %v1602_v41 = vpop.f32.mrf.mxu0  ;;  %v6820_v15 = vmul.f32 0.5, %v1793_v0  ;;  %v8332_v0 = vld [vmem:[#allocation36_spill] sm:$0xff] }
 0x1d2   :  { %8322 = vst [vmem:[#allocation96_spill] sm:$0xff] %v6794_v16  ;;  %v2175_v62 = vand.u32 4294901760, %v2174_v35  ;;  %v2180_v50 = vsub.f32 %v6641_v23, %v7907_v52  ;;  %v1800_v46 = vadd.f32 %v1799_v36, %v1591_v27  ;;  %4312 = vmatprep.subr.mxu0 %v8325_v12  ;;  %4398 = vmatprep.subr.mxu1 %v8326_v63  ;;  %v4662_v29 = vpop.eup %4661  ;;  %v8327_v35 = vld [vmem:[#allocation12_spill] sm:$0xff]  ;;  %v8328_v36 = vld [vmem:[#allocation30_spill] sm:$0xff] }
 0x1d3   :  { %v6808_v22 = vsub.f32 %v1961_v25, %v6782_v57  ;;  %v6811_v13 = vsub.f32 %v1962_v44, %v6784_v34  ;;  %4669 = verf.f32 %v1874_v14  ;;  %v6815_v10 = vsub.f32 %v6654_v4, %v6726_v3  ;;  %4313 = vmatpush3.msra.mxu0 %v8327_v35  ;;  %4399 = vmatpush3.msra.mxu1 %v8328_v36  ;;  %v8329_v63 = vld [vmem:[#allocation62_spill] sm:$0xff]  ;;  %v1811_v36 = vpop.f32.mrf.mxu1  ;;  %v1604_v12 = vpop.f32.mrf.mxu0 }
 0x1d4   :  { %v1965_v27 = vmul.f32 %v1933_v7, %v6734_v26  ;;  %2176 = vmatprep.mubr.f32.mxu0 %v2175_v62  ;;  %v2181_v25 = vand.u32 4294901760, %v2180_v50  ;;  %v1875_v52 = vmul.f32 0.70710677, %v1800_v46  ;;  %4314 = vmatprep.subr.mxu0 %v8329_v63  ;;  %v4664_v44 = vpop.eup %4663  ;;  %v6824_v14 = vsub.f32 %v1963_v30, %v6794_v16  ;;  %v8331_v26 = vld [vmem:[#allocation69_spill] sm:$0xff]  ;;  %v8334_v50 = vld [vmem:[#allocation18_spill] sm:$0xff] }
 0x1d5   :  { %v6828_v3 = vand.u32 4294901760, %v6731_v55  ;;  %v6830_v35 = vadd.f32 %v1804_v28, %v1596_v48  ;;  %4315 = vmatpush3.msra.mxu0 %v8331_v26  ;;  %4400 = vmatprep.subr.mxu1 %v8332_v0  ;;  %v6834_v7 = vand.u32 4294901760, %v1964_v33  ;;  %v1603_v62 = vadd.f32 %v1602_v41, %v6396_v42  ;;  %v8336_v26 = vld [vmem:[#allocation29_spill] sm:$0xff] }
 0x1d6   :  { %2182 = vmatmul.mubr.f32.gmra.mxu0 %v2181_v25  ;;  %4671 = verf.f32 %v1875_v52  ;;  %v7910_v30 = vand.u32 4294901760, %v6663_v53  ;;  %4316 = vmatprep.subr.mxu0 %v8334_v50  ;;  %v1934_v4 = vadd.f32 1.0, %v4662_v29  ;;  %v1935_v63 = vadd.f32 1.0, %v4664_v44  ;;  %v8338_v50 = vld [vmem:[#allocation31_spill] sm:$0xff] }
 0x1d7   :  { %8330 = vst [vmem:[#allocation81_spill] sm:$0xff] %v6828_v3  ;;  %8333 = vst [vmem:[#allocation83_spill] sm:$0xff] %v6834_v7  ;;  %v8335_v28 = vand.u32 4294901760, %v6815_v10  ;;  %2626 = vmatprep.mubr.f32.mxu1 %v6828_v3  ;;  %v1876_v0 = vmul.f32 0.70710677, %v6830_v35  ;;  %4317 = vmatpush3.msra.mxu0 %v8336_v26  ;;  %v6845_v42 = vand.u32 4294901760, %v1965_v27  ;;  %v6851_v29 = vadd.f32 %v1806_v61, %v1598_v24  ;;  %v1813_v26 = vpop.f32.mrf.mxu1 }
 0x1d8   :  { %v2195_v52 = vsub.f32 %v6663_v53, %v7910_v30  ;;  %2628 = vmatmul.mubr.f32.gmra.mxu1 %v6711_v5  ;;  %v6855_v41 = vsub.f32 %v6708_v54, %v6776_v38  ;;  %v6857_v25 = vmul.f32 0.5, %v1798_v21  ;;  %4318 = vmatprep.subr.mxu0 %v8338_v50  ;;  %v4666_v30 = vpop.eup %4665  ;;  %v6864_v5 = vsub.f32 %v1964_v33, %v6834_v7  ;;  %v8339_v21 = vld [vmem:[#allocation11_spill] sm:$0xff]  ;;  %v8341_v33 = vld [vmem:[#allocation41_spill] sm:$0xff] }
 0x1d9   :  { %v2189_v48 = vsub.f32 %v6815_v10, %v8335_v28  ;;  %8337 = vst [vmem:[#allocation85_spill] sm:$0xff] %v6845_v42  ;;  %4673 = verf.f32 %v1876_v0  ;;  %2633 = vmatprep.mubr.f32.mxu1 %v6782_v57  ;;  %v6860_v28 = vadd.f32 %v1811_v36, %v1603_v62  ;;  %v1605_v61 = vadd.f32 %v1604_v12, %v6494_v40 }
 0x1da   :  { %v6867_v24 = vmul.f32 0.5, %v1800_v46  ;;  %v2196_v54 = vand.u32 4294901760, %v2195_v52  ;;  %4319 = vmatpush3.msra.mxu0 %v8339_v21  ;;  %v1967_v0 = vmul.f32 %v1935_v63, %v6759_v47  ;;  %v1877_v36 = vmul.f32 0.70710677, %v6851_v29 }
 0x1db   :  { %v2190_v44 = vand.u32 4294901760, %v2189_v48  ;;  %v8340_v48 = vld [vmem:[#allocation38_spill] sm:$0xff]  ;;  %v7915_v62 = vand.u32 4294901760, %v6855_v41  ;;  %v1878_v57 = vmul.f32 0.70710677, %v6860_v28  ;;  %4320 = vmatprep.subr.mxu0 %v8341_v33  ;;  %v6877_v40 = vsub.f32 %v1965_v27, %v6845_v42 }
 0x1dc   :  { %4401 = vmatpush3.msra.mxu1 %v8340_v48  ;;  %v6880_v12 = vmul.f32 %v1934_v4, %v6745_v56  ;;  %v7920_v46 = vand.u32 4294901760, %v6700_v6  ;;  %v6884_v47 = vadd.f32 %v1813_v26, %v1605_v61  ;;  %4675 = verf.f32 %v1877_v36  ;;  %v8342_v4 = vld [vmem:[#allocation44_spill] sm:$0xff]  ;;  %v8343_v61 = vld [vmem:[#allocation43_spill] sm:$0xff]  ;;  %v8344_v36 = vld [vmem:[#allocation46_spill] sm:$0xff] }
 0x1dd   :  { %2191 = vmatprep.mubr.f32.mxu0 %v2190_v44  ;;  %2635 = vmatmul.mubr.f32.gmra.mxu1 %v6738_v49  ;;  %v4668_v63 = vpop.eup %4667  ;;  %v2204_v52 = vsub.f32 %v6855_v41, %v7915_v62  ;;  %v6891_v27 = vsub.f32 %v6731_v55, %v6828_v3  ;;  %v1936_v44 = vadd.f32 1.0, %v4666_v30  ;;  %4677 = verf.f32 %v1878_v57  ;;  %v8346_v49 = vld [vmem:[#allocation55_spill] sm:$0xff] }
 0x1de   :  { %2197 = vmatmul.mubr.f32.gmra.mxu0 %v2196_v54  ;;  %2640 = vmatprep.mubr.f32.mxu1 %v6794_v16  ;;  %v1937_v54 = vadd.f32 1.0, %v4668_v63  ;;  %v2210_v26 = vsub.f32 %v6700_v6, %v7920_v46  ;;  %v6901_v62 = vand.u32 4294901760, %v1967_v0  ;;  %v1879_v16 = vmul.f32 0.70710677, %v6884_v47  ;;  %v8347_v30 = vld [vmem:[#allocation47_spill] sm:$0xff] }
 0x1df   :  { %4402 = vmatprep.subr.mxu1 %v8342_v4  ;;  %4321 = vmatpush3.msra.mxu0 %v8343_v61  ;;  %v2205_v55 = vand.u32 4294901760, %v2204_v52  ;;  %v6908_v63 = vand.u32 4294901760, %v6880_v12  ;;  %v8349_v38 = vand.u32 4294901760, %v6753_v58  ;;  %v8350_v52 = vld [vmem:[#allocation50_spill] sm:$0xff]  ;;  %v7929_v61 = vand.u32 4294901760, %v6808_v22 }
 0x1e0   :  { %4403 = vmatpush3.msra.mxu1 %v8344_v36  ;;  %8345 = vst [vmem:[#allocation87_spill] sm:$0xff] %v6901_v62  ;;  %4322 = vmatprep.subr.mxu0 %v8347_v30  ;;  %v4670_v57 = vpop.eup %4669  ;;  %v1969_v46 = vmul.f32 %v1937_v54, %v6820_v15  ;;  %v2211_v3 = vand.u32 4294901760, %v2210_v26  ;;  %4679 = verf.f32 %v1879_v16  ;;  %v1968_v15 = vmul.f32 %v1936_v44, %v6796_v32  ;;  %v8354_v44 = vld [vmem:[#allocation61_spill] sm:$0xff] }
 0x1e1   :  { %4404 = vmatprep.subr.mxu1 %v8346_v49  ;;  %8348 = vst [vmem:[#allocation89_spill] sm:$0xff] %v6908_v63  ;;  %v2225_v36 = vsub.f32 %v6753_v58, %v8349_v38  ;;  %2642 = vmatmul.mubr.f32.gmra.mxu1 %v6784_v34  ;;  %v1938_v56 = vadd.f32 1.0, %v4670_v57  ;;  %v8351_v49 = vand.u32 4294901760, %v6891_v27  ;;  %v8353_v57 = vld [vmem:[#allocation58_spill] sm:$0xff]  ;;  %v8356_v26 = vand.u32 4294901760, %v6772_v60 }
 0x1e2   :  { %4323 = vmatpush3.msra.mxu0 %v8350_v52  ;;  %2206 = vmatprep.mubr.f32.mxu0 %v2205_v55  ;;  %v6922_v54 = vand.u32 4294901760, %v1969_v46  ;;  %v6928_v55 = vsub.f32 %v1967_v0, %v6901_v62  ;;  %v8357_v0 = vand.u32 4294901760, %v6824_v14 }
 0x1e3   :  { %v2219_v30 = vsub.f32 %v6891_v27, %v8351_v49  ;;  %2647 = vmatprep.mubr.f32.mxu1 %v6845_v42  ;;  %2212 = vmatmul.mubr.f32.gmra.mxu0 %v2211_v3  ;;  %v4672_v16 = vpop.eup %4671  ;;  %v2234_v42 = vsub.f32 %v6808_v22, %v7929_v61  ;;  %v8355_v3 = vld [vmem:[#allocation26_spill] sm:$0xff]  ;;  %v2226_v34 = vand.u32 4294901760, %v2225_v36  ;;  %v2240_v52 = vsub.f32 %v6772_v60, %v8356_v26 }
 0x1e4   :  { %8352 = vst [vmem:[#allocation13_spill] sm:$0xff] %v6922_v54  ;;  %4405 = vmatpush3.msra.mxu1 %v8353_v57  ;;  %4324 = vmatprep.subr.mxu0 %v8354_v44  ;;  %v1939_v38 = vadd.f32 1.0, %v4672_v16  ;;  %v8358_v57 = vld [vmem:[#allocation64_spill] sm:$0xff]  ;;  %v1970_v61 = vmul.f32 %v1938_v56, %v6857_v25  ;;  %v6950_v26 = vsub.f32 %v1969_v46, %v6922_v54  ;;  %v8360_v25 = vld [vmem:[#allocation15_spill] sm:$0xff]  ;;  %v8362_v46 = vand.u32 4294901760, %v6877_v40 }
 0x1e5   :  { %v2220_v49 = vand.u32 4294901760, %v2219_v30  ;;  %4534 = vmatprep.subr.mxu1 %v8355_v3  ;;  %2649 = vmatmul.mubr.f32.gmra.mxu1 %v6834_v7  ;;  %v2249_v30 = vsub.f32 %v6824_v14, %v8357_v0  ;;  %v2235_v32 = vand.u32 4294901760, %v2234_v42  ;;  %v6947_v3 = vand.u32 4294901760, %v1968_v15 }
 0x1e6   :  { %4325 = vmatpush3.msra.mxu0 %v8358_v57  ;;  %2654 = vmatprep.mubr.f32.mxu1 %v6901_v62  ;;  %v4674_v16 = vpop.eup %4673  ;;  %v1971_v7 = vmul.f32 %v1939_v38, %v6867_v24  ;;  %v8359_v0 = vand.u32 4294901760, %v6811_v13  ;;  %v8361_v56 = vand.u32 4294901760, %v8360_v25  ;;  %v6960_v42 = vsub.f32 %v6880_v12, %v6908_v63 }
 0x1e7   :  { %2221 = vmatprep.mubr.f32.mxu0 %v2220_v49  ;;  %v2241_v49 = vand.u32 4294901760, %v2240_v52  ;;  %v2250_v36 = vand.u32 4294901760, %v2249_v30  ;;  %v2264_v62 = vsub.f32 %v6877_v40, %v8362_v46  ;;  %v1844_v25 = vmul.f32 0.5, %v6830_v35 }
 0x1e8   :  { %2227 = vmatmul.mubr.f32.gmra.mxu0 %v2226_v34  ;;  %v2255_v57 = vsub.f32 %v6811_v13, %v8359_v0  ;;  %4454 = vmatprep.subr.mxu0 %v8361_v56  ;;  %v6965_v24 = vand.u32 4294901760, %v1971_v7  ;;  %v1940_v34 = vadd.f32 1.0, %v4674_v16  ;;  %v1845_v12 = vmul.f32 0.5, %v6851_v29 }
 0x1e9   :  { %2236 = vmatprep.mubr.f32.mxu0 %v2235_v32  ;;  %2656 = vmatmul.mubr.f32.gmra.mxu1 %v6908_v63  ;;  %v4676_v52 = vpop.eup %4675  ;;  %v6974_v32 = vsub.f32 %v1968_v15, %v6947_v3  ;;  %v6976_v30 = vand.u32 4294901760, %v1970_v61  ;;  %v2265_v35 = vand.u32 4294901760, %v2264_v62  ;;  %v8363_v29 = vand.u32 4294901760, %v6928_v55 }
 0x1ea   :  { %2661 = vmatprep.mubr.f32.mxu1 %v6922_v54  ;;  %v2256_v16 = vand.u32 4294901760, %v2255_v57  ;;  %v4678_v46 = vpop.eup %4677  ;;  %v6980_v38 = vsub.f32 %v1971_v7, %v6965_v24  ;;  %v1941_v0 = vadd.f32 1.0, %v4676_v52  ;;  %v1972_v63 = vmul.f32 %v1940_v34, %v1844_v25 }
 0x1eb   :  { %v2279_v54 = vsub.f32 %v6928_v55, %v8363_v29  ;;  %v1942_v15 = vadd.f32 1.0, %v4678_v46  ;;  %v8364_v44 = vand.u32 4294901760, %v6864_v5  ;;  %v1846_v7 = vmul.f32 0.5, %v6860_v28 }
 0x1ec   :  { %2242 = vmatmul.mubr.f32.gmra.mxu0 %v2241_v49  ;;  %v1973_v56 = vmul.f32 %v1941_v0, %v1845_v12  ;;  %v1847_v34 = vmul.f32 0.5, %v6884_v47  ;;  %v8365_v25 = vand.u32 4294901760, %v6950_v26  ;;  %v7940_v12 = vand.u32 4294901760, %v6980_v38 }
 0x1ed   :  { %2251 = vmatprep.mubr.f32.mxu0 %v2250_v36  ;;  %v2270_v49 = vsub.f32 %v6864_v5, %v8364_v44  ;;  %2663 = vmatmul.mubr.f32.gmra.mxu1 %v6947_v3  ;;  %v4680_v62 = vpop.eup %4679  ;;  %v6993_v36 = vsub.f32 %v1970_v61, %v6976_v30  ;;  %v2280_v28 = vand.u32 4294901760, %v2279_v54  ;;  %v7003_v29 = vand.u32 4294901760, %v1972_v63 }
 0x1ee   :  { %2668 = vmatprep.mubr.f32.mxu1 %v6965_v24  ;;  %v2294_v44 = vsub.f32 %v6950_v26, %v8365_v25  ;;  %v7000_v46 = vand.u32 4294901760, %v1973_v56  ;;  %v1943_v0 = vadd.f32 1.0, %v4680_v62  ;;  %v1974_v61 = vmul.f32 %v1942_v15, %v1846_v7 }
 0x1ef   :  { %v2271_v57 = vand.u32 4294901760, %v2270_v49  ;;  %v8366_v47 = vand.u32 4294901760, %v6960_v42  ;;  %v8367_v54 = vand.u32 4294901760, %v6974_v32  ;;  %v2309_v49 = vsub.f32 %v6980_v38, %v7940_v12 }
 0x1f0   :  { %2257 = vmatmul.mubr.f32.gmra.mxu0 %v2256_v16  ;;  %v7010_v25 = vsub.f32 %v1973_v56, %v7000_v46  ;;  %v1975_v52 = vmul.f32 %v1943_v0, %v1847_v34  ;;  %v2295_v15 = vand.u32 4294901760, %v2294_v44  ;;  %v7023_v56 = vsub.f32 %v1972_v63, %v7003_v29 }
 0x1f1   :  { %2266 = vmatprep.mubr.f32.mxu0 %v2265_v35  ;;  %v2285_v16 = vsub.f32 %v6960_v42, %v8366_v47  ;;  %2670 = vmatmul.mubr.f32.gmra.mxu1 %v6976_v30  ;;  %v2300_v35 = vsub.f32 %v6974_v32, %v8367_v54  ;;  %v7025_v34 = vand.u32 4294901760, %v1974_v61  ;;  %v7939_v0 = vand.u32 4294901760, %v6993_v36 }
 0x1f2   :  { %2675 = vmatprep.mubr.f32.mxu1 %v7000_v46  ;;  %v7016_v62 = vand.u32 4294901760, %v1975_v52  ;;  %v7938_v7 = vand.u32 4294901760, %v7010_v25  ;;  %v2310_v44 = vand.u32 4294901760, %v2309_v49 }
 0x1f3   :  { %8368 = vst [vmem:[#allocation16_spill] sm:$0xff] %v7025_v34  ;;  %v2301_v54 = vand.u32 4294901760, %v2300_v35 }
 0x1f4   :  { %2272 = vmatmul.mubr.f32.gmra.mxu0 %v2271_v57  ;;  %v2286_v57 = vand.u32 4294901760, %v2285_v16  ;;  %v7030_v47 = vsub.f32 %v1975_v52, %v7016_v62  ;;  %v2324_v63 = vsub.f32 %v7010_v25, %v7938_v7  ;;  %v7038_v16 = vsub.f32 %v1974_v61, %v7025_v34 }
 0x1f5   :  { %2281 = vmatprep.mubr.f32.mxu0 %v2280_v28  ;;  %2677 = vmatmul.mubr.f32.gmra.mxu1 %v7003_v29  ;;  %v2315_v52 = vsub.f32 %v6993_v36, %v7939_v0  ;;  %v8370_v0 = vand.u32 4294901760, %v6508_v17 }
 0x1f6   :  { %2682 = vmatprep.mubr.f32.mxu1 %v7016_v62  ;;  %v2338_v28 = vand.u32 4294901760, %v7030_v47  ;;  %v2325_v49 = vand.u32 4294901760, %v2324_v63  ;;  %v2344_v12 = vand.u32 4294901760, %v7038_v16 }
 0x1f7   :  { %v2316_v7 = vand.u32 4294901760, %v2315_v52  ;;  %v8378_v52 = vld [vmem:[#allocation5_spill] sm:$0xff] }
 0x1f8   :  { %2287 = vmatmul.mubr.f32.gmra.mxu0 %v2286_v57  ;;  %v2329_v57 = vand.u32 4294901760, %v7023_v56  ;;  %v2339_v61 = vsub.f32 %v7030_v47, %v2338_v28 }
 0x1f9   :  { %2296 = vmatprep.mubr.f32.mxu0 %v2295_v15  ;;  %2684 = vmatmul.mubr.f32.gmra.mxu1 %v7025_v34  ;;  %v8369_v15 = vand.u32 4294901760, %v6580_v51  ;;  %v8371_v34 = vand.u32 4294901760, %v6614_v59 }
 0x1fa   :  { %v2330_v35 = vsub.f32 %v7023_v56, %v2329_v57 }
 0x1fb   :  { %3061 = vmatprep.mubr.f32.mxu1 %v8369_v15  ;;  %v8382_v15 = vld [vmem:[#allocation88_spill] sm:$0xff] }
 0x1fc   :  { %2302 = vmatmul.mubr.f32.gmra.mxu0 %v2301_v54  ;;  %v2331_v63 = vand.u32 4294901760, %v2330_v35  ;;  %v2345_v54 = vsub.f32 %v7038_v16, %v2344_v12  ;;  %v8385_v35 = vld [vmem:[#allocation17_spill] sm:$0xff] }
 0x1fd   :  { %2311 = vmatprep.mubr.f32.mxu0 %v2310_v44  ;;  %3065 = vmatmul.mubr.f32.vlgmr.msra.gmra.mxu1 %v8370_v0  ;;  %v2340_v44 = vand.u32 4294901760, %v2339_v61  ;;  %v8372_v0 = vand.u32 4294901760, %v6549_v19  ;;  %v8384_v61 = vld [vmem:[#allocation51_spill] sm:$0xff] }
 0x1fe   :  { %3072 = vmatprep.mubr.f32.mxu1 %v8371_v34  ;;  %4535 = vmatpush3.msra.mxu1 %v8261_v39  ;;  %v8373_v34 = vand.u32 4294901760, %v6673_v11  ;;  %v2346_v39 = vand.u32 4294901760, %v2345_v54 }
 0x1ff   :  { %4536 = vmatprep.subr.mxu1 %v8263_v8  ;;  %v8374_v8 = vand.u32 4294901760, %v6564_v45 }
 0x200   :  { %2317 = vmatmul.mubr.f32.gmra.mxu0 %v2316_v7  ;;  %4537 = vmatpush3.msra.mxu1 %v8265_v1  ;;  %v8375_v1 = vld [vmem:[#allocation39_spill] sm:$0xff]  ;;  %v8376_v7 = vand.u32 4294901760, %v6716_v43 }
 0x201   :  { %2326 = vmatprep.mubr.f32.mxu0 %v2325_v49  ;;  %3076 = vmatmul.mubr.f32.gmra.mxu1 %v8372_v0  ;;  %v8383_v49 = vand.u32 4294901760, %v8382_v15  ;;  %v8390_v0 = vand.u32 4294901760, %v6641_v23 }
 0x202   :  { %4538 = vmatprep.subr.mxu1 %v8266_v2  ;;  %3083 = vmatprep.mubr.f32.mxu1 %v8373_v34  ;;  %v8377_v2 = vld [vmem:[#allocation42_spill] sm:$0xff] }
 0x203   :  { %4539 = vmatpush3.msra.mxu1 %v8268_v37  ;;  %v8379_v37 = vld [vmem:[#allocation52_spill] sm:$0xff]  ;;  %v8391_v34 = vld [vmem:[#allocation22_spill] sm:$0xff] }
 0x204   :  { %2332 = vmatmul.mubr.f32.gmra.mxu0 %v2331_v63  ;;  %4540 = vmatprep.subr.mxu1 %v8270_v20  ;;  %v8380_v20 = vand.u32 4294901760, %v6594_v31  ;;  %v8388_v63 = vld [vmem:[#allocation23_spill] sm:$0xff] }
 0x205   :  { %2341 = vmatprep.mubr.f32.mxu0 %v2340_v44  ;;  %4541 = vmatpush3.msra.mxu1 %v8271_v9  ;;  %v8381_v9 = vld [vmem:[#allocation53_spill] sm:$0xff]  ;;  %v8386_v44 = vld [vmem:[#allocation27_spill] sm:$0xff]  ;;  %v8389_v54 = vand.u32 4294901760, %v8388_v63 }
 0x206   :  { %3087 = vmatmul.mubr.f32.gmra.mxu1 %v8374_v8  ;;  %4542 = vmatprep.subr.mxu1 %v8375_v1  ;;  %v8393_v8 = vand.u32 4294901760, %v6815_v10 }
 0x207   :  { %3094 = vmatprep.mubr.f32.mxu1 %v8376_v7  ;;  %4543 = vmatpush3.msra.mxu1 %v8377_v2  ;;  %v8398_v2 = vand.u32 4294901760, %v6663_v53 }
 0x208   :  { %2347 = vmatmul.mubr.f32.gmra.mxu0 %v2346_v39  ;;  %4544 = vmatprep.subr.mxu1 %v8378_v52  ;;  %v8392_v39 = vand.u32 4294901760, %v8391_v34  ;;  %v8399_v52 = vld [vmem:[#allocation34_spill] sm:$0xff] }
 0x209   :  { %2819 = vmatprep.mubr.f32.mxu0 %v6580_v51  ;;  %4545 = vmatpush3.msra.mxu1 %v8379_v37  ;;  %v8387_v51 = vand.u32 4294901760, %v8386_v44  ;;  %v8400_v37 = vand.u32 4294901760, %v8399_v52  ;;  %v8408_v44 = vand.u32 4294901760, %v6700_v6 }
 0x20a   :  { %3098 = vmatmul.mubr.f32.gmra.mxu1 %v8380_v20  ;;  %4546 = vmatprep.subr.mxu1 %v8381_v9  ;;  %v8401_v20 = vand.u32 4294901760, %v6855_v41  ;;  %v8402_v9 = vld [vmem:[#allocation40_spill] sm:$0xff] }
 0x20b   :  { %3105 = vmatprep.mubr.f32.mxu1 %v8383_v49  ;;  %4547 = vmatpush3.msra.mxu1 %v8384_v61  ;;  %v8403_v49 = vand.u32 4294901760, %v8402_v9  ;;  %v8428_v9 = vand.u32 4294901760, %v8323_v18 }
 0x20c   :  { %2822 = vmatmul.mubr.f32.vlgmr.msra.gmra.mxu0 %v6508_v17  ;;  %4548 = vmatprep.subr.mxu1 %v8385_v35  ;;  %v8394_v17 = vld [vmem:[#allocation32_spill] sm:$0xff] }
 0x20d   :  { %2828 = vmatprep.mubr.f32.mxu0 %v6614_v59  ;;  %4455 = vmatpush3.msra.mxu0 %v8387_v51  ;;  %v8395_v1 = vand.u32 4294901760, %v8394_v17  ;;  %v8396_v59 = vld [vmem:[#allocation33_spill] sm:$0xff]  ;;  %v8409_v51 = vld [vmem:[#allocation48_spill] sm:$0xff]  ;;  %v8418_v17 = vand.u32 4294901760, %v6753_v58 }
 0x20e   :  { %4456 = vmatprep.subr.mxu0 %v8389_v54  ;;  %3109 = vmatmul.mubr.f32.gmra.mxu1 %v8390_v0  ;;  %v8397_v7 = vand.u32 4294901760, %v8396_v59  ;;  %v8410_v63 = vand.u32 4294901760, %v8409_v51  ;;  %v8411_v54 = vand.u32 4294901760, %v6891_v27  ;;  %v8412_v0 = vld [vmem:[#allocation6_spill] sm:$0xff]  ;;  %v8438_v51 = vld [vmem:[#allocation56_spill] sm:$0xff] }
 0x20f   :  { %4457 = vmatpush3.msra.mxu0 %v8392_v39  ;;  %3116 = vmatprep.mubr.f32.mxu1 %v8393_v8  ;;  %v8413_v34 = vand.u32 4294901760, %v8412_v0  ;;  %v8443_v0 = vld [vmem:[#allocation69_spill] sm:$0xff] }
 0x210   :  { %2831 = vmatmul.mubr.f32.gmra.mxu0 %v6549_v19  ;;  %4458 = vmatprep.subr.mxu0 %v8395_v1  ;;  %v8404_v19 = vld [vmem:[#allocation49_spill] sm:$0xff] }
 0x211   :  { %2837 = vmatprep.mubr.f32.mxu0 %v6673_v11  ;;  %4459 = vmatpush3.msra.mxu0 %v8397_v7  ;;  %v8405_v61 = vand.u32 4294901760, %v8404_v19  ;;  %v8406_v11 = vld [vmem:[#allocation45_spill] sm:$0xff]  ;;  %v8421_v7 = vand.u32 4294901760, %v6808_v22 }
 0x212   :  { %3120 = vmatmul.mubr.f32.gmra.mxu1 %v8398_v2  ;;  %4460 = vmatprep.subr.mxu0 %v8400_v37  ;;  %v8407_v35 = vand.u32 4294901760, %v8406_v11  ;;  %v8419_v1 = vld [vmem:[#allocation57_spill] sm:$0xff]  ;;  %v8422_v2 = vld [vmem:[#allocation54_spill] sm:$0xff]  ;;  %v8434_v11 = vand.u32 4294901760, %v6811_v13 }
 0x213   :  { %3127 = vmatprep.mubr.f32.mxu1 %v8401_v20  ;;  %4461 = vmatpush3.msra.mxu0 %v8403_v49  ;;  %v8420_v59 = vand.u32 4294901760, %v8419_v1  ;;  %v8423_v52 = vand.u32 4294901760, %v8422_v2  ;;  %v8427_v20 = vand.u32 4294901760, %v6772_v60  ;;  %v8429_v49 = vand.u32 4294901760, %v6824_v14  ;;  %v8430_v19 = vld [vmem:[#allocation9_spill] sm:$0xff] }
 0x214   :  { %2840 = vmatmul.mubr.f32.gmra.mxu0 %v6564_v45  ;;  %4462 = vmatprep.subr.mxu0 %v8405_v61  ;;  %v8414_v45 = vld [vmem:[#allocation7_spill] sm:$0xff]  ;;  %v8457_v2 = vand.u32 4294901760, %v6974_v32 }
 0x215   :  { %2846 = vmatprep.mubr.f32.mxu0 %v6716_v43  ;;  %4463 = vmatpush3.msra.mxu0 %v8407_v35  ;;  %v8415_v39 = vand.u32 4294901760, %v8414_v45  ;;  %v8416_v43 = vld [vmem:[#allocation14_spill] sm:$0xff]  ;;  %v8435_v35 = vld [vmem:[#allocation12_spill] sm:$0xff]  ;;  %v8445_v45 = vand.u32 4294901760, %v6928_v55 }
 0x216   :  { %3131 = vmatmul.mubr.f32.gmra.mxu1 %v8408_v44  ;;  %4464 = vmatprep.subr.mxu0 %v8410_v63  ;;  %v8417_v8 = vand.u32 4294901760, %v8416_v43  ;;  %v8436_v18 = vand.u32 4294901760, %v8435_v35  ;;  %v8437_v44 = vand.u32 4294901760, %v6877_v40  ;;  %v8493_v35 = vld [vmem:[#allocation81_spill] sm:$0xff] }
 0x217   :  { %3138 = vmatprep.mubr.f32.mxu1 %v8411_v54  ;;  %4465 = vmatpush3.msra.mxu0 %v8413_v34  ;;  %v8442_v54 = vand.u32 4294901760, %v6864_v5  ;;  %v8444_v34 = vand.u32 4294901760, %v8443_v0  ;;  %v8501_v0 = vld [vmem:[#allocation87_spill] sm:$0xff] }
 0x218   :  { %2849 = vmatmul.mubr.f32.gmra.mxu0 %v6594_v31  ;;  %4466 = vmatprep.subr.mxu0 %v8415_v39  ;;  %v8424_v31 = vld [vmem:[#allocation8_spill] sm:$0xff]  ;;  %v8446_v39 = vld [vmem:[#allocation59_spill] sm:$0xff] }
 0x219   :  { %2855 = vmatprep.mubr.f32.mxu0 %v8382_v15  ;;  %4467 = vmatpush3.msra.mxu0 %v8417_v8  ;;  %v8425_v15 = vld [vmem:[#allocation10_spill] sm:$0xff]  ;;  %v8450_v8 = vand.u32 4294901760, %v6960_v42 }
 0x21a   :  { %3142 = vmatmul.mubr.f32.gmra.mxu1 %v8418_v17  ;;  %4468 = vmatprep.subr.mxu0 %v8420_v59  ;;  %v8426_v37 = vand.u32 4294901760, %v8425_v15  ;;  %v8451_v17 = vld [vmem:[#allocation29_spill] sm:$0xff]  ;;  %v8453_v59 = vand.u32 4294901760, %v6950_v26  ;;  %v8460_v15 = vand.u32 4294901760, %v8339_v21 }
 0x21b   :  { %3149 = vmatprep.mubr.f32.mxu1 %v8421_v7  ;;  %4469 = vmatpush3.msra.mxu0 %v8423_v52  ;;  %v8452_v1 = vand.u32 4294901760, %v8451_v17  ;;  %v8454_v7 = vld [vmem:[#allocation66_spill] sm:$0xff]  ;;  %v8458_v52 = vld [vmem:[#allocation21_spill] sm:$0xff] }
 0x21c   :  { %2858 = vmatmul.mubr.f32.gmra.mxu0 %v6641_v23  ;;  %4549 = vmatpush3.msra.mxu1 %v8424_v31  ;;  %v8431_v23 = vld [vmem:[#allocation20_spill] sm:$0xff]  ;;  %v8459_v31 = vand.u32 4294901760, %v6980_v38 }
 0x21d   :  { %2864 = vmatprep.mubr.f32.mxu0 %v6815_v10  ;;  %4470 = vmatprep.subr.mxu0 %v8426_v37  ;;  %v8432_v10 = vld [vmem:[#allocation63_spill] sm:$0xff]  ;;  %v8464_v37 = vand.u32 4294901760, %v8341_v33 }
 0x21e   :  { %3153 = vmatmul.mubr.f32.gmra.mxu1 %v8427_v20  ;;  %4471 = vmatpush3.msra.mxu0 %v8428_v9  ;;  %v8433_v61 = vand.u32 4294901760, %v8432_v10  ;;  %v8465_v20 = vand.u32 4294901760, %v7010_v25  ;;  %v8470_v9 = vld [vmem:[#allocation46_spill] sm:$0xff]  ;;  %v8483_v10 = vld [vmem:[#allocation73_spill] sm:$0xff] }
 0x21f   :  { %3160 = vmatprep.mubr.f32.mxu1 %v8429_v49  ;;  %4550 = vmatprep.subr.mxu1 %v8430_v19  ;;  %v8476_v49 = vld [vmem:[#allocation61_spill] sm:$0xff] }
 0x220   :  { %2867 = vmatmul.mubr.f32.gmra.mxu0 %v6663_v53  ;;  %4551 = vmatpush3.msra.mxu1 %v8431_v23  ;;  %v8439_v53 = vld [vmem:[#allocation24_spill] sm:$0xff]  ;;  %v8481_v23 = vld [vmem:[#allocation75_spill] sm:$0xff] }
 0x221   :  { %2873 = vmatprep.mubr.f32.mxu0 %v6855_v41  ;;  %4472 = vmatprep.subr.mxu0 %v8433_v61  ;;  %v8440_v41 = vld [vmem:[#allocation62_spill] sm:$0xff] }
 0x222   :  { %3164 = vmatmul.mubr.f32.gmra.mxu1 %v8434_v11  ;;  %4473 = vmatpush3.msra.mxu0 %v8436_v18  ;;  %v8441_v63 = vand.u32 4294901760, %v8440_v41  ;;  %v8486_v61 = vld [vmem:[#allocation74_spill] sm:$0xff]  ;;  %v8492_v11 = vld [vmem:[#allocation80_spill] sm:$0xff] }
 0x223   :  { %3171 = vmatprep.mubr.f32.mxu1 %v8437_v44  ;;  %4552 = vmatprep.subr.mxu1 %v8438_v51  ;;  %v8494_v18 = vld [vmem:[#allocation84_spill] sm:$0xff]  ;;  %v8496_v51 = vld [vmem:[#allocation79_spill] sm:$0xff]  ;;  %v8498_v41 = vld [vmem:[#allocation94_spill] sm:$0xff] }
 0x224   :  { %2876 = vmatmul.mubr.f32.gmra.mxu0 %v6700_v6  ;;  %4553 = vmatpush3.msra.mxu1 %v8439_v53  ;;  %v8447_v6 = vld [vmem:[#allocation67_spill] sm:$0xff]  ;;  %v8495_v44 = vld [vmem:[#allocation92_spill] sm:$0xff] }
 0x225   :  { %2882 = vmatprep.mubr.f32.mxu0 %v6891_v27  ;;  %4474 = vmatprep.subr.mxu0 %v8441_v63  ;;  %v8448_v27 = vld [vmem:[#allocation18_spill] sm:$0xff]  ;;  %v8497_v53 = vld [vmem:[#allocation96_spill] sm:$0xff]  ;;  %v8499_v63 = vld [vmem:[#allocation85_spill] sm:$0xff] }
 0x226   :  { %3175 = vmatmul.mubr.f32.gmra.mxu1 %v8442_v54  ;;  %4475 = vmatpush3.msra.mxu0 %v8444_v34  ;;  %v8449_v43 = vand.u32 4294901760, %v8448_v27  ;;  %v8500_v54 = vld [vmem:[#allocation83_spill] sm:$0xff]  ;;  %v8502_v34 = vld [vmem:[#allocation89_spill] sm:$0xff] }
 0x227   :  { %3182 = vmatprep.mubr.f32.mxu1 %v8445_v45  ;;  %4554 = vmatprep.subr.mxu1 %v8446_v39  ;;  %v8503_v45 = vld [vmem:[#allocation13_spill] sm:$0xff] }
 0x228   :  { %2885 = vmatmul.mubr.f32.gmra.mxu0 %v6753_v58  ;;  %4555 = vmatpush3.msra.mxu1 %v8447_v6  ;;  %v8455_v58 = vld [vmem:[#allocation68_spill] sm:$0xff] }
 0x229   :  { %2891 = vmatprep.mubr.f32.mxu0 %v6808_v22  ;;  %4476 = vmatprep.subr.mxu0 %v8449_v43  ;;  %v8456_v22 = vand.u32 4294901760, %v8338_v50  ;;  %v8463_v50 = vand.u32 4294901760, %v6993_v36 }
 0x22a   :  { %3186 = vmatmul.mubr.f32.gmra.mxu1 %v8450_v8  ;;  %4477 = vmatpush3.msra.mxu0 %v8452_v1 }
 0x22b   :  { %3193 = vmatprep.mubr.f32.mxu1 %v8453_v59  ;;  %4556 = vmatprep.subr.mxu1 %v8454_v7  ;;  %v8504_v59 = vld [vmem:[#allocation16_spill] sm:$0xff] }
 0x22c   :  { %2894 = vmatmul.mubr.f32.gmra.mxu0 %v6772_v60  ;;  %4557 = vmatpush3.msra.mxu1 %v8455_v58  ;;  %v8461_v60 = vld [vmem:[#allocation30_spill] sm:$0xff] }
 0x22d   :  { %2900 = vmatprep.mubr.f32.mxu0 %v6824_v14  ;;  %4478 = vmatprep.subr.mxu0 %v8456_v22  ;;  %v8462_v14 = vld [vmem:[#allocation36_spill] sm:$0xff] }
 0x22e   :  { %3197 = vmatmul.mubr.f32.gmra.mxu1 %v8457_v2  ;;  %4558 = vmatprep.subr.mxu1 %v8458_v52  ;;  %v7307_v52 = vld [vmem:[%s7564_s4] ss:$0 sm:$0xff]  ;;  %s4703_s4 = smov [#allocation2]  }
 0x22f   :  { %3204 = vmatprep.mubr.f32.mxu1 %v8459_v31  ;;  %4479 = vmatpush3.msra.mxu0 %v8460_v15  ;;  %s3738_s22 = sshll.u32 %s4703_s4, 4  ;;  %s3739_s22 = int_to_ptr.vmem [resolvable:$true] %s3738_s22 }
 0x230   :  { %2903 = vmatmul.mubr.f32.gmra.mxu0 %v6811_v13  ;;  %4559 = vmatpush3.msra.mxu1 %v8461_v60  ;;  %v8466_v13 = vld [vmem:[#allocation43_spill] sm:$0xff]  ;;  %s4681_s23 = scalar_lea.vmem %s3739_s22, 2048  ;;  %p4686_p1 = scmp.lt.s32.totalorder %s3739_s22, %s3739_s22 }
 0x231   :  { %2909 = vmatprep.mubr.f32.mxu0 %v6877_v40  ;;  %4560 = vmatprep.subr.mxu1 %v8462_v14  ;;  %v8467_v21 = vand.u32 4294901760, %v8466_v13  ;;  %v8468_v40 = vld [vmem:[#allocation47_spill] sm:$0xff]  ;;  %p4682_p0 = scmp.ne.s32.totalorder %s3739_s22, %s4681_s23  ;;  %p4687_p2 = scmp.lt.s32.totalorder %s4681_s23, %s4681_s23 }
 0x232   :  { %3208 = vmatmul.mubr.f32.gmra.mxu1 %v8463_v50  ;;  %4480 = vmatprep.subr.mxu0 %v8464_v37  ;;  %v8469_v33 = vand.u32 4294901760, %v8468_v40 }
 0x233   :  { %3215 = vmatprep.mubr.f32.mxu1 %v8465_v20  ;;  %4561 = vmatpush3.msra.mxu1 %v8340_v48  ;;  %v8472_v48 = vld [vmem:[#allocation58_spill] sm:$0xff]  ;;  %p4688_p3 = por %p4687_p2, %p4686_p1 }
 0x234   :  { %2912 = vmatmul.mubr.f32.gmra.mxu0 %v6864_v5  ;;  %4562 = vmatprep.subr.mxu1 %v8342_v4  ;;  %v8471_v5 = vld [vmem:[#allocation55_spill] sm:$0xff]  ;;  %v8473_v4 = vld [vmem:[#allocation50_spill] sm:$0xff] }
 0x235   :  { %2918 = vmatprep.mubr.f32.mxu0 %v6928_v55  ;;  %4481 = vmatpush3.msra.mxu0 %v8467_v21  ;;  %v8474_v55 = vand.u32 4294901760, %v8473_v4  ;;  %p4689_p4 = pnand %p4688_p3, %p4682_p0 }
 0x236   :  { %3219 = vmatmul.mubr.f32.gmra.mxu1 %v2329_v57  ;;  %4482 = vmatprep.subr.mxu0 %v8469_v33  ;;  %v8475_v57 = vld [vmem:[#allocation70_spill] sm:$0xff] }
 0x237   :  { %3226 = vmatprep.mubr.f32.mxu1 %v2338_v28  ;;  %4563 = vmatpush3.msra.mxu1 %v8470_v9  ;;  %v8477_v28 = vand.u32 4294901760, %v8476_v49 }
 0x238   :  { %2921 = vmatmul.mubr.f32.gmra.mxu0 %v6960_v42  ;;  %4564 = vmatprep.subr.mxu1 %v8471_v5  ;;  %v8478_v42 = vld [vmem:[#allocation64_spill] sm:$0xff] }
 0x239   :  { %2927 = vmatprep.mubr.f32.mxu0 %v6950_v26  ;;  %4565 = vmatpush3.msra.mxu1 %v8472_v48  ;;  %v8479_v19 = vand.u32 4294901760, %v8478_v42  ;;  %v8480_v26 = vld [vmem:[#allocation65_spill] sm:$0xff] }
 0x23a   :  { %3230 = vmatmul.mubr.f32.gmra.mxu1 %v2344_v12  ;;  %4483 = vmatpush3.msra.mxu0 %v8474_v55  ;;  %v8482_v12 = vld [vmem:[#allocation71_spill] sm:$0xff] }
 0x23b   :  { %3605 = vmatprep.mubr.f32.mxu1 %v8475_v57  ;;  %4484 = vmatprep.subr.mxu0 %v8477_v28 }
 0x23c   :  { %2930 = vmatmul.mubr.f32.gmra.mxu0 %v6974_v32  ;;  %v8485_v32 = vld [vmem:[#allocation77_spill] sm:$0xff] }
 0x23d   :  { %2936 = vmatprep.mubr.f32.mxu0 %v6980_v38  ;;  %4485 = vmatpush3.msra.mxu0 %v8479_v19  ;;  %v8484_v38 = vld [vmem:[#allocation72_spill] sm:$0xff] }
 0x23e   :  { %3607 = vmatmul.mubr.f32.vlgmr.msra.gmra.mxu1 %v8480_v26 }
 0x23f   :  { %3612 = vmatprep.mubr.f32.mxu1 %v8481_v23 }
 0x240   :  { %2939 = vmatmul.mubr.f32.gmra.mxu0 %v6993_v36  ;;  %v8487_v36 = vld [vmem:[#allocation82_spill] sm:$0xff] }
 0x241   :  { %2945 = vmatprep.mubr.f32.mxu0 %v7010_v25  ;;  %v8488_v25 = vld [vmem:[#allocation76_spill] sm:$0xff] }
 0x242   :  { %3614 = vmatmul.mubr.f32.gmra.mxu1 %v8482_v12 }
 0x243   :  { %3619 = vmatprep.mubr.f32.mxu1 %v8483_v10 }
 0x244   :  { %2948 = vmatmul.mubr.f32.gmra.mxu0 %v7023_v56  ;;  %v8489_v56 = vld [vmem:[#allocation86_spill] sm:$0xff] }
 0x245   :  { %2954 = vmatprep.mubr.f32.mxu0 %v7030_v47  ;;  %v8490_v47 = vld [vmem:[#allocation78_spill] sm:$0xff] }
 0x246   :  { %3621 = vmatmul.mubr.f32.gmra.mxu1 %v8484_v38 }
 0x247   :  { %3626 = vmatprep.mubr.f32.mxu1 %v8485_v32 }
 0x248   :  { %2957 = vmatmul.mubr.f32.gmra.mxu0 %v7038_v16  ;;  %v8491_v16 = vld [vmem:[#allocation90_spill] sm:$0xff] }
 0x249   :  { %3396 = vmatprep.mubr.f32.mxu0 %v8475_v57 }
 0x24a   :  { %3628 = vmatmul.mubr.f32.gmra.mxu1 %v8486_v61 }
 0x24b   :  { %3633 = vmatprep.mubr.f32.mxu1 %v8487_v36 }
 0x24c   :  { %3398 = vmatmul.mubr.f32.vlgmr.msra.gmra.mxu0 %v8480_v26 }
 0x24d   :  { %3403 = vmatprep.mubr.f32.mxu0 %v8481_v23 }
 0x24e   :  { %3635 = vmatmul.mubr.f32.gmra.mxu1 %v8488_v25 }
 0x24f   :  { %3640 = vmatprep.mubr.f32.mxu1 %v8489_v56 }
 0x250   :  { %3405 = vmatmul.mubr.f32.gmra.mxu0 %v8482_v12 }
 0x251   :  { %3410 = vmatprep.mubr.f32.mxu0 %v8483_v10 }
 0x252   :  { %3642 = vmatmul.mubr.f32.gmra.mxu1 %v8490_v47 }
 0x253   :  { %3647 = vmatprep.mubr.f32.mxu1 %v8491_v16 }
 0x254   :  { %3412 = vmatmul.mubr.f32.gmra.mxu0 %v8484_v38 }
 0x255   :  { %3417 = vmatprep.mubr.f32.mxu0 %v8485_v32 }
 0x256   :  { %3649 = vmatmul.mubr.f32.gmra.mxu1 %v8492_v11 }
 0x257   :  { %3654 = vmatprep.mubr.f32.mxu1 %v8493_v35 }
 0x258   :  { %3419 = vmatmul.mubr.f32.gmra.mxu0 %v8486_v61 }
 0x259   :  { %3424 = vmatprep.mubr.f32.mxu0 %v8487_v36 }
 0x25a   :  { %3656 = vmatmul.mubr.f32.gmra.mxu1 %v8494_v18 }
 0x25b   :  { %3661 = vmatprep.mubr.f32.mxu1 %v8495_v44 }
 0x25c   :  { %3426 = vmatmul.mubr.f32.gmra.mxu0 %v8488_v25 }
 0x25d   :  { %3431 = vmatprep.mubr.f32.mxu0 %v8489_v56 }
 0x25e   :  { %3663 = vmatmul.mubr.f32.gmra.mxu1 %v8496_v51 }
 0x25f   :  { %3668 = vmatprep.mubr.f32.mxu1 %v8497_v53 }
 0x260   :  { %3433 = vmatmul.mubr.f32.gmra.mxu0 %v8490_v47 }
 0x261   :  { %3438 = vmatprep.mubr.f32.mxu0 %v8491_v16 }
 0x262   :  { %3670 = vmatmul.mubr.f32.gmra.mxu1 %v8498_v41 }
 0x263   :  { %3675 = vmatprep.mubr.f32.mxu1 %v8499_v63 }
 0x264   :  { %3440 = vmatmul.mubr.f32.gmra.mxu0 %v8492_v11 }
 0x265   :  { %3445 = vmatprep.mubr.f32.mxu0 %v8493_v35 }
 0x266   :  { %3677 = vmatmul.mubr.f32.gmra.mxu1 %v8500_v54 }
 0x267   :  { %3682 = vmatprep.mubr.f32.mxu1 %v8501_v0 }
 0x268   :  { %3447 = vmatmul.mubr.f32.gmra.mxu0 %v8494_v18 }
 0x269   :  { %3452 = vmatprep.mubr.f32.mxu0 %v8495_v44  ;;  %v4246_v39 = vpop.f32.mrf.mxu1 }
 0x26a   :  { %3684 = vmatmul.mubr.f32.gmra.mxu1 %v8502_v34 }
 0x26b   :  { %3689 = vmatprep.mubr.f32.mxu1 %v8503_v45  ;;  %v4247_v6 = vpop.f32.mrf.mxu1 }
 0x26c   :  { %3454 = vmatmul.mubr.f32.gmra.mxu0 %v8496_v51  ;;  %v4248_v27 = vadd.f32 %v4247_v6, %v4246_v39 }
 0x26d   :  { %3459 = vmatprep.mubr.f32.mxu0 %v8497_v53 }
 0x26e   :  { %3691 = vmatmul.mubr.f32.gmra.mxu1 %v6947_v3 }
 0x26f   :  { %3696 = vmatprep.mubr.f32.mxu1 %v6965_v24 }
 0x270   :  { %3461 = vmatmul.mubr.f32.gmra.mxu0 %v8498_v41  ;;  %v4249_v43 = vpop.f32.mrf.mxu1 }
 0x271   :  { %3466 = vmatprep.mubr.f32.mxu0 %v8499_v63 }
 0x272   :  { %3698 = vmatmul.mubr.f32.gmra.mxu1 %v6976_v30  ;;  %v4250_v8 = vpop.f32.mrf.mxu1 }
 0x273   :  { %3703 = vmatprep.mubr.f32.mxu1 %v7000_v46  ;;  %v4251_v17 = vadd.f32 %v4250_v8, %v4249_v43 }
 0x274   :  { %3468 = vmatmul.mubr.f32.gmra.mxu0 %v8500_v54 }
 0x275   :  { %3473 = vmatprep.mubr.f32.mxu0 %v8501_v0  ;;  %v4252_v1 = vpop.f32.mrf.mxu1 }
 0x276   :  { %3705 = vmatmul.mubr.f32.gmra.mxu1 %v7003_v29 }
 0x277   :  { %3710 = vmatprep.mubr.f32.mxu1 %v7016_v62  ;;  %v4253_v7 = vpop.f32.mrf.mxu1 }
 0x278   :  { %3475 = vmatmul.mubr.f32.gmra.mxu0 %v8502_v34  ;;  %v4254_v58 = vadd.f32 %v4253_v7, %v4252_v1 }
 0x279   :  { %3480 = vmatprep.mubr.f32.mxu0 %v8503_v45 }
 0x27a   :  { %3712 = vmatmul.mubr.f32.gmra.mxu1 %v8504_v59 }
 0x27c   :  { %3482 = vmatmul.mubr.f32.gmra.mxu0 %v6947_v3  ;;  %v4166_v22 = vpop.f32.mrf.mxu0  ;;  %v4255_v2 = vpop.f32.mrf.mxu1 }
 0x27d   :  { %3487 = vmatprep.mubr.f32.mxu0 %v6965_v24 }
 0x27e   :  { %v4167_v31 = vpop.f32.mrf.mxu0  ;;  %v4256_v60 = vpop.f32.mrf.mxu1 }
 0x27f   :  { %v4168_v15 = vadd.f32 %v4167_v31, %v4166_v22  ;;  %v4257_v14 = vadd.f32 %v4256_v60, %v4255_v2 }
 0x280   :  { %3489 = vmatmul.mubr.f32.gmra.mxu0 %v6976_v30 }
 0x281   :  { %3494 = vmatprep.mubr.f32.mxu0 %v7000_v46  ;;  %v2124_v50 = vadd.f32 %v4168_v15, %v7307_v52 }
 0x282   :  { %v4169_v3 = vpop.f32.mrf.mxu0 }
 0x283   :  { %v4258_v24 = vpop.f32.mrf.mxu1  ;;  %v7313_v30 = vadd.f32 %v4248_v27, %v2124_v50 }
 0x284   :  { %3496 = vmatmul.mubr.f32.gmra.mxu0 %v7003_v29  ;;  %v4170_v37 = vpop.f32.mrf.mxu0 }
 0x285   :  { %3501 = vmatprep.mubr.f32.mxu0 %v7016_v62  ;;  %v4171_v20 = vadd.f32 %v4170_v37, %v4169_v3  ;;  %v4259_v13 = vpop.f32.mrf.mxu1 }
 0x286   :  { %v4260_v21 = vadd.f32 %v4259_v13, %v4258_v24 }
 0x287   :  { %v2139_v46 = vadd.f32 %v4171_v20, %v7307_v52 }
 0x288   :  { %3503 = vmatmul.mubr.f32.gmra.mxu0 %v8504_v59 }
 0x289   :  { %v4172_v40 = vpop.f32.mrf.mxu0  ;;  %v7317_v33 = vadd.f32 %v4251_v17, %v2139_v46 }
 0x28a   :  { %v4261_v9 = vpop.f32.mrf.mxu1 }
 0x28b   :  { %v4173_v5 = vpop.f32.mrf.mxu0 }
 0x28c   :  { %v4174_v29 = vadd.f32 %v4173_v5, %v4172_v40  ;;  %v4262_v48 = vpop.f32.mrf.mxu1 }
 0x28d   :  { %v4263_v4 = vadd.f32 %v4262_v48, %v4261_v9 }
 0x28e   :  { %v2154_v62 = vadd.f32 %v4174_v29, %v7307_v52 }
 0x290   :  { %v4175_v55 = vpop.f32.mrf.mxu0  ;;  %v4264_v57 = vpop.f32.mrf.mxu1  ;;  %v7320_v49 = vadd.f32 %v4254_v58, %v2154_v62 }
 0x292   :  { %v4176_v28 = vpop.f32.mrf.mxu0  ;;  %v4265_v42 = vpop.f32.mrf.mxu1 }
 0x293   :  { %v4177_v19 = vadd.f32 %v4176_v28, %v4175_v55  ;;  %v4266_v26 = vadd.f32 %v4265_v42, %v4264_v57 }
 0x295   :  { %v2169_v23 = vadd.f32 %v4177_v19, %v7307_v52 }
 0x296   :  { %v4178_v12 = vpop.f32.mrf.mxu0 }
 0x297   :  { %v7323_v10 = vadd.f32 %v4257_v14, %v2169_v23 }
 0x298   :  { %v4179_v38 = vpop.f32.mrf.mxu0  ;;  %v4267_v32 = vpop.f32.mrf.mxu1 }
 0x299   :  { %v4180_v61 = vadd.f32 %v4179_v38, %v4178_v12 }
 0x29a   :  { %v4268_v36 = vpop.f32.mrf.mxu1 }
 0x29b   :  { %v2184_v25 = vadd.f32 %v4180_v61, %v7307_v52  ;;  %v4269_v56 = vadd.f32 %v4268_v36, %v4267_v32 }
 0x29d   :  { %v4270_v16 = vpop.f32.mrf.mxu1  ;;  %v7326_v11 = vadd.f32 %v4260_v21, %v2184_v25 }
 0x29e   :  { %v4181_v47 = vpop.f32.mrf.mxu0 }
 0x29f   :  { %v4271_v18 = vpop.f32.mrf.mxu1 }
 0x2a0   :  { %v4182_v35 = vpop.f32.mrf.mxu0  ;;  %v4272_v51 = vadd.f32 %v4271_v18, %v4270_v16 }
 0x2a1   :  { %v4183_v44 = vadd.f32 %v4182_v35, %v4181_v47  ;;  %v4273_v53 = vpop.f32.mrf.mxu1 }
 0x2a3   :  { %v2199_v41 = vadd.f32 %v4183_v44, %v7307_v52  ;;  %v4184_v63 = vpop.f32.mrf.mxu0  ;;  %v4274_v54 = vpop.f32.mrf.mxu1 }
 0x2a4   :  { %v4275_v0 = vadd.f32 %v4274_v54, %v4273_v53 }
 0x2a5   :  { %v7329_v34 = vadd.f32 %v4263_v4, %v2199_v41  ;;  %v4185_v45 = vpop.f32.mrf.mxu0  ;;  %v4276_v39 = vpop.f32.mrf.mxu1 }
 0x2a6   :  { %v4186_v6 = vadd.f32 %v4185_v45, %v4184_v63 }
 0x2a7   :  { %v4277_v43 = vpop.f32.mrf.mxu1 }
 0x2a8   :  { %v4187_v27 = vpop.f32.mrf.mxu0  ;;  %v2214_v8 = vadd.f32 %v4186_v6, %v7307_v52  ;;  %v4278_v17 = vadd.f32 %v4277_v43, %v4276_v39 }
 0x2a9   :  { %v4279_v59 = vpop.f32.mrf.mxu1 }
 0x2aa   :  { %v4188_v1 = vpop.f32.mrf.mxu0  ;;  %v7332_v58 = vadd.f32 %v4266_v26, %v2214_v8 }
 0x2ab   :  { %v4189_v7 = vadd.f32 %v4188_v1, %v4187_v27  ;;  %v4280_v2 = vpop.f32.mrf.mxu1 }
 0x2ac   :  { %v4190_v22 = vpop.f32.mrf.mxu0  ;;  %v4281_v15 = vadd.f32 %v4280_v2, %v4279_v59 }
 0x2ad   :  { %v2229_v31 = vadd.f32 %v4189_v7, %v7307_v52  ;;  %v4282_v14 = vpop.f32.mrf.mxu1 }
 0x2ae   :  { %v4191_v60 = vpop.f32.mrf.mxu0 }
 0x2af   :  { %v4192_v50 = vadd.f32 %v4191_v60, %v4190_v22  ;;  %v7335_v3 = vadd.f32 %v4269_v56, %v2229_v31  ;;  %v4283_v37 = vpop.f32.mrf.mxu1 }
 0x2b0   :  { %v4193_v24 = vpop.f32.mrf.mxu0  ;;  %v4284_v13 = vadd.f32 %v4283_v37, %v4282_v14 }
 0x2b1   :  { %v2244_v20 = vadd.f32 %v4192_v50, %v7307_v52  ;;  %v4285_v46 = vpop.f32.mrf.mxu1 }
 0x2b2   :  { %v4194_v21 = vpop.f32.mrf.mxu0 }
 0x2b3   :  { %v4195_v40 = vadd.f32 %v4194_v21, %v4193_v24  ;;  %v7338_v9 = vadd.f32 %v4272_v51, %v2244_v20  ;;  %v4286_v29 = vpop.f32.mrf.mxu1 }
 0x2b4   :  { %v4196_v5 = vpop.f32.mrf.mxu0  ;;  %v4287_v4 = vadd.f32 %v4286_v29, %v4285_v46 }
 0x2b5   :  { %v2259_v48 = vadd.f32 %v4195_v40, %v7307_v52  ;;  %v4288_v55 = vpop.f32.mrf.mxu1 }
 0x2b6   :  { %v4197_v62 = vpop.f32.mrf.mxu0 }
 0x2b7   :  { %v4198_v57 = vadd.f32 %v4197_v62, %v4196_v5  ;;  %v7341_v28 = vadd.f32 %v4275_v0, %v2259_v48  ;;  %v4289_v19 = vpop.f32.mrf.mxu1 }
 0x2b8   :  { %v4199_v42 = vpop.f32.mrf.mxu0  ;;  %v4290_v23 = vadd.f32 %v4289_v19, %v4288_v55 }
 0x2b9   :  { %8505 = vst [vmem:[#allocation91_spill] sm:$0xff] %v7341_v28  ;;  %v2274_v26 = vadd.f32 %v4198_v57, %v7307_v52  ;;  %v4291_v38 = vpop.f32.mrf.mxu1 }
 0x2ba   :  { %v4200_v12 = vpop.f32.mrf.mxu0 }
 0x2bb   :  { %v4201_v32 = vadd.f32 %v4200_v12, %v4199_v42  ;;  %v7344_v61 = vadd.f32 %v4278_v17, %v2274_v26  ;;  %v4292_v25 = vpop.f32.mrf.mxu1 }
 0x2bc   :  { %v4202_v36 = vpop.f32.mrf.mxu0  ;;  %v4293_v47 = vadd.f32 %v4292_v25, %v4291_v38 }
 0x2bd   :  { %8506 = vst [vmem:[#allocation19_spill] sm:$0xff] %v7344_v61  ;;  %v2289_v56 = vadd.f32 %v4201_v32, %v7307_v52  ;;  %v7347_v35 = vpop.f32.mrf.mxu1 }
 0x2be   :  { %v4203_v16 = vpop.f32.mrf.mxu0 }
 0x2bf   :  { %v4204_v18 = vadd.f32 %v4203_v16, %v4202_v36  ;;  %v7349_v44 = vadd.f32 %v4281_v15, %v2289_v56  ;;  %v7351_v53 = vpop.f32.mrf.mxu1 }
 0x2c0   :  { %v4205_v51 = vpop.f32.mrf.mxu0 }
 0x2c1   :  { %8507 = vst [vmem:[#allocation25_spill] sm:$0xff] %v7349_v44  ;;  %v2304_v41 = vadd.f32 %v4204_v18, %v7307_v52  ;;  %v7354_v54 = vpop.f32.mrf.mxu1 }
 0x2c2   :  { %v4206_v63 = vpop.f32.mrf.mxu0 }
 0x2c3   :  { %v4207_v0 = vadd.f32 %v4206_v63, %v4205_v51  ;;  %v7356_v45 = vadd.f32 %v4284_v13, %v2304_v41  ;;  %v7358_v6 = vpop.f32.mrf.mxu1 }
 0x2c4   :  { %v4208_v39 = vpop.f32.mrf.mxu0 }
 0x2c5   :  { %8508 = vst [vmem:[#allocation28_spill] sm:$0xff] %v7356_v45  ;;  %v2319_v27 = vadd.f32 %v4207_v0, %v7307_v52 }
 0x2c6   :  { %v4209_v43 = vpop.f32.mrf.mxu0  ;;  %v7361_v8 = vpop.f32.mrf.mxu1 }
 0x2c7   :  { %v4210_v17 = vadd.f32 %v4209_v43, %v4208_v39  ;;  %v7363_v1 = vadd.f32 %v4287_v4, %v2319_v27 }
 0x2c8   :  { %v4211_v59 = vpop.f32.mrf.mxu0  ;;  %v7365_v7 = vpop.f32.mrf.mxu1 }
 0x2c9   :  { %8509 = vst [vmem:[#allocation37_spill] sm:$0xff] %v7363_v1  ;;  %v2334_v22 = vadd.f32 %v4210_v17, %v7307_v52 }
 0x2ca   :  { %v4212_v2 = vpop.f32.mrf.mxu0  ;;  %v7368_v31 = vpop.f32.mrf.mxu1 }
 0x2cb   :  { %v4213_v15 = vadd.f32 %v4212_v2, %v4211_v59  ;;  %v7370_v60 = vadd.f32 %v4290_v23, %v2334_v22 }
 0x2cc   :  { %v4326_v14 = vpop.f32.mrf.mxu0  ;;  %v7372_v50 = vpop.f32.mrf.mxu1 }
 0x2cd   :  { %8510 = vst [vmem:[#allocation35_spill] sm:$0xff] %v7370_v60  ;;  %v2349_v24 = vadd.f32 %v4213_v15, %v7307_v52 }
 0x2ce   :  { %v4327_v37 = vpop.f32.mrf.mxu0  ;;  %v7375_v20 = vpop.f32.mrf.mxu1 }
 0x2cf   :  { %v7377_v13 = vadd.f32 %v4293_v47, %v2349_v24 }
 0x2d0   :  { %v4329_v21 = vpop.f32.mrf.mxu0  ;;  %v7379_v46 = vpop.f32.mrf.mxu1 }
 0x2d1   :  { %8511 = vst [vmem:[#allocation93_spill] sm:$0xff] %v7377_v13 }
 0x2d2   :  { %v4330_v40 = vpop.f32.mrf.mxu0  ;;  %v7381_v5 = vpop.f32.mrf.mxu1 }
 0x2d4   :  { %v7383_v29 = vpop.f32.mrf.mxu0  ;;  %v7385_v48 = vpop.f32.mrf.mxu1 }
 0x2d6   :  { %v7387_v4 = vpop.f32.mrf.mxu0  ;;  %v7389_v62 = vpop.f32.mrf.mxu1 }
 0x2d8   :  { %v7391_v52 = vpop.f32.mrf.mxu0  ;;  %v7393_v55 = vpop.f32.mrf.mxu1 }
 0x2da   :  { %v7395_v57 = vpop.f32.mrf.mxu0  ;;  %v7397_v42 = vpop.f32.mrf.mxu1 }
 0x2dc   :  { %v7399_v19 = vpop.f32.mrf.mxu0  ;;  %v7401_v26 = vpop.f32.mrf.mxu1 }
 0x2de   :  { %v7403_v23 = vpop.f32.mrf.mxu0  ;;  %v7405_v12 = vpop.f32.mrf.mxu1 }
 0x2df   :  { %8512 = vst [vmem:[#allocation95_spill] sm:$0xff] %v7405_v12 }
 0x2e0   :  { %v7407_v38 = vpop.f32.mrf.mxu0  ;;  %v7409_v32 = vpop.f32.mrf.mxu1 }
 0x2e1   :  { %8513 = vst [vmem:[#allocation97_spill] sm:$0xff] %v7409_v32 }
 0x2e2   :  { %v7411_v36 = vpop.f32.mrf.mxu0  ;;  %v7413_v25 = vpop.f32.mrf.mxu1 }
 0x2e3   :  { %8514 = vst [vmem:[#allocation98_spill] sm:$0xff] %v7413_v25 }
 0x2e4   :  { %v7415_v56 = vpop.f32.mrf.mxu0  ;;  %v7417_v47 = vpop.f32.mrf.mxu1 }
 0x2e5   :  { %8515 = vst [vmem:[#allocation99_spill] sm:$0xff] %v7417_v47 }
 0x2e6   :  { %v7419_v16 = vpop.f32.mrf.mxu0  ;;  %v7421_v18 = vpop.f32.mrf.mxu1 }
 0x2e7   :  { %8516 = vst [vmem:[#allocation60_spill] sm:$0xff] %v7421_v18 }
 0x2e8   :  { %v7423_v51 = vpop.f32.mrf.mxu0  ;;  %v7425_v41 = vpop.f32.mrf.mxu1 }
 0x2e9   :  { %8517 = vst [vmem:[#allocation31_spill] sm:$0xff] %v7425_v41 }
 0x2ea   :  { %v7427_v63 = vpop.f32.mrf.mxu0  ;;  %v7429_v0 = vpop.f32.mrf.mxu1 }
 0x2eb   :  { %8518 = vst [vmem:[#allocation11_spill] sm:$0xff] %v7429_v0 }
 0x2ec   :  { %v7431_v39 = vpop.f32.mrf.mxu0  ;;  %v7433_v27 = vpop.f32.mrf.mxu1 }
 0x2ed   :  { %8519 = vst [vmem:[#allocation38_spill] sm:$0xff] %v7433_v27 }
 0x2ee   :  { %v7435_v43 = vpop.f32.mrf.mxu0  ;;  %v7437_v17 = vpop.f32.mrf.mxu1 }
 0x2ef   :  { %8520 = vst [vmem:[#allocation41_spill] sm:$0xff] %v7437_v17 }
 0x2f0   :  { %v7439_v59 = vpop.f32.mrf.mxu0  ;;  %v7441_v22 = vpop.f32.mrf.mxu1 }
 0x2f1   :  { %8521 = vst [vmem:[#allocation44_spill] sm:$0xff] %v7439_v59  ;;  %8522 = vst [vmem:[#allocation26_spill] sm:$0xff] %v7441_v22 }
 0x2f2   :  { %v7443_v2 = vpop.f32.mrf.mxu0  ;;  %v7445_v15 = vpop.f32.mrf.mxu1 }
 0x2f3   :  { %8523 = vst [vmem:[#allocation15_spill] sm:$0xff] %v7443_v2  ;;  %8524 = vst [vmem:[#allocation39_spill] sm:$0xff] %v7445_v15 }
 0x2f4   :  { %v7447_v24 = vpop.f32.mrf.mxu0  ;;  %v7449_v13 = vpop.f32.mrf.mxu1 }
 0x2f5   :  { %8525 = vst [vmem:[#allocation42_spill] sm:$0xff] %v7447_v24  ;;  %8526 = vst [vmem:[#allocation5_spill] sm:$0xff] %v7449_v13 }
 0x2f6   :  { %v7451_v60 = vpop.f32.mrf.mxu0  ;;  %v7453_v1 = vpop.f32.mrf.mxu1 }
 0x2f7   :  { %8527 = vst [vmem:[#allocation52_spill] sm:$0xff] %v7451_v60  ;;  %8528 = vst [vmem:[#allocation53_spill] sm:$0xff] %v7453_v1 }
 0x2f8   :  { %v7455_v45 = vpop.f32.mrf.mxu0  ;;  %v7457_v27 = vpop.f32.mrf.mxu1 }
 0x2f9   :  { %8529 = vst [vmem:[#allocation88_spill] sm:$0xff] %v7455_v45  ;;  %8530 = vst [vmem:[#allocation51_spill] sm:$0xff] %v7457_v27 }
 0x2fa   :  { %v7459_v17 = vpop.f32.mrf.mxu0  ;;  %v7461_v0 = vpop.f32.mrf.mxu1 }
 0x2fb   :  { %8531 = vst [vmem:[#allocation17_spill] sm:$0xff] %v7459_v17  ;;  %8532 = vst [vmem:[#allocation27_spill] sm:$0xff] %v7461_v0  ;;  %v4328_v0 = vadd.f32 %v4327_v37, %v4326_v14  ;;  %v4334_v14 = vadd.f32 %v7387_v4, %v7383_v29 }
 0x2fc   :  { %v7463_v22 = vpop.f32.mrf.mxu0  ;;  %v7465_v44 = vpop.f32.mrf.mxu1 }
 0x2fd   :  { %8533 = vst [vmem:[#allocation23_spill] sm:$0xff] %v7463_v22  ;;  %8534 = vst [vmem:[#allocation22_spill] sm:$0xff] %v7465_v44  ;;  %v4331_v44 = vadd.f32 %v4330_v40, %v4329_v21  ;;  %v4411_v21 = vadd.f32 %v7358_v6, %v7354_v54 }
 0x2fe   :  { %v7467_v15 = vpop.f32.mrf.mxu0  ;;  %v4566_v41 = vpop.f32.mrf.mxu1 }
 0x2ff   :  { %8535 = vst [vmem:[#allocation32_spill] sm:$0xff] %v7467_v15 }
 0x300   :  { %v7469_v13 = vpop.f32.mrf.mxu0  ;;  %v4567_v18 = vpop.f32.mrf.mxu1 }
 0x301   :  { %8536 = vst [vmem:[#allocation33_spill] sm:$0xff] %v7469_v13  ;;  %v2824_v13 = vadd.f32 %v4328_v0, %v7313_v30  ;;  %v4568_v30 = vadd.f32 %v4567_v18, %v4566_v41  ;;  %v4417_v41 = vadd.f32 %v7372_v50, %v7368_v31 }
 0x302   :  { %v7471_v61 = vpop.f32.mrf.mxu0  ;;  %v4569_v1 = vpop.f32.mrf.mxu1 }
 0x303   :  { %8537 = vst [vmem:[#allocation34_spill] sm:$0xff] %v7471_v61  ;;  %v4408_v61 = vadd.f32 %v7351_v53, %v7347_v35  ;;  %v2842_v35 = vadd.f32 %v4334_v14, %v7320_v49  ;;  %v4420_v14 = vadd.f32 %v7379_v46, %v7375_v20  ;;  %v4423_v20 = vadd.f32 %v7385_v48, %v7381_v5 }
 0x304   :  { %v7473_v45 = vpop.f32.mrf.mxu0  ;;  %v4570_v27 = vpop.f32.mrf.mxu1 }
 0x305   :  { %8538 = vst [vmem:[#allocation40_spill] sm:$0xff] %v7473_v45  ;;  %v2833_v45 = vadd.f32 %v4331_v44, %v7317_v33  ;;  %v3067_v37 = vadd.f32 %v4408_v61, %v2824_v13  ;;  %v4337_v33 = vadd.f32 %v7395_v57, %v7391_v52  ;;  %v4571_v54 = vadd.f32 %v4570_v27, %v4569_v1 }
 0x306   :  { %v7475_v47 = vpop.f32.mrf.mxu0  ;;  %v4572_v17 = vpop.f32.mrf.mxu1 }
 0x307   :  { %8539 = vst [vmem:[#allocation49_spill] sm:$0xff] %v7475_v47  ;;  %v3078_v12 = vadd.f32 %v4411_v21, %v2833_v45  ;;  %v4340_v45 = vadd.f32 %v7403_v23, %v7399_v19  ;;  %v2851_v49 = vadd.f32 %v4337_v33, %v7323_v10  ;;  %v4343_v19 = vadd.f32 %v7411_v36, %v7407_v38 }
 0x308   :  { %v7477_v25 = vpop.f32.mrf.mxu0  ;;  %v4573_v22 = vpop.f32.mrf.mxu1 }
 0x309   :  { %8540 = vst [vmem:[#allocation45_spill] sm:$0xff] %v7477_v25  ;;  %v2860_v1 = vadd.f32 %v4340_v45, %v7326_v11  ;;  %v3100_v10 = vadd.f32 %v4417_v41, %v2851_v49  ;;  %v2869_v11 = vadd.f32 %v4343_v19, %v7329_v34  ;;  %v8547_v19 = vld [vmem:[#allocation52_spill] sm:$0xff] }
 0x30a   :  { %v7479_v28 = vpop.f32.mrf.mxu0  ;;  %v4575_v15 = vpop.f32.mrf.mxu1 }
 0x30b   :  { %8541 = vst [vmem:[#allocation48_spill] sm:$0xff] %v7479_v28  ;;  %v3111_v50 = vadd.f32 %v4420_v14, %v2860_v1  ;;  %v8544_v1 = vld [vmem:[#allocation95_spill] sm:$0xff] }
 0x30c   :  { %v4486_v60 = vpop.f32.mrf.mxu0  ;;  %v4576_v24 = vpop.f32.mrf.mxu1  ;;  %v8548_v14 = vld [vmem:[#allocation91_spill] sm:$0xff] }
 0x30e   :  { %v4487_v32 = vpop.f32.mrf.mxu0  ;;  %v4578_v47 = vpop.f32.mrf.mxu1 }
 0x30f   :  { %v4488_v25 = vadd.f32 %v4487_v32, %v4486_v60  ;;  %v4414_v60 = vadd.f32 %v7365_v7, %v7361_v8 }
 0x310   :  { %v4489_v40 = vpop.f32.mrf.mxu0  ;;  %v4579_v28 = vpop.f32.mrf.mxu1 }
 0x311   :  { %v3400_v0 = vadd.f32 %v4488_v25, %v3067_v37  ;;  %v3089_v25 = vadd.f32 %v4414_v60, %v2842_v35  ;;  %v4580_v46 = vadd.f32 %v4579_v28, %v4578_v47 }
 0x312   :  { %v4490_v2 = vpop.f32.mrf.mxu0  ;;  %v4581_v59 = vpop.f32.mrf.mxu1 }
 0x313   :  { %v3609_v44 = vadd.f32 %v4568_v30, %v3400_v0  ;;  %v4491_v53 = vadd.f32 %v4490_v2, %v4489_v40  ;;  %v4574_v2 = vadd.f32 %v4573_v22, %v4572_v17  ;;  %v4577_v40 = vadd.f32 %v4576_v24, %v4575_v15 }
 0x314   :  { %v4492_v29 = vpop.f32.mrf.mxu0  ;;  %v4582_v61 = vpop.f32.mrf.mxu1  ;;  %v4346_v30 = vadd.f32 %v7419_v16, %v7415_v56  ;;  %v4349_v24 = vadd.f32 %v7427_v63, %v7423_v51  ;;  %v4352_v51 = vadd.f32 %v7435_v43, %v7431_v39 }
 0x315   :  { %3717 = vst [vmem:[#allocation2] sm:$0xff] %v3609_v44  ;;  %v3407_v6 = vadd.f32 %v4491_v53, %v3078_v12 }
 0x316   :  { %v4493_v13 = vpop.f32.mrf.mxu0  ;;  %v4584_v4 = vpop.f32.mrf.mxu1  ;;  %v2878_v34 = vadd.f32 %v4346_v30, %v7332_v58  ;;  %v2887_v5 = vadd.f32 %v4349_v24, %v7335_v3  ;;  %v2896_v3 = vadd.f32 %v4352_v51, %v7338_v9 }
 0x317   :  { %v3616_v32 = vadd.f32 %v4571_v54, %v3407_v6  ;;  %v4494_v52 = vadd.f32 %v4493_v13, %v4492_v29  ;;  %v3122_v29 = vadd.f32 %v4423_v20, %v2869_v11  ;;  %v4426_v54 = vadd.f32 %v7393_v55, %v7389_v62  ;;  %v8550_v11 = vld [vmem:[#allocation99_spill] sm:$0xff] }
 0x318   :  { %v4495_v57 = vpop.f32.mrf.mxu0  ;;  %v4585_v18 = vpop.f32.mrf.mxu1  ;;  %v4583_v6 = vadd.f32 %v4582_v61, %v4581_v59  ;;  %v4429_v13 = vadd.f32 %v7401_v26, %v7397_v42 }
 0x319   :  { %3718 = vst [vmem:[#allocation2 + $0x8] sm:$0xff] %v3616_v32  ;;  %v3414_v8 = vadd.f32 %v4494_v52, %v3089_v25  ;;  %v3133_v58 = vadd.f32 %v4426_v54, %v2878_v34  ;;  %v4586_v25 = vadd.f32 %v4585_v18, %v4584_v4  ;;  %v8542_v52 = vld [vmem:[#allocation44_spill] sm:$0xff]  ;;  %v8546_v18 = vld [vmem:[#allocation42_spill] sm:$0xff] }
 0x31a   :  { %v4496_v7 = vpop.f32.mrf.mxu0  ;;  %v4587_v12 = vpop.f32.mrf.mxu1  ;;  %v3144_v55 = vadd.f32 %v4429_v13, %v2887_v5 }
 0x31b   :  { %v3623_v23 = vadd.f32 %v4574_v2, %v3414_v8  ;;  %v4497_v27 = vadd.f32 %v4496_v7, %v4495_v57  ;;  %v8543_v57 = vld [vmem:[#allocation15_spill] sm:$0xff]  ;;  %v8545_v7 = vld [vmem:[#allocation97_spill] sm:$0xff] }
 0x31c   :  { %v4498_v37 = vpop.f32.mrf.mxu0  ;;  %v4588_v21 = vpop.f32.mrf.mxu1  ;;  %v4355_v41 = vadd.f32 %v8543_v57, %v8542_v52  ;;  %v4432_v42 = vadd.f32 %v8545_v7, %v8544_v1 }
 0x31d   :  { %3719 = vst [vmem:[#allocation2 + $0x10] sm:$0xff] %v3623_v23  ;;  %v3421_v31 = vadd.f32 %v4497_v27, %v3100_v10  ;;  %v4589_v26 = vadd.f32 %v4588_v21, %v4587_v12  ;;  %v4358_v23 = vadd.f32 %v8547_v19, %v8546_v18  ;;  %v8551_v12 = vld [vmem:[#allocation19_spill] sm:$0xff]  ;;  %v8565_v18 = vld [vmem:[#allocation26_spill] sm:$0xff] }
 0x31e   :  { %v4499_v17 = vpop.f32.mrf.mxu0  ;;  %v4590_v22 = vpop.f32.mrf.mxu1  ;;  %v2905_v9 = vadd.f32 %v4355_v41, %v8548_v14 }
 0x31f   :  { %v3630_v38 = vadd.f32 %v4577_v40, %v3421_v31  ;;  %v4500_v36 = vadd.f32 %v4499_v17, %v4498_v37  ;;  %v3155_v40 = vadd.f32 %v4432_v42, %v2896_v3  ;;  %v8549_v17 = vld [vmem:[#allocation98_spill] sm:$0xff]  ;;  %v2914_v21 = vadd.f32 %v4358_v23, %v8551_v12 }
 0x320   :  { %v4501_v0 = vpop.f32.mrf.mxu0  ;;  %v4591_v35 = vpop.f32.mrf.mxu1  ;;  %v4435_v30 = vadd.f32 %v8550_v11, %v8549_v17 }
 0x321   :  { %3720 = vst [vmem:[#allocation2 + $0x18] sm:$0xff] %v3630_v38  ;;  %v3428_v15 = vadd.f32 %v4500_v36, %v3111_v50  ;;  %v4592_v38 = vadd.f32 %v4591_v35, %v4590_v22 }
 0x322   :  { %v4502_v33 = vpop.f32.mrf.mxu0  ;;  %v4593_v44 = vpop.f32.mrf.mxu1  ;;  %v3166_v34 = vadd.f32 %v4435_v30, %v2905_v9  ;;  %v8569_v30 = vld [vmem:[#allocation39_spill] sm:$0xff] }
 0x323   :  { %v3637_v53 = vadd.f32 %v4580_v46, %v3428_v15  ;;  %v4503_v56 = vadd.f32 %v4502_v33, %v4501_v0  ;;  %v8552_v46 = vld [vmem:[#allocation88_spill] sm:$0xff]  ;;  %v8553_v15 = vld [vmem:[#allocation17_spill] sm:$0xff] }
 0x324   :  { %v4504_v16 = vpop.f32.mrf.mxu0  ;;  %v4594_v60 = vpop.f32.mrf.mxu1  ;;  %v4361_v24 = vadd.f32 %v8553_v15, %v8552_v46  ;;  %v8571_v15 = vld [vmem:[#allocation35_spill] sm:$0xff] }
 0x325   :  { %3721 = vst [vmem:[#allocation2 + $0x20] sm:$0xff] %v3637_v53  ;;  %v3435_v28 = vadd.f32 %v4503_v56, %v3122_v29  ;;  %v8554_v29 = vld [vmem:[#allocation60_spill] sm:$0xff]  ;;  %v8555_v56 = vld [vmem:[#allocation31_spill] sm:$0xff] }
 0x326   :  { %v4505_v48 = vpop.f32.mrf.mxu0  ;;  %v4596_v47 = vpop.f32.mrf.mxu1 }
 0x327   :  { %v3644_v63 = vadd.f32 %v4583_v6, %v3435_v28  ;;  %v4506_v45 = vadd.f32 %v4505_v48, %v4504_v16  ;;  %v4438_v16 = vadd.f32 %v8555_v56, %v8554_v29  ;;  %v4595_v6 = vadd.f32 %v4594_v60, %v4593_v44  ;;  %v8556_v48 = vld [vmem:[#allocation25_spill] sm:$0xff]  ;;  %v8562_v60 = vld [vmem:[#allocation34_spill] sm:$0xff] }
 0x328   :  { %v4507_v49 = vpop.f32.mrf.mxu0  ;;  %v4597_v32 = vpop.f32.mrf.mxu1  ;;  %v2923_v51 = vadd.f32 %v4361_v24, %v8556_v48  ;;  %v8561_v44 = vld [vmem:[#allocation33_spill] sm:$0xff] }
 0x329   :  { %3722 = vst [vmem:[#allocation2 + $0x28] sm:$0xff] %v3644_v63  ;;  %v3442_v62 = vadd.f32 %v4506_v45, %v3133_v58  ;;  %v3177_v22 = vadd.f32 %v4438_v16, %v2914_v21  ;;  %v8557_v63 = vld [vmem:[#allocation23_spill] sm:$0xff]  ;;  %v8558_v58 = vld [vmem:[#allocation32_spill] sm:$0xff]  ;;  %v4598_v3 = vadd.f32 %v4597_v32, %v4596_v47  ;;  %v4367_v57 = vadd.f32 %v8562_v60, %v8561_v44  ;;  %v8566_v47 = vld [vmem:[#allocation37_spill] sm:$0xff] }
 0x32a   :  { %v4508_v59 = vpop.f32.mrf.mxu0  ;;  %v4599_v61 = vpop.f32.mrf.mxu1  ;;  %v4364_v45 = vadd.f32 %v8558_v58, %v8557_v63  ;;  %v8576_v48 = vld [vmem:[#allocation93_spill] sm:$0xff] }
 0x32b   :  { %v3651_v39 = vadd.f32 %v4586_v25, %v3442_v62  ;;  %v4509_v43 = vadd.f32 %v4508_v59, %v4507_v49  ;;  %v8559_v62 = vld [vmem:[#allocation11_spill] sm:$0xff]  ;;  %v2941_v32 = vadd.f32 %v4367_v57, %v8566_v47 }
 0x32c   :  { %v4510_v2 = vpop.f32.mrf.mxu0  ;;  %v4600_v8 = vpop.f32.mrf.mxu1 }
 0x32d   :  { %3723 = vst [vmem:[#allocation2 + $0x30] sm:$0xff] %v3651_v39  ;;  %v3449_v4 = vadd.f32 %v4509_v43, %v3144_v55  ;;  %v8560_v55 = vld [vmem:[#allocation38_spill] sm:$0xff]  ;;  %v8563_v43 = vld [vmem:[#allocation28_spill] sm:$0xff]  ;;  %v4601_v23 = vadd.f32 %v4600_v8, %v4599_v61 }
 0x32e   :  { %v4511_v10 = vpop.f32.mrf.mxu0  ;;  %v4602_v27 = vpop.f32.mrf.mxu1  ;;  %v4441_v59 = vadd.f32 %v8560_v55, %v8559_v62 }
 0x32f   :  { %v3658_v37 = vadd.f32 %v4589_v26, %v3449_v4  ;;  %v4512_v31 = vadd.f32 %v4511_v10, %v4510_v2  ;;  %v2932_v2 = vadd.f32 %v4364_v45, %v8563_v43  ;;  %v8564_v4 = vld [vmem:[#allocation41_spill] sm:$0xff] }
 0x330   :  { %v4513_v50 = vpop.f32.mrf.mxu0  ;;  %v4603_v20 = vpop.f32.mrf.mxu1  ;;  %v3188_v7 = vadd.f32 %v4441_v59, %v2923_v51  ;;  %v4444_v19 = vadd.f32 %v8565_v18, %v8564_v4 }
 0x331   :  { %3724 = vst [vmem:[#allocation2 + $0x38] sm:$0xff] %v3658_v37  ;;  %v3456_v36 = vadd.f32 %v4512_v31, %v3155_v40  ;;  %v8567_v37 = vld [vmem:[#allocation40_spill] sm:$0xff]  ;;  %v8568_v40 = vld [vmem:[#allocation49_spill] sm:$0xff]  ;;  %v4604_v21 = vadd.f32 %v4603_v20, %v4602_v27 }
 0x332   :  { %v4514_v0 = vpop.f32.mrf.mxu0  ;;  %v4605_v5 = vpop.f32.mrf.mxu1  ;;  %v4370_v31 = vadd.f32 %v8568_v40, %v8567_v37  ;;  %v3199_v17 = vadd.f32 %v4444_v19, %v2932_v2 }
 0x333   :  { %v3665_v33 = vadd.f32 %v4592_v38, %v3456_v36  ;;  %v4515_v53 = vadd.f32 %v4514_v0, %v4513_v50  ;;  %v8570_v38 = vld [vmem:[#allocation5_spill] sm:$0xff] }
 0x334   :  { %v4516_v54 = vpop.f32.mrf.mxu0  ;;  %v4606_v39 = vpop.f32.mrf.mxu1  ;;  %v4447_v36 = vadd.f32 %v8570_v38, %v8569_v30  ;;  %v2950_v24 = vadd.f32 %v4370_v31, %v8571_v15 }
 0x335   :  { %3725 = vst [vmem:[#allocation2 + $0x40] sm:$0xff] %v3665_v33  ;;  %v3463_v28 = vadd.f32 %v4515_v53, %v3166_v34  ;;  %v8572_v33 = vld [vmem:[#allocation45_spill] sm:$0xff]  ;;  %v8573_v34 = vld [vmem:[#allocation48_spill] sm:$0xff] }
 0x336   :  { %v4517_v35 = vpop.f32.mrf.mxu0  ;;  %v4608_v14 = vpop.f32.mrf.mxu1  ;;  %v3210_v8 = vadd.f32 %v4447_v36, %v2941_v32  ;;  %v4373_v53 = vadd.f32 %v8573_v34, %v8572_v33 }
 0x337   :  { %v3672_v13 = vadd.f32 %v4595_v6, %v3463_v28  ;;  %v4518_v49 = vadd.f32 %v4517_v35, %v4516_v54  ;;  %v8574_v54 = vld [vmem:[#allocation53_spill] sm:$0xff]  ;;  %v8575_v6 = vld [vmem:[#allocation51_spill] sm:$0xff] }
 0x338   :  { %v4519_v25 = vpop.f32.mrf.mxu0  ;;  %v4609_v61 = vpop.f32.mrf.mxu1  ;;  %v4450_v28 = vadd.f32 %v8575_v6, %v8574_v54  ;;  %v2959_v51 = vadd.f32 %v4373_v53, %v8576_v48 }
 0x339   :  { %3726 = vst [vmem:[#allocation2 + $0x48] sm:$0xff] %v3672_v13  ;;  %v3470_v52 = vadd.f32 %v4518_v49, %v3177_v22  ;;  %v4607_v22 = vadd.f32 %v4606_v39, %v4605_v5  ;;  %v8577_v49 = vld [vmem:[#allocation27_spill] sm:$0xff]  ;;  %v4610_v55 = vadd.f32 %v4609_v61, %v4608_v14 }
 0x33a   :  { %v4520_v41 = vpop.f32.mrf.mxu0  ;;  %v4611_v27 = vpop.f32.mrf.mxu1  ;;  %v3221_v58 = vadd.f32 %v4450_v28, %v2950_v24 }
 0x33b   :  { %v3679_v1 = vadd.f32 %v4598_v3, %v3470_v52  ;;  %v4521_v42 = vadd.f32 %v4520_v41, %v4519_v25  ;;  %v8578_v25 = vld [vmem:[#allocation22_spill] sm:$0xff] }
 0x33c   :  { %v4522_v26 = vpop.f32.mrf.mxu0  ;;  %v4453_v62 = vadd.f32 %v8578_v25, %v8577_v49  ;;  %v4612_v3 = vpop.f32.mrf.mxu1 }
 0x33d   :  { %3727 = vst [vmem:[#allocation2 + $0x50] sm:$0xff] %v3679_v1  ;;  %v3477_v10 = vadd.f32 %v4521_v42, %v3188_v7  ;;  %v4613_v57 = vadd.f32 %v4612_v3, %v4611_v27 }
 0x33e   :  { %v4523_v9 = vpop.f32.mrf.mxu0  ;;  %v3232_v5 = vadd.f32 %v4453_v62, %v2959_v51 }
 0x33f   :  { %v3686_v50 = vadd.f32 %v4601_v23, %v3477_v10  ;;  %v4524_v11 = vadd.f32 %v4523_v9, %v4522_v26 }
 0x340   :  { %v4525_v12 = vpop.f32.mrf.mxu0 }
 0x341   :  { %3728 = vst [vmem:[#allocation2 + $0x58] sm:$0xff] %v3686_v50  ;;  %v3484_v0 = vadd.f32 %v4524_v11, %v3199_v17 }
 0x342   :  { %v4526_v46 = vpop.f32.mrf.mxu0 }
 0x343   :  { %v3693_v29 = vadd.f32 %v4604_v21, %v3484_v0  ;;  %v4527_v56 = vadd.f32 %v4526_v46, %v4525_v12 }
 0x344   :  { %v4528_v16 = vpop.f32.mrf.mxu0 }
 0x345   :  { %3729 = vst [vmem:[#allocation2 + $0x60] sm:$0xff] %v3693_v29  ;;  %v3491_v35 = vadd.f32 %v4527_v56, %v3210_v8 }
 0x346   :  { %v4529_v20 = vpop.f32.mrf.mxu0 }
 0x347   :  { %v3700_v63 = vadd.f32 %v4607_v22, %v3491_v35  ;;  %v4530_v45 = vadd.f32 %v4529_v20, %v4528_v16 }
 0x348   :  { %v4531_v13 = vpop.f32.mrf.mxu0 }
 0x349   :  { %3730 = vst [vmem:[#allocation2 + $0x68] sm:$0xff] %v3700_v63  ;;  %v3498_v59 = vadd.f32 %v4530_v45, %v3221_v58 }
 0x34a   :  { %v4532_v52 = vpop.f32.mrf.mxu0 }
 0x34b   :  { %v3707_v44 = vadd.f32 %v4610_v55, %v3498_v59  ;;  %v4533_v60 = vadd.f32 %v4532_v52, %v4531_v13 }
 0x34d   :  { %3731 = vst [vmem:[#allocation2 + $0x70] sm:$0xff] %v3707_v44  ;;  %v3505_v41 = vadd.f32 %v4533_v60, %v3232_v5 }
 0x34f   :  { %v3714_v39 = vadd.f32 %v4613_v57, %v3505_v41 }
 0x351   :  { %3732 = vst [vmem:[#allocation2 + $0x78] sm:$0xff] %v3714_v39 }
 0x352   :  { %4692 = shalt.err (!%p4689_p4)
}
 0x353   :  { %s4704_s24 = smov 128   ;;  %s4705_s25 = smov 8  }
 0x354   :  { %3744 = dma.vmem_to_hbm [thread:$0]  %s3739_s22, 2048, %s7565_s5, [#allocation3], %s4704_s24, %s4704_s24, %s4705_s25  }
 0x355   :  { %4701 = dma.done.wait [#allocation3], 2048  }
 0x356   :  { %4702 = vsyncadd [#allocation3], 4294965248 }
 0x357   :  { %3748 = vsyncpa [#allocation3], 1 }

</bundles_post_ra>
